<compile_context>
chip_gen: v7x
topology: tpu7x:2x2x1
jax: 0.10.0
libtpu: 0.0.40
codegen_flags: <defaults>
</compile_context>

<pallas_src>
import functools

import jax
import jax.numpy as jnp
from jax.experimental import pallas as pl
from jax.experimental.pallas import tpu as pltpu


# ---------------------------------------------------------------------------
# One-time probe: detect the rotation direction of pltpu.roll on this backend.
# Returns +1 (jnp.roll semantics: out[i] = x[i - shift]), -1 (opposite), or
# 0 (roll unavailable -> masked-slice fallback in the kernel).
# ---------------------------------------------------------------------------
_ROLL_SIGN = []


def _roll_shift_sign():
    if _ROLL_SIGN:
        return _ROLL_SIGN[0]
    sign = 0
    try:
        def probe(o_ref):
            r = jax.lax.broadcasted_iota(jnp.float32, (8, 128), 0)
            o_ref[...] = pltpu.roll(r, shift=1, axis=0)

        out = pl.pallas_call(
            probe, out_shape=jax.ShapeDtypeStruct((8, 128), jnp.float32))()
        v = float(jax.block_until_ready(out)[0, 0])
        if v == 7.0:
            sign = 1
        elif v == 1.0:
            sign = -1
    except Exception:
        sign = 0
    _ROLL_SIGN.append(sign)
    return sign


# ---------------------------------------------------------------------------
# Pallas kernel: block_b batch elements per grid step.
# ---------------------------------------------------------------------------
def _sanm_attn_kernel(x_ref, m3_ref, mrow_ref,
                      wqkv_ref, bqkv_ref, wf_ref, wo_ref, bo_ref,
                      o_ref, qkv_ref, ctx_ref,
                      *, h, d_k, ksize, approx_recip, roll_sign):
    Bb, T, D = x_ref.shape
    M = Bb * T
    mxu_dt = wqkv_ref.dtype

    x = x_ref[...].reshape(M, D)          # (M, D) activations (MXU dtype)
    m3 = m3_ref[...].reshape(M, 1)        # (M, 1) multiplicative padding mask (f32)

    # ------------- Fused QKV projection: one lane-dense (M,D)@(D,3D) matmul ----
    # (d_k**-0.5 is pre-folded into the Q columns of wqkv/bqkv in the wrapper.)
    qkv_f32 = jnp.dot(x, wqkv_ref[...],
                      preferred_element_type=jnp.float32) + bqkv_ref[...]  # (M, 3D)
    v_f32 = qkv_f32[:, 2 * D:]            # f32 V for the FSMN branch
    qkv_ref[...] = qkv_f32.astype(mxu_dt)  # single low-precision copy for attention

    # ------------- FSMN memory branch: causal depthwise conv (f32, VPU+XLU) ----
    vm = v_f32 * m3
    row = jax.lax.broadcasted_iota(jnp.int32, (M, 1), 0)
    local = row if Bb == 1 else row % T   # local time index within each element
    conv = vm * wf_ref[ksize - 1:ksize, :]                # tap kk = K-1 (shift 0)
    for kk in range(ksize - 1):
        sh = ksize - 1 - kk                               # want shifted[r] = vm[r - sh]
        if roll_sign != 0:
            amt = sh if roll_sign == 1 else M - sh        # always non-negative shift
            shifted = pltpu.roll(vm, shift=amt, axis=0)
        else:
            shifted = jnp.concatenate(
                [jnp.zeros((sh, D), jnp.float32), vm[:M - sh, :]], axis=0)
        # Zero rows that wrapped around / leaked across batch-element boundaries.
        shifted = jnp.where(local >= sh, shifted, 0.0)
        conv = conv + shifted * wf_ref[kk:kk + 1, :]
    fsmn = (conv + vm) * m3                               # (M, D) f32

    # ------------- Multi-head attention ----------------------------------------
    mrow = mrow_ref[...]                  # (Bb, 1, T) additive key-padding rows
    dnums = (((1,), (1,)), ((), ()))      # contract last dims (no materialized k.T)

    def attend(bb, hh):
        rows = pl.ds(bb * T, T)
        q = qkv_ref[rows, pl.ds(hh * d_k, d_k)]
        k = qkv_ref[rows, pl.ds(D + hh * d_k, d_k)]
        s = jax.lax.dot_general(q, k, dnums,
                                preferred_element_type=jnp.float32)   # (T, T)
        s = s + mrow[bb]                                   # key mask (broadcast rows)
        s = s - jnp.max(s, axis=-1, keepdims=True)
        p = jnp.exp(s)
        l = jnp.sum(p, axis=-1, keepdims=True)             # (T, 1)
        ctx = jnp.dot(p.astype(mxu_dt),
                      qkv_ref[rows, pl.ds(2 * D + hh * d_k, d_k)],
                      preferred_element_type=jnp.float32)   # (T, d_k)
        # Deferred softmax normalization on the small (T, d_k) context.
        ctx = ctx * pl.reciprocal(l, approx=approx_recip)
        # Park this head's context at its lane offset (bounds (T,T) liveness and
        # makes linear_out a single deep matmul).
        ctx_ref[rows, pl.ds(hh * d_k, d_k)] = ctx.astype(ctx_ref.dtype)

    # Static unroll: SANM uses h <= 4 (review guidance: unroll only for h <= 4).
    # TODO(synk): fori_loop over heads with 128-aligned dynamic lane slices for h > 4.
    for bb in range(Bb):
        for hh in range(h):
            attend(bb, hh)

    # One deep (M, D) @ (D, D) output projection.
    att = jnp.dot(ctx_ref[...], wo_ref[...],
                  preferred_element_type=jnp.float32) + bo_ref[...]
    o_ref[...] = (att + fsmn).reshape(Bb, T, D).astype(o_ref.dtype)


# ---------------------------------------------------------------------------
# Wrapper helpers
# ---------------------------------------------------------------------------
def _pick_block_b(B, T):
    """Batch elements per grid step: fill the MXU M dim (~256 rows) for the
    projections; keep >= 2 grid steps when B allows (v7x has two TensorCores)."""
    target = max(1, 256 // max(T, 1))
    best = 1
    for cand in range(1, B + 1):
        if B % cand != 0 or cand > target or cand > 8:
            continue
        if B >= 4 and B // cand < 2:
            continue
        best = cand
    return best


def _vmem_limit_bytes(block_b, T, D, ksize, mxu_bytes):
    f32 = 4
    M = block_b * T
    # double-buffered activation blocks (mask blocks lane-pad to 128 lanes)
    act = 2 * (M * D * mxu_bytes + M * 128 * f32
               + block_b * max(T, 128) * f32 + M * D * f32)
    # weights (assume worst-case double buffering in the estimate)
    wts = 2 * ((D * 3 * D + D * D) * mxu_bytes + (4 * D + 8 * D) * f32)
    # persistent VMEM scratch (qkv + ctx slabs)
    scr = M * 3 * D * mxu_bytes + M * D * mxu_bytes
    # live f32 intermediates: qkv, fsmn temps, one head's (T,T) scores/probs
    tmp = M * 3 * D * f32 + 3 * M * D * f32 + 3 * T * T * f32
    est = act + wts + scr + tmp
    try:
        phys = pltpu.get_tpu_info().vmem_capacity_bytes
    except Exception:
        phys = 64 * 1024 * 1024          # unknown -> assume v7x (smallest VMEM)
    cap = int(phys * 0.85)               # leave compiler-internal scratch headroom
    return min(cap, max(32 * 1024 * 1024, int(1.5 * est)))


def _const_spec(shape, single_buffer):
    index_map = lambda g: tuple(0 for _ in shape)
    if single_buffer:
        # Constant index_map -> single-buffer the weight blocks (saves VMEM).
        return pl.BlockSpec(shape, index_map, pipeline_mode=pl.Buffered(1))
    return pl.BlockSpec(shape, index_map)


# ---------------------------------------------------------------------------
# Public wrapper
# ---------------------------------------------------------------------------
def mhsa_sanm_pallas(x, mask3, mask4, params, *, h, d_k, ksize,
                     mxu_dtype=jnp.bfloat16, approx_softmax_recip=None,
                     block_b=None, validate_mask=False):
    B, T, D = x.shape
    assert D == h * d_k
    if approx_softmax_recip is None:
        approx_softmax_recip = (mxu_dtype != jnp.float32)
    if validate_mask:
        # The kernel only ships one (1, T) additive row per batch element, so the
        # 4-D mask must be query-independent (standard key-padding mask).
        if not bool(jnp.all(mask4 == mask4[:, :, :1, :])):
            # TODO(synk): chunk/causal mask_4d needs a full-(T,T)-mask path.
            raise NotImplementedError(
                "mask_4d must be a query-independent key-padding mask")
    if block_b is None:
        block_b = _pick_block_b(B, T)
    assert B % block_b == 0

    scale = d_k ** (-0.5)

    # linear_q_k_v: torch W (3D, D), y = x @ W.T + b  ->  (D, 3D); fold d_k**-0.5
    # into the Q columns (and Q bias).  NOTE: in the bf16 path this folds the
    # scale into bf16 weights (one extra rounding vs. the reference).
    wqkv_t = jnp.asarray(params["W_qkv"]).T
    bqkv = jnp.asarray(params["b_qkv"])
    col_scale = jnp.concatenate([jnp.full((D,), scale, jnp.float32),
                                 jnp.ones((2 * D,), jnp.float32)])
    wqkv_t = (wqkv_t * col_scale[None, :]).astype(mxu_dtype)
    bqkv_s = (bqkv * col_scale).reshape(1, 3 * D).astype(jnp.float32)

    wo = jnp.asarray(params["W_out"]).T.astype(mxu_dtype)          # (D, D)
    bo = jnp.asarray(params["b_out"]).reshape(1, D).astype(jnp.float32)
    wf = jnp.asarray(params["W_fsmn"])[:, 0, :].T.astype(jnp.float32)  # (K, D)

    mrow = mask4[:, 0, 0, :].reshape(B, 1, T).astype(jnp.float32)  # key-mask rows
    x_mx = x.astype(mxu_dtype)
    m3 = mask3.astype(jnp.float32)

    roll_sign = _roll_shift_sign()

    kernel = functools.partial(
        _sanm_attn_kernel, h=h, d_k=d_k, ksize=ksize,
        approx_recip=bool(approx_softmax_recip), roll_sign=roll_sign)

    grid = (B // block_b,)
    mxu_bytes = jnp.dtype(mxu_dtype).itemsize
    vmem_limit = _vmem_limit_bytes(block_b, T, D, ksize, mxu_bytes)

    def run(single_buffer_weights):
        in_specs = [
            pl.BlockSpec((block_b, T, D), lambda g: (g, 0, 0)),    # x
            pl.BlockSpec((block_b, T, 1), lambda g: (g, 0, 0)),    # mask3
            pl.BlockSpec((block_b, 1, T), lambda g: (g, 0, 0)),    # additive key row
            _const_spec((D, 3 * D), single_buffer_weights),        # fused qkv weight
            _const_spec((1, 3 * D), single_buffer_weights),        # fused qkv bias
            _const_spec((ksize, D), single_buffer_weights),        # fsmn taps
            _const_spec((D, D), single_buffer_weights),            # linear_out weight
            _const_spec((1, D), single_buffer_weights),            # linear_out bias
        ]
        out_specs = pl.BlockSpec((block_b, T, D), lambda g: (g, 0, 0))
        return pl.pallas_call(
            kernel,
            out_shape=jax.ShapeDtypeStruct((B, T, D), x.dtype),
            grid=grid,
            in_specs=in_specs,
            out_specs=out_specs,
            scratch_shapes=[
                pltpu.VMEM((block_b * T, 3 * D), mxu_dtype),       # qkv (MXU dtype)
                pltpu.VMEM((block_b * T, D), mxu_dtype),           # parked ctx slab
            ],
            compiler_params=pltpu.CompilerParams(
                dimension_semantics=("parallel",),
                vmem_limit_bytes=vmem_limit),
        )(x_mx, m3, mrow, wqkv_t, bqkv_s, wf, wo, bo)

    try:
        return run(True)
    except Exception:
        # pipeline_mode=pl.Buffered(1) not supported on this Pallas version ->
        # fall back to default (double) buffering of the weight blocks.
        return run(False)


# ---------------------------------------------------------------------------
# Pure-JAX reference (mirrors the PyTorch forward exactly) for verification.
# ---------------------------------------------------------------------------
def mhsa_sanm_reference(x, mask3, mask4, params, *, h, d_k, ksize):
    B, T, D = x.shape
    qkv = x @ params["W_qkv"].T + params["b_qkv"]
    q, k, v = jnp.split(qkv, 3, axis=-1)

    def heads(t):
        return t.reshape(B, T, h, d_k).transpose(0, 2, 1, 3)

    q_h, k_h, v_h = heads(q), heads(k), heads(v)

    # FSMN
    vm = v * mask3
    padded = jnp.pad(vm, ((0, 0), (ksize - 1, 0), (0, 0)))
    wf = params["W_fsmn"][:, 0, :]                      # (D, K)
    conv = jnp.zeros_like(vm)
    for kk in range(ksize):
        conv = conv + padded[:, kk:kk + T, :] * wf[:, kk][None, None, :]
    fsmn = (conv + vm) * mask3

    # Attention
    q_h = q_h * d_k ** (-0.5)
    scores = jnp.einsum("bhqd,bhkd->bhqk", q_h, k_h) + mask4
    attn = jax.nn.softmax(scores, axis=-1)
    ctx = jnp.einsum("bhqk,bhkd->bhqd", attn, v_h)
    ctx = ctx.transpose(0, 2, 1, 3).reshape(B, T, D)
    att_out = ctx @ params["W_out"].T + params["b_out"]
    return att_out + fsmn


# ---------------------------------------------------------------------------
if __name__ == "__main__":
    def make_case(B, T, h, d_k, ksize, seed):
        D = h * d_k
        key = jax.random.fold_in(jax.random.PRNGKey(0), seed)
        ks = jax.random.split(key, 6)
        params = {
            "W_qkv": 0.1 * jax.random.normal(ks[0], (3 * D, D), jnp.float32),
            "b_qkv": 0.1 * jax.random.normal(ks[1], (3 * D,), jnp.float32),
            "W_out": 0.1 * jax.random.normal(ks[2], (D, D), jnp.float32),
            "b_out": 0.1 * jax.random.normal(ks[3], (D,), jnp.float32),
            "W_fsmn": 0.1 * jax.random.normal(ks[4], (D, 1, ksize), jnp.float32),
        }
        x = jax.random.normal(ks[5], (B, T, D), jnp.float32)
        lengths = jnp.array([T] + [max(1, T - 3)] * (B - 1))
        t_idx = jnp.arange(T)
        valid = (t_idx[None, :] < lengths[:, None]).astype(jnp.float32)   # (B, T)
        mask3 = valid[:, :, None]                                         # (B, T, 1)
        mask4 = jnp.broadcast_to((1.0 - valid)[:, None, None, :] * (-10000.0),
                                 (B, 1, T, T))                            # (B,1,T,T)
        ref = mhsa_sanm_reference(x, mask3, mask4, params,
                                  h=h, d_k=d_k, ksize=ksize)
        return x, mask3, mask4, params, ref

    # Case A: h=2, d_k=128 (D=256), ksize=5.
    B, T, h, d_k, ksize = 2, 16, 2, 128, 5
    x, mask3, mask4, params, ref = make_case(B, T, h, d_k, ksize, seed=1)

    # 1) f32 MXU path: strict numerical check of the kernel logic.
    out_f32 = mhsa_sanm_pallas(x, mask3, mask4, params, h=h, d_k=d_k, ksize=ksize,
                               mxu_dtype=jnp.float32, validate_mask=True)
    out_f32 = jax.block_until_ready(out_f32)
    assert out_f32.shape == ref.shape
    err = float(jnp.max(jnp.abs(out_f32 - ref)))
    assert err < 5e-4, f"f32 Pallas kernel mismatch vs reference: {err}"

    # 2) bf16 MXU default (production path): looser tolerance.
    out_bf16 = mhsa_sanm_pallas(x, mask3, mask4, params, h=h, d_k=d_k, ksize=ksize,
                                validate_mask=True)
    out_bf16 = jax.block_until_ready(out_bf16)
    tol = 0.05 * (1.0 + float(jnp.max(jnp.abs(ref))))
    err = float(jnp.max(jnp.abs(out_bf16 - ref)))
    assert err < tol, f"bf16 Pallas kernel mismatch: {err} >= {tol}"

    # Case B: h=4, d_k=128 (D=512), ksize=3, forced block_b=1 (grid of 2).
    B2, T2, h2, d_k2, ksize2 = 2, 16, 4, 128, 3
    x2, mask3_2, mask4_2, params2, ref2 = make_case(B2, T2, h2, d_k2, ksize2, seed=2)
    out2 = mhsa_sanm_pallas(x2, mask3_2, mask4_2, params2, h=h2, d_k=d_k2,
                            ksize=ksize2, block_b=1, validate_mask=True)
    out2 = jax.block_until_ready(out2)
    tol2 = 0.05 * (1.0 + float(jnp.max(jnp.abs(ref2))))
    err2 = float(jnp.max(jnp.abs(out2 - ref2)))
    assert err2 < tol2, f"bf16 Pallas kernel (case B) mismatch: {err2} >= {tol2}"

    print("KERNEL_OK")
</pallas_src>

<mosaic_0001>
module attributes {stable_mosaic.version = 11 : i64} {
  func.func @_sanm_attn_kernel(%arg0: i32, %arg1: memref<2x16x256xf32, #tpu.memory_space<vmem>>, %arg2: memref<2x16x1xf32, #tpu.memory_space<vmem>>, %arg3: memref<2x1x16xf32, #tpu.memory_space<vmem>>, %arg4: memref<256x768xf32, #tpu.memory_space<vmem>>, %arg5: memref<1x768xf32, #tpu.memory_space<vmem>>, %arg6: memref<5x256xf32, #tpu.memory_space<vmem>>, %arg7: memref<256x256xf32, #tpu.memory_space<vmem>>, %arg8: memref<1x256xf32, #tpu.memory_space<vmem>>, %arg9: memref<2x16x256xf32, #tpu.memory_space<vmem>>, %arg10: memref<32x768xf32, #tpu.memory_space<vmem>>, %arg11: memref<32x256xf32, #tpu.memory_space<vmem>>) attributes {dimension_semantics = [#tpu.dimension_semantics<parallel>], iteration_bounds = array<i64: 1>, scalar_prefetch = 0 : i64, scratch_operands = 2 : i64, tpu.core_type = #tpu.core_type<tc>, window_params = [{transform_indices = @transform_0, window_bounds = array<i64: 2, 16, 256>}, {transform_indices = @transform_1, window_bounds = array<i64: 2, 16, 1>}, {transform_indices = @transform_2, window_bounds = array<i64: 2, 1, 16>}, {pipeline_mode = #tpu.pipeline_mode<synchronous>, transform_indices = @transform_3, window_bounds = array<i64: 256, 768>}, {pipeline_mode = #tpu.pipeline_mode<synchronous>, transform_indices = @transform_4, window_bounds = array<i64: 1, 768>}, {pipeline_mode = #tpu.pipeline_mode<synchronous>, transform_indices = @transform_5, window_bounds = array<i64: 5, 256>}, {pipeline_mode = #tpu.pipeline_mode<synchronous>, transform_indices = @transform_6, window_bounds = array<i64: 256, 256>}, {pipeline_mode = #tpu.pipeline_mode<synchronous>, transform_indices = @transform_7, window_bounds = array<i64: 1, 256>}, {transform_indices = @transform_8, window_bounds = array<i64: 2, 16, 256>}]} {
    %c0 = arith.constant 0 : index
    %c0_0 = arith.constant 0 : index
    %c0_1 = arith.constant 0 : index
    %0 = vector.load %arg1[%c0, %c0_0, %c0_1] : memref<2x16x256xf32, #tpu.memory_space<vmem>>, vector<2x16x256xf32>
    %1 = vector.shape_cast %0 : vector<2x16x256xf32> to vector<32x256xf32>
    %c0_2 = arith.constant 0 : index
    %c0_3 = arith.constant 0 : index
    %c0_4 = arith.constant 0 : index
    %2 = vector.load %arg2[%c0_2, %c0_3, %c0_4] : memref<2x16x1xf32, #tpu.memory_space<vmem>>, vector<2x16x1xf32>
    %3 = vector.shape_cast %2 : vector<2x16x1xf32> to vector<32x1xf32>
    %c0_5 = arith.constant 0 : index
    %c0_6 = arith.constant 0 : index
    %4 = vector.load %arg4[%c0_5, %c0_6] : memref<256x768xf32, #tpu.memory_space<vmem>>, vector<256x768xf32>
    %cst = arith.constant dense<0.000000e+00> : vector<32x768xf32>
    %5 = tpu.matmul %1, %4, %cst {dimension_numbers = #tpu.dot_dimension_numbers<[1], [0], [0], [1], [0, 0, 1, 1], [], []>} : vector<32x256xf32>, vector<256x768xf32>, vector<32x768xf32> -> vector<32x768xf32>
    %c0_7 = arith.constant 0 : index
    %c0_8 = arith.constant 0 : index
    %6 = vector.load %arg5[%c0_7, %c0_8] : memref<1x768xf32, #tpu.memory_space<vmem>>, vector<1x768xf32>
    %7 = vector.broadcast %6 : vector<1x768xf32> to vector<32x768xf32>
    %8 = arith.addf %5, %7 : vector<32x768xf32>
    %9 = vector.extract_strided_slice %8 {offsets = [0, 512], sizes = [32, 256], strides = [1, 1]} : vector<32x768xf32> to vector<32x256xf32>
    %c0_9 = arith.constant 0 : index
    %c0_10 = arith.constant 0 : index
    %10 = vector.load %arg10[%c0_9, %c0_10] : memref<32x768xf32, #tpu.memory_space<vmem>>, vector<32x768xf32>
    tpu.vector_store %arg10[%c0_9, %c0_10], %8 {strides = array<i32>} : memref<32x768xf32, #tpu.memory_space<vmem>>, vector<32x768xf32>,
    %11 = vector.broadcast %3 : vector<32x1xf32> to vector<32x256xf32>
    %12 = arith.mulf %9, %11 : vector<32x256xf32>
    %13 = tpu.iota {dimensions = array<i32: 0>} : vector<32x1xi32>
    %c16_i32 = arith.constant 16 : i32
    %c0_i32 = arith.constant 0 : i32
    %14 = arith.cmpi eq, %c16_i32, %c0_i32 : i32
    %c1_i32 = arith.constant 1 : i32
    %15 = arith.select %14, %c1_i32, %c16_i32 : i32
    %16 = vector.broadcast %15 : i32 to vector<32x1xi32>
    %17 = arith.remsi %13, %16 : vector<32x1xi32>
    %c0_i32_11 = arith.constant 0 : i32
    %18 = vector.broadcast %c0_i32_11 : i32 to vector<32x1xi32>
    %19 = arith.cmpi ne, %17, %18 : vector<32x1xi32>
    %c0_i32_12 = arith.constant 0 : i32
    %20 = vector.broadcast %c0_i32_12 : i32 to vector<32x1xi32>
    %21 = arith.cmpi slt, %17, %20 : vector<32x1xi32>
    %c0_i32_13 = arith.constant 0 : i32
    %22 = arith.cmpi slt, %15, %c0_i32_13 : i32
    %23 = vector.broadcast %22 : i1 to vector<32x1xi1>
    %24 = vector.broadcast %23 : vector<32x1xi1> to vector<32x1xi1>
    %25 = arith.xori %21, %24 : vector<32x1xi1>
    %26 = arith.andi %25, %19 : vector<32x1xi1>
    %27 = vector.broadcast %15 : i32 to vector<32x1xi32>
    %28 = arith.addi %17, %27 : vector<32x1xi32>
    %29 = arith.select %26, %28, %17 : vector<32x1xi1>, vector<32x1xi32>
    %c4 = arith.constant 4 : index
    %c0_14 = arith.constant 0 : index
    %30 = vector.load %arg6[%c4, %c0_14] : memref<5x256xf32, #tpu.memory_space<vmem>>, vector<1x256xf32>
    %31 = vector.broadcast %30 : vector<1x256xf32> to vector<32x256xf32>
    %32 = arith.mulf %12, %31 : vector<32x256xf32>
    %cst_15 = arith.constant 0.000000e+00 : f32
    %33 = vector.broadcast %cst_15 : f32 to vector<4x256xf32>
    %34 = vector.extract_strided_slice %12 {offsets = [0, 0], sizes = [28, 256], strides = [1, 1]} : vector<32x256xf32> to vector<28x256xf32>
    %35 = tpu.concatenate %33, %34 in 0 : vector<4x256xf32>, vector<28x256xf32> -> vector<32x256xf32>
    %c4_i32 = arith.constant 4 : i32
    %36 = vector.broadcast %c4_i32 : i32 to vector<32x1xi32>
    %37 = arith.cmpi sge, %29, %36 : vector<32x1xi32>
    %cst_16 = arith.constant 0.000000e+00 : f32
    %38 = vector.shape_cast %37 : vector<32x1xi1> to vector<32x1xi1>
    %39 = vector.broadcast %38 : vector<32x1xi1> to vector<32x256xi1>
    %40 = vector.broadcast %cst_16 : f32 to vector<32x256xf32>
    %41 = arith.select %39, %35, %40 : vector<32x256xi1>, vector<32x256xf32>
    %c0_17 = arith.constant 0 : index
    %c0_18 = arith.constant 0 : index
    %42 = vector.load %arg6[%c0_17, %c0_18] : memref<5x256xf32, #tpu.memory_space<vmem>>, vector<1x256xf32>
    %43 = vector.broadcast %42 : vector<1x256xf32> to vector<32x256xf32>
    %44 = arith.mulf %41, %43 : vector<32x256xf32>
    %45 = arith.addf %32, %44 : vector<32x256xf32>
    %cst_19 = arith.constant 0.000000e+00 : f32
    %46 = vector.broadcast %cst_19 : f32 to vector<3x256xf32>
    %47 = vector.extract_strided_slice %12 {offsets = [0, 0], sizes = [29, 256], strides = [1, 1]} : vector<32x256xf32> to vector<29x256xf32>
    %48 = tpu.concatenate %46, %47 in 0 : vector<3x256xf32>, vector<29x256xf32> -> vector<32x256xf32>
    %c3_i32 = arith.constant 3 : i32
    %49 = vector.broadcast %c3_i32 : i32 to vector<32x1xi32>
    %50 = arith.cmpi sge, %29, %49 : vector<32x1xi32>
    %cst_20 = arith.constant 0.000000e+00 : f32
    %51 = vector.shape_cast %50 : vector<32x1xi1> to vector<32x1xi1>
    %52 = vector.broadcast %51 : vector<32x1xi1> to vector<32x256xi1>
    %53 = vector.broadcast %cst_20 : f32 to vector<32x256xf32>
    %54 = arith.select %52, %48, %53 : vector<32x256xi1>, vector<32x256xf32>
    %c1 = arith.constant 1 : index
    %c0_21 = arith.constant 0 : index
    %55 = vector.load %arg6[%c1, %c0_21] : memref<5x256xf32, #tpu.memory_space<vmem>>, vector<1x256xf32>
    %56 = vector.broadcast %55 : vector<1x256xf32> to vector<32x256xf32>
    %57 = arith.mulf %54, %56 : vector<32x256xf32>
    %58 = arith.addf %45, %57 : vector<32x256xf32>
    %cst_22 = arith.constant 0.000000e+00 : f32
    %59 = vector.broadcast %cst_22 : f32 to vector<2x256xf32>
    %60 = vector.extract_strided_slice %12 {offsets = [0, 0], sizes = [30, 256], strides = [1, 1]} : vector<32x256xf32> to vector<30x256xf32>
    %61 = tpu.concatenate %59, %60 in 0 : vector<2x256xf32>, vector<30x256xf32> -> vector<32x256xf32>
    %c2_i32 = arith.constant 2 : i32
    %62 = vector.broadcast %c2_i32 : i32 to vector<32x1xi32>
    %63 = arith.cmpi sge, %29, %62 : vector<32x1xi32>
    %cst_23 = arith.constant 0.000000e+00 : f32
    %64 = vector.shape_cast %63 : vector<32x1xi1> to vector<32x1xi1>
    %65 = vector.broadcast %64 : vector<32x1xi1> to vector<32x256xi1>
    %66 = vector.broadcast %cst_23 : f32 to vector<32x256xf32>
    %67 = arith.select %65, %61, %66 : vector<32x256xi1>, vector<32x256xf32>
    %c2 = arith.constant 2 : index
    %c0_24 = arith.constant 0 : index
    %68 = vector.load %arg6[%c2, %c0_24] : memref<5x256xf32, #tpu.memory_space<vmem>>, vector<1x256xf32>
    %69 = vector.broadcast %68 : vector<1x256xf32> to vector<32x256xf32>
    %70 = arith.mulf %67, %69 : vector<32x256xf32>
    %71 = arith.addf %58, %70 : vector<32x256xf32>
    %cst_25 = arith.constant 0.000000e+00 : f32
    %72 = vector.broadcast %cst_25 : f32 to vector<1x256xf32>
    %73 = vector.extract_strided_slice %12 {offsets = [0, 0], sizes = [31, 256], strides = [1, 1]} : vector<32x256xf32> to vector<31x256xf32>
    %74 = tpu.concatenate %72, %73 in 0 : vector<1x256xf32>, vector<31x256xf32> -> vector<32x256xf32>
    %c1_i32_26 = arith.constant 1 : i32
    %75 = vector.broadcast %c1_i32_26 : i32 to vector<32x1xi32>
    %76 = arith.cmpi sge, %29, %75 : vector<32x1xi32>
    %cst_27 = arith.constant 0.000000e+00 : f32
    %77 = vector.shape_cast %76 : vector<32x1xi1> to vector<32x1xi1>
    %78 = vector.broadcast %77 : vector<32x1xi1> to vector<32x256xi1>
    %79 = vector.broadcast %cst_27 : f32 to vector<32x256xf32>
    %80 = arith.select %78, %74, %79 : vector<32x256xi1>, vector<32x256xf32>
    %c3 = arith.constant 3 : index
    %c0_28 = arith.constant 0 : index
    %81 = vector.load %arg6[%c3, %c0_28] : memref<5x256xf32, #tpu.memory_space<vmem>>, vector<1x256xf32>
    %82 = vector.broadcast %81 : vector<1x256xf32> to vector<32x256xf32>
    %83 = arith.mulf %80, %82 : vector<32x256xf32>
    %84 = arith.addf %71, %83 : vector<32x256xf32>
    %85 = arith.addf %84, %12 : vector<32x256xf32>
    %86 = vector.broadcast %3 : vector<32x1xf32> to vector<32x256xf32>
    %87 = arith.mulf %85, %86 : vector<32x256xf32>
    %c0_29 = arith.constant 0 : index
    %c0_30 = arith.constant 0 : index
    %c0_31 = arith.constant 0 : index
    %88 = vector.load %arg3[%c0_29, %c0_30, %c0_31] : memref<2x1x16xf32, #tpu.memory_space<vmem>>, vector<2x1x16xf32>
    %c0_32 = arith.constant 0 : index
    %c0_33 = arith.constant 0 : index
    %89 = vector.load %arg10[%c0_32, %c0_33] : memref<32x768xf32, #tpu.memory_space<vmem>>, vector<16x128xf32>
    %c0_34 = arith.constant 0 : index
    %c256 = arith.constant 256 : index
    %90 = vector.load %arg10[%c0_34, %c256] : memref<32x768xf32, #tpu.memory_space<vmem>>, vector<16x128xf32>
    %cst_35 = arith.constant dense<0.000000e+00> : vector<16x16xf32>
    %91 = tpu.matmul %89, %90, %cst_35 {dimension_numbers = #tpu.dot_dimension_numbers<[1], [1], [0], [0], [0, 0, 1, 0], [], []>} : vector<16x128xf32>, vector<16x128xf32>, vector<16x16xf32> -> vector<16x16xf32>
    %92 = vector.extract_strided_slice %88 {offsets = [0, 0, 0], sizes = [1, 1, 16], strides = [1, 1, 1]} : vector<2x1x16xf32> to vector<1x1x16xf32>
    %93 = vector.shape_cast %92 : vector<1x1x16xf32> to vector<1x16xf32>
    %94 = vector.broadcast %93 : vector<1x16xf32> to vector<16x16xf32>
    %95 = arith.addf %91, %94 : vector<16x16xf32>
    %cst_36 = arith.constant dense<0xFF800000> : vector<16xf32>
    %96 = vector.multi_reduction <maximumf>, %95, %cst_36 [1] : vector<16x16xf32> to vector<16xf32>
    %97 = vector.shape_cast %96 : vector<16xf32> to vector<16x1xf32>
    %98 = vector.broadcast %97 : vector<16x1xf32> to vector<16x16xf32>
    %99 = arith.subf %95, %98 : vector<16x16xf32>
    %100 = math.exp %99 : vector<16x16xf32>
    %cst_37 = arith.constant dense<0.000000e+00> : vector<16xf32>
    %101 = vector.multi_reduction <add>, %100, %cst_37 [1] : vector<16x16xf32> to vector<16xf32>
    %102 = vector.shape_cast %101 : vector<16xf32> to vector<16x1xf32>
    %c0_38 = arith.constant 0 : index
    %c512 = arith.constant 512 : index
    %103 = vector.load %arg10[%c0_38, %c512] : memref<32x768xf32, #tpu.memory_space<vmem>>, vector<16x128xf32>
    %cst_39 = arith.constant dense<0.000000e+00> : vector<16x128xf32>
    %104 = tpu.matmul %100, %103, %cst_39 {dimension_numbers = #tpu.dot_dimension_numbers<[1], [0], [0], [1], [0, 0, 1, 1], [], []>} : vector<16x16xf32>, vector<16x128xf32>, vector<16x128xf32> -> vector<16x128xf32>
    %105 = tpu.reciprocal %102 : vector<16x1xf32> -> vector<16x1xf32>
    %106 = vector.broadcast %105 : vector<16x1xf32> to vector<16x128xf32>
    %107 = arith.mulf %104, %106 : vector<16x128xf32>
    %c0_40 = arith.constant 0 : index
    %c0_41 = arith.constant 0 : index
    %108 = vector.load %arg11[%c0_40, %c0_41] : memref<32x256xf32, #tpu.memory_space<vmem>>, vector<16x128xf32>
    tpu.vector_store %arg11[%c0_40, %c0_41], %107 {strides = array<i32>} : memref<32x256xf32, #tpu.memory_space<vmem>>, vector<16x128xf32>,
    %c0_42 = arith.constant 0 : index
    %c128 = arith.constant 128 : index
    %109 = vector.load %arg10[%c0_42, %c128] : memref<32x768xf32, #tpu.memory_space<vmem>>, vector<16x128xf32>
    %c0_43 = arith.constant 0 : index
    %c384 = arith.constant 384 : index
    %110 = vector.load %arg10[%c0_43, %c384] : memref<32x768xf32, #tpu.memory_space<vmem>>, vector<16x128xf32>
    %cst_44 = arith.constant dense<0.000000e+00> : vector<16x16xf32>
    %111 = tpu.matmul %109, %110, %cst_44 {dimension_numbers = #tpu.dot_dimension_numbers<[1], [1], [0], [0], [0, 0, 1, 0], [], []>} : vector<16x128xf32>, vector<16x128xf32>, vector<16x16xf32> -> vector<16x16xf32>
    %112 = vector.extract_strided_slice %88 {offsets = [0, 0, 0], sizes = [1, 1, 16], strides = [1, 1, 1]} : vector<2x1x16xf32> to vector<1x1x16xf32>
    %113 = vector.shape_cast %112 : vector<1x1x16xf32> to vector<1x16xf32>
    %114 = vector.broadcast %113 : vector<1x16xf32> to vector<16x16xf32>
    %115 = arith.addf %111, %114 : vector<16x16xf32>
    %cst_45 = arith.constant dense<0xFF800000> : vector<16xf32>
    %116 = vector.multi_reduction <maximumf>, %115, %cst_45 [1] : vector<16x16xf32> to vector<16xf32>
    %117 = vector.shape_cast %116 : vector<16xf32> to vector<16x1xf32>
    %118 = vector.broadcast %117 : vector<16x1xf32> to vector<16x16xf32>
    %119 = arith.subf %115, %118 : vector<16x16xf32>
    %120 = math.exp %119 : vector<16x16xf32>
    %cst_46 = arith.constant dense<0.000000e+00> : vector<16xf32>
    %121 = vector.multi_reduction <add>, %120, %cst_46 [1] : vector<16x16xf32> to vector<16xf32>
    %122 = vector.shape_cast %121 : vector<16xf32> to vector<16x1xf32>
    %c0_47 = arith.constant 0 : index
    %c640 = arith.constant 640 : index
    %123 = vector.load %arg10[%c0_47, %c640] : memref<32x768xf32, #tpu.memory_space<vmem>>, vector<16x128xf32>
    %cst_48 = arith.constant dense<0.000000e+00> : vector<16x128xf32>
    %124 = tpu.matmul %120, %123, %cst_48 {dimension_numbers = #tpu.dot_dimension_numbers<[1], [0], [0], [1], [0, 0, 1, 1], [], []>} : vector<16x16xf32>, vector<16x128xf32>, vector<16x128xf32> -> vector<16x128xf32>
    %125 = tpu.reciprocal %122 : vector<16x1xf32> -> vector<16x1xf32>
    %126 = vector.broadcast %125 : vector<16x1xf32> to vector<16x128xf32>
    %127 = arith.mulf %124, %126 : vector<16x128xf32>
    %c0_49 = arith.constant 0 : index
    %c128_50 = arith.constant 128 : index
    %128 = vector.load %arg11[%c0_49, %c128_50] : memref<32x256xf32, #tpu.memory_space<vmem>>, vector<16x128xf32>
    tpu.vector_store %arg11[%c0_49, %c128_50], %127 {strides = array<i32>} : memref<32x256xf32, #tpu.memory_space<vmem>>, vector<16x128xf32>,
    %c16 = arith.constant 16 : index
    %c0_51 = arith.constant 0 : index
    %129 = vector.load %arg10[%c16, %c0_51] : memref<32x768xf32, #tpu.memory_space<vmem>>, vector<16x128xf32>
    %c16_52 = arith.constant 16 : index
    %c256_53 = arith.constant 256 : index
    %130 = vector.load %arg10[%c16_52, %c256_53] : memref<32x768xf32, #tpu.memory_space<vmem>>, vector<16x128xf32>
    %cst_54 = arith.constant dense<0.000000e+00> : vector<16x16xf32>
    %131 = tpu.matmul %129, %130, %cst_54 {dimension_numbers = #tpu.dot_dimension_numbers<[1], [1], [0], [0], [0, 0, 1, 0], [], []>} : vector<16x128xf32>, vector<16x128xf32>, vector<16x16xf32> -> vector<16x16xf32>
    %132 = vector.extract_strided_slice %88 {offsets = [1, 0, 0], sizes = [1, 1, 16], strides = [1, 1, 1]} : vector<2x1x16xf32> to vector<1x1x16xf32>
    %133 = vector.shape_cast %132 : vector<1x1x16xf32> to vector<1x16xf32>
    %134 = vector.broadcast %133 : vector<1x16xf32> to vector<16x16xf32>
    %135 = arith.addf %131, %134 : vector<16x16xf32>
    %cst_55 = arith.constant dense<0xFF800000> : vector<16xf32>
    %136 = vector.multi_reduction <maximumf>, %135, %cst_55 [1] : vector<16x16xf32> to vector<16xf32>
    %137 = vector.shape_cast %136 : vector<16xf32> to vector<16x1xf32>
    %138 = vector.broadcast %137 : vector<16x1xf32> to vector<16x16xf32>
    %139 = arith.subf %135, %138 : vector<16x16xf32>
    %140 = math.exp %139 : vector<16x16xf32>
    %cst_56 = arith.constant dense<0.000000e+00> : vector<16xf32>
    %141 = vector.multi_reduction <add>, %140, %cst_56 [1] : vector<16x16xf32> to vector<16xf32>
    %142 = vector.shape_cast %141 : vector<16xf32> to vector<16x1xf32>
    %c16_57 = arith.constant 16 : index
    %c512_58 = arith.constant 512 : index
    %143 = vector.load %arg10[%c16_57, %c512_58] : memref<32x768xf32, #tpu.memory_space<vmem>>, vector<16x128xf32>
    %cst_59 = arith.constant dense<0.000000e+00> : vector<16x128xf32>
    %144 = tpu.matmul %140, %143, %cst_59 {dimension_numbers = #tpu.dot_dimension_numbers<[1], [0], [0], [1], [0, 0, 1, 1], [], []>} : vector<16x16xf32>, vector<16x128xf32>, vector<16x128xf32> -> vector<16x128xf32>
    %145 = tpu.reciprocal %142 : vector<16x1xf32> -> vector<16x1xf32>
    %146 = vector.broadcast %145 : vector<16x1xf32> to vector<16x128xf32>
    %147 = arith.mulf %144, %146 : vector<16x128xf32>
    %c16_60 = arith.constant 16 : index
    %c0_61 = arith.constant 0 : index
    %148 = vector.load %arg11[%c16_60, %c0_61] : memref<32x256xf32, #tpu.memory_space<vmem>>, vector<16x128xf32>
    tpu.vector_store %arg11[%c16_60, %c0_61], %147 {strides = array<i32>} : memref<32x256xf32, #tpu.memory_space<vmem>>, vector<16x128xf32>,
    %c16_62 = arith.constant 16 : index
    %c128_63 = arith.constant 128 : index
    %149 = vector.load %arg10[%c16_62, %c128_63] : memref<32x768xf32, #tpu.memory_space<vmem>>, vector<16x128xf32>
    %c16_64 = arith.constant 16 : index
    %c384_65 = arith.constant 384 : index
    %150 = vector.load %arg10[%c16_64, %c384_65] : memref<32x768xf32, #tpu.memory_space<vmem>>, vector<16x128xf32>
    %cst_66 = arith.constant dense<0.000000e+00> : vector<16x16xf32>
    %151 = tpu.matmul %149, %150, %cst_66 {dimension_numbers = #tpu.dot_dimension_numbers<[1], [1], [0], [0], [0, 0, 1, 0], [], []>} : vector<16x128xf32>, vector<16x128xf32>, vector<16x16xf32> -> vector<16x16xf32>
    %152 = vector.extract_strided_slice %88 {offsets = [1, 0, 0], sizes = [1, 1, 16], strides = [1, 1, 1]} : vector<2x1x16xf32> to vector<1x1x16xf32>
    %153 = vector.shape_cast %152 : vector<1x1x16xf32> to vector<1x16xf32>
    %154 = vector.broadcast %153 : vector<1x16xf32> to vector<16x16xf32>
    %155 = arith.addf %151, %154 : vector<16x16xf32>
    %cst_67 = arith.constant dense<0xFF800000> : vector<16xf32>
    %156 = vector.multi_reduction <maximumf>, %155, %cst_67 [1] : vector<16x16xf32> to vector<16xf32>
    %157 = vector.shape_cast %156 : vector<16xf32> to vector<16x1xf32>
    %158 = vector.broadcast %157 : vector<16x1xf32> to vector<16x16xf32>
    %159 = arith.subf %155, %158 : vector<16x16xf32>
    %160 = math.exp %159 : vector<16x16xf32>
    %cst_68 = arith.constant dense<0.000000e+00> : vector<16xf32>
    %161 = vector.multi_reduction <add>, %160, %cst_68 [1] : vector<16x16xf32> to vector<16xf32>
    %162 = vector.shape_cast %161 : vector<16xf32> to vector<16x1xf32>
    %c16_69 = arith.constant 16 : index
    %c640_70 = arith.constant 640 : index
    %163 = vector.load %arg10[%c16_69, %c640_70] : memref<32x768xf32, #tpu.memory_space<vmem>>, vector<16x128xf32>
    %cst_71 = arith.constant dense<0.000000e+00> : vector<16x128xf32>
    %164 = tpu.matmul %160, %163, %cst_71 {dimension_numbers = #tpu.dot_dimension_numbers<[1], [0], [0], [1], [0, 0, 1, 1], [], []>} : vector<16x16xf32>, vector<16x128xf32>, vector<16x128xf32> -> vector<16x128xf32>
    %165 = tpu.reciprocal %162 : vector<16x1xf32> -> vector<16x1xf32>
    %166 = vector.broadcast %165 : vector<16x1xf32> to vector<16x128xf32>
    %167 = arith.mulf %164, %166 : vector<16x128xf32>
    %c16_72 = arith.constant 16 : index
    %c128_73 = arith.constant 128 : index
    %168 = vector.load %arg11[%c16_72, %c128_73] : memref<32x256xf32, #tpu.memory_space<vmem>>, vector<16x128xf32>
    tpu.vector_store %arg11[%c16_72, %c128_73], %167 {strides = array<i32>} : memref<32x256xf32, #tpu.memory_space<vmem>>, vector<16x128xf32>,
    %c0_74 = arith.constant 0 : index
    %c0_75 = arith.constant 0 : index
    %169 = vector.load %arg11[%c0_74, %c0_75] : memref<32x256xf32, #tpu.memory_space<vmem>>, vector<32x256xf32>
    %c0_76 = arith.constant 0 : index
    %c0_77 = arith.constant 0 : index
    %170 = vector.load %arg7[%c0_76, %c0_77] : memref<256x256xf32, #tpu.memory_space<vmem>>, vector<256x256xf32>
    %cst_78 = arith.constant dense<0.000000e+00> : vector<32x256xf32>
    %171 = tpu.matmul %169, %170, %cst_78 {dimension_numbers = #tpu.dot_dimension_numbers<[1], [0], [0], [1], [0, 0, 1, 1], [], []>} : vector<32x256xf32>, vector<256x256xf32>, vector<32x256xf32> -> vector<32x256xf32>
    %c0_79 = arith.constant 0 : index
    %c0_80 = arith.constant 0 : index
    %172 = vector.load %arg8[%c0_79, %c0_80] : memref<1x256xf32, #tpu.memory_space<vmem>>, vector<1x256xf32>
    %173 = vector.broadcast %172 : vector<1x256xf32> to vector<32x256xf32>
    %174 = arith.addf %171, %173 : vector<32x256xf32>
    %175 = arith.addf %174, %87 : vector<32x256xf32>
    %176 = vector.shape_cast %175 : vector<32x256xf32> to vector<2x16x256xf32>
    %c0_81 = arith.constant 0 : index
    %c0_82 = arith.constant 0 : index
    %c0_83 = arith.constant 0 : index
    %177 = vector.load %arg9[%c0_81, %c0_82, %c0_83] : memref<2x16x256xf32, #tpu.memory_space<vmem>>, vector<2x16x256xf32>
    tpu.vector_store %arg9[%c0_81, %c0_82, %c0_83], %176 {strides = array<i32>} : memref<2x16x256xf32, #tpu.memory_space<vmem>>, vector<2x16x256xf32>,
    return
  }
  func.func @transform_0(%arg0: i32) -> (i32, i32, i32) {
    %c0_i32 = arith.constant 0 : i32
    %c0_i32_0 = arith.constant 0 : i32
    %c0_i32_1 = arith.constant 0 : i32
    return %arg0, %c0_i32, %c0_i32_0 : i32, i32, i32
  }
  func.func @transform_1(%arg0: i32) -> (i32, i32, i32) {
    %c0_i32 = arith.constant 0 : i32
    %c0_i32_0 = arith.constant 0 : i32
    %c0_i32_1 = arith.constant 0 : i32
    return %arg0, %c0_i32, %c0_i32_0 : i32, i32, i32
  }
  func.func @transform_2(%arg0: i32) -> (i32, i32, i32) {
    %c0_i32 = arith.constant 0 : i32
    %c0_i32_0 = arith.constant 0 : i32
    %c0_i32_1 = arith.constant 0 : i32
    return %arg0, %c0_i32, %c0_i32_0 : i32, i32, i32
  }
  func.func @transform_3(%arg0: i32) -> (i32, i32) {
    %c0_i32 = arith.constant 0 : i32
    %c0_i32_0 = arith.constant 0 : i32
    %c0_i32_1 = arith.constant 0 : i32
    return %c0_i32, %c0_i32_0 : i32, i32
  }
  func.func @transform_4(%arg0: i32) -> (i32, i32) {
    %c0_i32 = arith.constant 0 : i32
    %c0_i32_0 = arith.constant 0 : i32
    %c0_i32_1 = arith.constant 0 : i32
    return %c0_i32, %c0_i32_0 : i32, i32
  }
  func.func @transform_5(%arg0: i32) -> (i32, i32) {
    %c0_i32 = arith.constant 0 : i32
    %c0_i32_0 = arith.constant 0 : i32
    %c0_i32_1 = arith.constant 0 : i32
    return %c0_i32, %c0_i32_0 : i32, i32
  }
  func.func @transform_6(%arg0: i32) -> (i32, i32) {
    %c0_i32 = arith.constant 0 : i32
    %c0_i32_0 = arith.constant 0 : i32
    %c0_i32_1 = arith.constant 0 : i32
    return %c0_i32, %c0_i32_0 : i32, i32
  }
  func.func @transform_7(%arg0: i32) -> (i32, i32) {
    %c0_i32 = arith.constant 0 : i32
    %c0_i32_0 = arith.constant 0 : i32
    %c0_i32_1 = arith.constant 0 : i32
    return %c0_i32, %c0_i32_0 : i32, i32
  }
  func.func @transform_8(%arg0: i32) -> (i32, i32, i32) {
    %c0_i32 = arith.constant 0 : i32
    %c0_i32_0 = arith.constant 0 : i32
    %c0_i32_1 = arith.constant 0 : i32
    return %arg0, %c0_i32, %c0_i32_0 : i32, i32, i32
  }
}

module attributes {stable_mosaic.version = 11 : i64} {
  func.func @_sanm_attn_kernel(%arg0: i32, %arg1: memref<2x16x256xf32, #tpu.memory_space<vmem>>, %arg2: memref<2x16x1xf32, #tpu.memory_space<vmem>>, %arg3: memref<2x1x16xf32, #tpu.memory_space<vmem>>, %arg4: memref<256x768xf32, #tpu.memory_space<vmem>>, %arg5: memref<1x768xf32, #tpu.memory_space<vmem>>, %arg6: memref<5x256xf32, #tpu.memory_space<vmem>>, %arg7: memref<256x256xf32, #tpu.memory_space<vmem>>, %arg8: memref<1x256xf32, #tpu.memory_space<vmem>>, %arg9: memref<2x16x256xf32, #tpu.memory_space<vmem>>, %arg10: memref<32x768xf32, #tpu.memory_space<vmem>>, %arg11: memref<32x256xf32, #tpu.memory_space<vmem>>) attributes {dimension_semantics = [#tpu.dimension_semantics<parallel>], iteration_bounds = array<i64: 1>, scalar_prefetch = 0 : i64, scratch_operands = 2 : i64, tpu.core_type = #tpu.core_type<tc>, window_params = [{transform_indices = @transform_0, window_bounds = array<i64: 2, 16, 256>}, {transform_indices = @transform_1, window_bounds = array<i64: 2, 16, 1>}, {transform_indices = @transform_2, window_bounds = array<i64: 2, 1, 16>}, {pipeline_mode = #tpu.pipeline_mode<synchronous>, transform_indices = @transform_3, window_bounds = array<i64: 256, 768>}, {pipeline_mode = #tpu.pipeline_mode<synchronous>, transform_indices = @transform_4, window_bounds = array<i64: 1, 768>}, {pipeline_mode = #tpu.pipeline_mode<synchronous>, transform_indices = @transform_5, window_bounds = array<i64: 5, 256>}, {pipeline_mode = #tpu.pipeline_mode<synchronous>, transform_indices = @transform_6, window_bounds = array<i64: 256, 256>}, {pipeline_mode = #tpu.pipeline_mode<synchronous>, transform_indices = @transform_7, window_bounds = array<i64: 1, 256>}, {transform_indices = @transform_8, window_bounds = array<i64: 2, 16, 256>}]} {
    %c0 = arith.constant 0 : index
    %c0_0 = arith.constant 0 : index
    %c0_1 = arith.constant 0 : index
    %0 = vector.load %arg1[%c0, %c0_0, %c0_1] : memref<2x16x256xf32, #tpu.memory_space<vmem>>, vector<2x16x256xf32>
    %1 = vector.shape_cast %0 : vector<2x16x256xf32> to vector<32x256xf32>
    %c0_2 = arith.constant 0 : index
    %c0_3 = arith.constant 0 : index
    %c0_4 = arith.constant 0 : index
    %2 = vector.load %arg2[%c0_2, %c0_3, %c0_4] : memref<2x16x1xf32, #tpu.memory_space<vmem>>, vector<2x16x1xf32>
    %3 = vector.shape_cast %2 : vector<2x16x1xf32> to vector<32x1xf32>
    %c0_5 = arith.constant 0 : index
    %c0_6 = arith.constant 0 : index
    %4 = vector.load %arg4[%c0_5, %c0_6] : memref<256x768xf32, #tpu.memory_space<vmem>>, vector<256x768xf32>
    %cst = arith.constant dense<0.000000e+00> : vector<32x768xf32>
    %5 = tpu.matmul %1, %4, %cst {dimension_numbers = #tpu.dot_dimension_numbers<[1], [0], [0], [1], [0, 0, 1, 1], [], []>} : vector<32x256xf32>, vector<256x768xf32>, vector<32x768xf32> -> vector<32x768xf32>
    %c0_7 = arith.constant 0 : index
    %c0_8 = arith.constant 0 : index
    %6 = vector.load %arg5[%c0_7, %c0_8] : memref<1x768xf32, #tpu.memory_space<vmem>>, vector<1x768xf32>
    %7 = vector.broadcast %6 : vector<1x768xf32> to vector<32x768xf32>
    %8 = arith.addf %5, %7 : vector<32x768xf32>
    %9 = vector.extract_strided_slice %8 {offsets = [0, 512], sizes = [32, 256], strides = [1, 1]} : vector<32x768xf32> to vector<32x256xf32>
    %c0_9 = arith.constant 0 : index
    %c0_10 = arith.constant 0 : index
    %10 = vector.load %arg10[%c0_9, %c0_10] : memref<32x768xf32, #tpu.memory_space<vmem>>, vector<32x768xf32>
    tpu.vector_store %arg10[%c0_9, %c0_10], %8 {strides = array<i32>} : memref<32x768xf32, #tpu.memory_space<vmem>>, vector<32x768xf32>,
    %11 = vector.broadcast %3 : vector<32x1xf32> to vector<32x256xf32>
    %12 = arith.mulf %9, %11 : vector<32x256xf32>
    %13 = tpu.iota {dimensions = array<i32: 0>} : vector<32x1xi32>
    %c16_i32 = arith.constant 16 : i32
    %c0_i32 = arith.constant 0 : i32
    %14 = arith.cmpi eq, %c16_i32, %c0_i32 : i32
    %c1_i32 = arith.constant 1 : i32
    %15 = arith.select %14, %c1_i32, %c16_i32 : i32
    %16 = vector.broadcast %15 : i32 to vector<32x1xi32>
    %17 = arith.remsi %13, %16 : vector<32x1xi32>
    %c0_i32_11 = arith.constant 0 : i32
    %18 = vector.broadcast %c0_i32_11 : i32 to vector<32x1xi32>
    %19 = arith.cmpi ne, %17, %18 : vector<32x1xi32>
    %c0_i32_12 = arith.constant 0 : i32
    %20 = vector.broadcast %c0_i32_12 : i32 to vector<32x1xi32>
    %21 = arith.cmpi slt, %17, %20 : vector<32x1xi32>
    %c0_i32_13 = arith.constant 0 : i32
    %22 = arith.cmpi slt, %15, %c0_i32_13 : i32
    %23 = vector.broadcast %22 : i1 to vector<32x1xi1>
    %24 = vector.broadcast %23 : vector<32x1xi1> to vector<32x1xi1>
    %25 = arith.xori %21, %24 : vector<32x1xi1>
    %26 = arith.andi %25, %19 : vector<32x1xi1>
    %27 = vector.broadcast %15 : i32 to vector<32x1xi32>
    %28 = arith.addi %17, %27 : vector<32x1xi32>
    %29 = arith.select %26, %28, %17 : vector<32x1xi1>, vector<32x1xi32>
    %c4 = arith.constant 4 : index
    %c0_14 = arith.constant 0 : index
    %30 = vector.load %arg6[%c4, %c0_14] : memref<5x256xf32, #tpu.memory_space<vmem>>, vector<1x256xf32>
    %31 = vector.broadcast %30 : vector<1x256xf32> to vector<32x256xf32>
    %32 = arith.mulf %12, %31 : vector<32x256xf32>
    %cst_15 = arith.constant 0.000000e+00 : f32
    %33 = vector.broadcast %cst_15 : f32 to vector<4x256xf32>
    %34 = vector.extract_strided_slice %12 {offsets = [0, 0], sizes = [28, 256], strides = [1, 1]} : vector<32x256xf32> to vector<28x256xf32>
    %35 = tpu.concatenate %33, %34 in 0 : vector<4x256xf32>, vector<28x256xf32> -> vector<32x256xf32>
    %c4_i32 = arith.constant 4 : i32
    %36 = vector.broadcast %c4_i32 : i32 to vector<32x1xi32>
    %37 = arith.cmpi sge, %29, %36 : vector<32x1xi32>
    %cst_16 = arith.constant 0.000000e+00 : f32
    %38 = vector.shape_cast %37 : vector<32x1xi1> to vector<32x1xi1>
    %39 = vector.broadcast %38 : vector<32x1xi1> to vector<32x256xi1>
    %40 = vector.broadcast %cst_16 : f32 to vector<32x256xf32>
    %41 = arith.select %39, %35, %40 : vector<32x256xi1>, vector<32x256xf32>
    %c0_17 = arith.constant 0 : index
    %c0_18 = arith.constant 0 : index
    %42 = vector.load %arg6[%c0_17, %c0_18] : memref<5x256xf32, #tpu.memory_space<vmem>>, vector<1x256xf32>
    %43 = vector.broadcast %42 : vector<1x256xf32> to vector<32x256xf32>
    %44 = arith.mulf %41, %43 : vector<32x256xf32>
    %45 = arith.addf %32, %44 : vector<32x256xf32>
    %cst_19 = arith.constant 0.000000e+00 : f32
    %46 = vector.broadcast %cst_19 : f32 to vector<3x256xf32>
    %47 = vector.extract_strided_slice %12 {offsets = [0, 0], sizes = [29, 256], strides = [1, 1]} : vector<32x256xf32> to vector<29x256xf32>
    %48 = tpu.concatenate %46, %47 in 0 : vector<3x256xf32>, vector<29x256xf32> -> vector<32x256xf32>
    %c3_i32 = arith.constant 3 : i32
    %49 = vector.broadcast %c3_i32 : i32 to vector<32x1xi32>
    %50 = arith.cmpi sge, %29, %49 : vector<32x1xi32>
    %cst_20 = arith.constant 0.000000e+00 : f32
    %51 = vector.shape_cast %50 : vector<32x1xi1> to vector<32x1xi1>
    %52 = vector.broadcast %51 : vector<32x1xi1> to vector<32x256xi1>
    %53 = vector.broadcast %cst_20 : f32 to vector<32x256xf32>
    %54 = arith.select %52, %48, %53 : vector<32x256xi1>, vector<32x256xf32>
    %c1 = arith.constant 1 : index
    %c0_21 = arith.constant 0 : index
    %55 = vector.load %arg6[%c1, %c0_21] : memref<5x256xf32, #tpu.memory_space<vmem>>, vector<1x256xf32>
    %56 = vector.broadcast %55 : vector<1x256xf32> to vector<32x256xf32>
    %57 = arith.mulf %54, %56 : vector<32x256xf32>
    %58 = arith.addf %45, %57 : vector<32x256xf32>
    %cst_22 = arith.constant 0.000000e+00 : f32
    %59 = vector.broadcast %cst_22 : f32 to vector<2x256xf32>
    %60 = vector.extract_strided_slice %12 {offsets = [0, 0], sizes = [30, 256], strides = [1, 1]} : vector<32x256xf32> to vector<30x256xf32>
    %61 = tpu.concatenate %59, %60 in 0 : vector<2x256xf32>, vector<30x256xf32> -> vector<32x256xf32>
    %c2_i32 = arith.constant 2 : i32
    %62 = vector.broadcast %c2_i32 : i32 to vector<32x1xi32>
    %63 = arith.cmpi sge, %29, %62 : vector<32x1xi32>
    %cst_23 = arith.constant 0.000000e+00 : f32
    %64 = vector.shape_cast %63 : vector<32x1xi1> to vector<32x1xi1>
    %65 = vector.broadcast %64 : vector<32x1xi1> to vector<32x256xi1>
    %66 = vector.broadcast %cst_23 : f32 to vector<32x256xf32>
    %67 = arith.select %65, %61, %66 : vector<32x256xi1>, vector<32x256xf32>
    %c2 = arith.constant 2 : index
    %c0_24 = arith.constant 0 : index
    %68 = vector.load %arg6[%c2, %c0_24] : memref<5x256xf32, #tpu.memory_space<vmem>>, vector<1x256xf32>
    %69 = vector.broadcast %68 : vector<1x256xf32> to vector<32x256xf32>
    %70 = arith.mulf %67, %69 : vector<32x256xf32>
    %71 = arith.addf %58, %70 : vector<32x256xf32>
    %cst_25 = arith.constant 0.000000e+00 : f32
    %72 = vector.broadcast %cst_25 : f32 to vector<1x256xf32>
    %73 = vector.extract_strided_slice %12 {offsets = [0, 0], sizes = [31, 256], strides = [1, 1]} : vector<32x256xf32> to vector<31x256xf32>
    %74 = tpu.concatenate %72, %73 in 0 : vector<1x256xf32>, vector<31x256xf32> -> vector<32x256xf32>
    %c1_i32_26 = arith.constant 1 : i32
    %75 = vector.broadcast %c1_i32_26 : i32 to vector<32x1xi32>
    %76 = arith.cmpi sge, %29, %75 : vector<32x1xi32>
    %cst_27 = arith.constant 0.000000e+00 : f32
    %77 = vector.shape_cast %76 : vector<32x1xi1> to vector<32x1xi1>
    %78 = vector.broadcast %77 : vector<32x1xi1> to vector<32x256xi1>
    %79 = vector.broadcast %cst_27 : f32 to vector<32x256xf32>
    %80 = arith.select %78, %74, %79 : vector<32x256xi1>, vector<32x256xf32>
    %c3 = arith.constant 3 : index
    %c0_28 = arith.constant 0 : index
    %81 = vector.load %arg6[%c3, %c0_28] : memref<5x256xf32, #tpu.memory_space<vmem>>, vector<1x256xf32>
    %82 = vector.broadcast %81 : vector<1x256xf32> to vector<32x256xf32>
    %83 = arith.mulf %80, %82 : vector<32x256xf32>
    %84 = arith.addf %71, %83 : vector<32x256xf32>
    %85 = arith.addf %84, %12 : vector<32x256xf32>
    %86 = vector.broadcast %3 : vector<32x1xf32> to vector<32x256xf32>
    %87 = arith.mulf %85, %86 : vector<32x256xf32>
    %c0_29 = arith.constant 0 : index
    %c0_30 = arith.constant 0 : index
    %c0_31 = arith.constant 0 : index
    %88 = vector.load %arg3[%c0_29, %c0_30, %c0_31] : memref<2x1x16xf32, #tpu.memory_space<vmem>>, vector<2x1x16xf32>
    %c0_32 = arith.constant 0 : index
    %c0_33 = arith.constant 0 : index
    %89 = vector.load %arg10[%c0_32, %c0_33] : memref<32x768xf32, #tpu.memory_space<vmem>>, vector<16x128xf32>
    %c0_34 = arith.constant 0 : index
    %c256 = arith.constant 256 : index
    %90 = vector.load %arg10[%c0_34, %c256] : memref<32x768xf32, #tpu.memory_space<vmem>>, vector<16x128xf32>
    %cst_35 = arith.constant dense<0.000000e+00> : vector<16x16xf32>
    %91 = tpu.matmul %89, %90, %cst_35 {dimension_numbers = #tpu.dot_dimension_numbers<[1], [1], [0], [0], [0, 0, 1, 0], [], []>} : vector<16x128xf32>, vector<16x128xf32>, vector<16x16xf32> -> vector<16x16xf32>
    %92 = vector.extract_strided_slice %88 {offsets = [0, 0, 0], sizes = [1, 1, 16], strides = [1, 1, 1]} : vector<2x1x16xf32> to vector<1x1x16xf32>
    %93 = vector.shape_cast %92 : vector<1x1x16xf32> to vector<1x16xf32>
    %94 = vector.broadcast %93 : vector<1x16xf32> to vector<16x16xf32>
    %95 = arith.addf %91, %94 : vector<16x16xf32>
    %cst_36 = arith.constant dense<0xFF800000> : vector<16xf32>
    %96 = vector.multi_reduction <maximumf>, %95, %cst_36 [1] : vector<16x16xf32> to vector<16xf32>
    %97 = vector.shape_cast %96 : vector<16xf32> to vector<16x1xf32>
    %98 = vector.broadcast %97 : vector<16x1xf32> to vector<16x16xf32>
    %99 = arith.subf %95, %98 : vector<16x16xf32>
    %100 = math.exp %99 : vector<16x16xf32>
    %cst_37 = arith.constant dense<0.000000e+00> : vector<16xf32>
    %101 = vector.multi_reduction <add>, %100, %cst_37 [1] : vector<16x16xf32> to vector<16xf32>
    %102 = vector.shape_cast %101 : vector<16xf32> to vector<16x1xf32>
    %c0_38 = arith.constant 0 : index
    %c512 = arith.constant 512 : index
    %103 = vector.load %arg10[%c0_38, %c512] : memref<32x768xf32, #tpu.memory_space<vmem>>, vector<16x128xf32>
    %cst_39 = arith.constant dense<0.000000e+00> : vector<16x128xf32>
    %104 = tpu.matmul %100, %103, %cst_39 {dimension_numbers = #tpu.dot_dimension_numbers<[1], [0], [0], [1], [0, 0, 1, 1], [], []>} : vector<16x16xf32>, vector<16x128xf32>, vector<16x128xf32> -> vector<16x128xf32>
    %105 = tpu.reciprocal %102 : vector<16x1xf32> -> vector<16x1xf32>
    %106 = vector.broadcast %105 : vector<16x1xf32> to vector<16x128xf32>
    %107 = arith.mulf %104, %106 : vector<16x128xf32>
    %c0_40 = arith.constant 0 : index
    %c0_41 = arith.constant 0 : index
    %108 = vector.load %arg11[%c0_40, %c0_41] : memref<32x256xf32, #tpu.memory_space<vmem>>, vector<16x128xf32>
    tpu.vector_store %arg11[%c0_40, %c0_41], %107 {strides = array<i32>} : memref<32x256xf32, #tpu.memory_space<vmem>>, vector<16x128xf32>,
    %c0_42 = arith.constant 0 : index
    %c128 = arith.constant 128 : index
    %109 = vector.load %arg10[%c0_42, %c128] : memref<32x768xf32, #tpu.memory_space<vmem>>, vector<16x128xf32>
    %c0_43 = arith.constant 0 : index
    %c384 = arith.constant 384 : index
    %110 = vector.load %arg10[%c0_43, %c384] : memref<32x768xf32, #tpu.memory_space<vmem>>, vector<16x128xf32>
    %cst_44 = arith.constant dense<0.000000e+00> : vector<16x16xf32>
    %111 = tpu.matmul %109, %110, %cst_44 {dimension_numbers = #tpu.dot_dimension_numbers<[1], [1], [0], [0], [0, 0, 1, 0], [], []>} : vector<16x128xf32>, vector<16x128xf32>, vector<16x16xf32> -> vector<16x16xf32>
    %112 = vector.extract_strided_slice %88 {offsets = [0, 0, 0], sizes = [1, 1, 16], strides = [1, 1, 1]} : vector<2x1x16xf32> to vector<1x1x16xf32>
    %113 = vector.shape_cast %112 : vector<1x1x16xf32> to vector<1x16xf32>
    %114 = vector.broadcast %113 : vector<1x16xf32> to vector<16x16xf32>
    %115 = arith.addf %111, %114 : vector<16x16xf32>
    %cst_45 = arith.constant dense<0xFF800000> : vector<16xf32>
    %116 = vector.multi_reduction <maximumf>, %115, %cst_45 [1] : vector<16x16xf32> to vector<16xf32>
    %117 = vector.shape_cast %116 : vector<16xf32> to vector<16x1xf32>
    %118 = vector.broadcast %117 : vector<16x1xf32> to vector<16x16xf32>
    %119 = arith.subf %115, %118 : vector<16x16xf32>
    %120 = math.exp %119 : vector<16x16xf32>
    %cst_46 = arith.constant dense<0.000000e+00> : vector<16xf32>
    %121 = vector.multi_reduction <add>, %120, %cst_46 [1] : vector<16x16xf32> to vector<16xf32>
    %122 = vector.shape_cast %121 : vector<16xf32> to vector<16x1xf32>
    %c0_47 = arith.constant 0 : index
    %c640 = arith.constant 640 : index
    %123 = vector.load %arg10[%c0_47, %c640] : memref<32x768xf32, #tpu.memory_space<vmem>>, vector<16x128xf32>
    %cst_48 = arith.constant dense<0.000000e+00> : vector<16x128xf32>
    %124 = tpu.matmul %120, %123, %cst_48 {dimension_numbers = #tpu.dot_dimension_numbers<[1], [0], [0], [1], [0, 0, 1, 1], [], []>} : vector<16x16xf32>, vector<16x128xf32>, vector<16x128xf32> -> vector<16x128xf32>
    %125 = tpu.reciprocal %122 : vector<16x1xf32> -> vector<16x1xf32>
    %126 = vector.broadcast %125 : vector<16x1xf32> to vector<16x128xf32>
    %127 = arith.mulf %124, %126 : vector<16x128xf32>
    %c0_49 = arith.constant 0 : index
    %c128_50 = arith.constant 128 : index
    %128 = vector.load %arg11[%c0_49, %c128_50] : memref<32x256xf32, #tpu.memory_space<vmem>>, vector<16x128xf32>
    tpu.vector_store %arg11[%c0_49, %c128_50], %127 {strides = array<i32>} : memref<32x256xf32, #tpu.memory_space<vmem>>, vector<16x128xf32>,
    %c16 = arith.constant 16 : index
    %c0_51 = arith.constant 0 : index
    %129 = vector.load %arg10[%c16, %c0_51] : memref<32x768xf32, #tpu.memory_space<vmem>>, vector<16x128xf32>
    %c16_52 = arith.constant 16 : index
    %c256_53 = arith.constant 256 : index
    %130 = vector.load %arg10[%c16_52, %c256_53] : memref<32x768xf32, #tpu.memory_space<vmem>>, vector<16x128xf32>
    %cst_54 = arith.constant dense<0.000000e+00> : vector<16x16xf32>
    %131 = tpu.matmul %129, %130, %cst_54 {dimension_numbers = #tpu.dot_dimension_numbers<[1], [1], [0], [0], [0, 0, 1, 0], [], []>} : vector<16x128xf32>, vector<16x128xf32>, vector<16x16xf32> -> vector<16x16xf32>
    %132 = vector.extract_strided_slice %88 {offsets = [1, 0, 0], sizes = [1, 1, 16], strides = [1, 1, 1]} : vector<2x1x16xf32> to vector<1x1x16xf32>
    %133 = vector.shape_cast %132 : vector<1x1x16xf32> to vector<1x16xf32>
    %134 = vector.broadcast %133 : vector<1x16xf32> to vector<16x16xf32>
    %135 = arith.addf %131, %134 : vector<16x16xf32>
    %cst_55 = arith.constant dense<0xFF800000> : vector<16xf32>
    %136 = vector.multi_reduction <maximumf>, %135, %cst_55 [1] : vector<16x16xf32> to vector<16xf32>
    %137 = vector.shape_cast %136 : vector<16xf32> to vector<16x1xf32>
    %138 = vector.broadcast %137 : vector<16x1xf32> to vector<16x16xf32>
    %139 = arith.subf %135, %138 : vector<16x16xf32>
    %140 = math.exp %139 : vector<16x16xf32>
    %cst_56 = arith.constant dense<0.000000e+00> : vector<16xf32>
    %141 = vector.multi_reduction <add>, %140, %cst_56 [1] : vector<16x16xf32> to vector<16xf32>
    %142 = vector.shape_cast %141 : vector<16xf32> to vector<16x1xf32>
    %c16_57 = arith.constant 16 : index
    %c512_58 = arith.constant 512 : index
    %143 = vector.load %arg10[%c16_57, %c512_58] : memref<32x768xf32, #tpu.memory_space<vmem>>, vector<16x128xf32>
    %cst_59 = arith.constant dense<0.000000e+00> : vector<16x128xf32>
    %144 = tpu.matmul %140, %143, %cst_59 {dimension_numbers = #tpu.dot_dimension_numbers<[1], [0], [0], [1], [0, 0, 1, 1], [], []>} : vector<16x16xf32>, vector<16x128xf32>, vector<16x128xf32> -> vector<16x128xf32>
    %145 = tpu.reciprocal %142 : vector<16x1xf32> -> vector<16x1xf32>
    %146 = vector.broadcast %145 : vector<16x1xf32> to vector<16x128xf32>
    %147 = arith.mulf %144, %146 : vector<16x128xf32>
    %c16_60 = arith.constant 16 : index
    %c0_61 = arith.constant 0 : index
    %148 = vector.load %arg11[%c16_60, %c0_61] : memref<32x256xf32, #tpu.memory_space<vmem>>, vector<16x128xf32>
    tpu.vector_store %arg11[%c16_60, %c0_61], %147 {strides = array<i32>} : memref<32x256xf32, #tpu.memory_space<vmem>>, vector<16x128xf32>,
    %c16_62 = arith.constant 16 : index
    %c128_63 = arith.constant 128 : index
    %149 = vector.load %arg10[%c16_62, %c128_63] : memref<32x768xf32, #tpu.memory_space<vmem>>, vector<16x128xf32>
    %c16_64 = arith.constant 16 : index
    %c384_65 = arith.constant 384 : index
    %150 = vector.load %arg10[%c16_64, %c384_65] : memref<32x768xf32, #tpu.memory_space<vmem>>, vector<16x128xf32>
    %cst_66 = arith.constant dense<0.000000e+00> : vector<16x16xf32>
    %151 = tpu.matmul %149, %150, %cst_66 {dimension_numbers = #tpu.dot_dimension_numbers<[1], [1], [0], [0], [0, 0, 1, 0], [], []>} : vector<16x128xf32>, vector<16x128xf32>, vector<16x16xf32> -> vector<16x16xf32>
    %152 = vector.extract_strided_slice %88 {offsets = [1, 0, 0], sizes = [1, 1, 16], strides = [1, 1, 1]} : vector<2x1x16xf32> to vector<1x1x16xf32>
    %153 = vector.shape_cast %152 : vector<1x1x16xf32> to vector<1x16xf32>
    %154 = vector.broadcast %153 : vector<1x16xf32> to vector<16x16xf32>
    %155 = arith.addf %151, %154 : vector<16x16xf32>
    %cst_67 = arith.constant dense<0xFF800000> : vector<16xf32>
    %156 = vector.multi_reduction <maximumf>, %155, %cst_67 [1] : vector<16x16xf32> to vector<16xf32>
    %157 = vector.shape_cast %156 : vector<16xf32> to vector<16x1xf32>
    %158 = vector.broadcast %157 : vector<16x1xf32> to vector<16x16xf32>
    %159 = arith.subf %155, %158 : vector<16x16xf32>
    %160 = math.exp %159 : vector<16x16xf32>
    %cst_68 = arith.constant dense<0.000000e+00> : vector<16xf32>
    %161 = vector.multi_reduction <add>, %160, %cst_68 [1] : vector<16x16xf32> to vector<16xf32>
    %162 = vector.shape_cast %161 : vector<16xf32> to vector<16x1xf32>
    %c16_69 = arith.constant 16 : index
    %c640_70 = arith.constant 640 : index
    %163 = vector.load %arg10[%c16_69, %c640_70] : memref<32x768xf32, #tpu.memory_space<vmem>>, vector<16x128xf32>
    %cst_71 = arith.constant dense<0.000000e+00> : vector<16x128xf32>
    %164 = tpu.matmul %160, %163, %cst_71 {dimension_numbers = #tpu.dot_dimension_numbers<[1], [0], [0], [1], [0, 0, 1, 1], [], []>} : vector<16x16xf32>, vector<16x128xf32>, vector<16x128xf32> -> vector<16x128xf32>
    %165 = tpu.reciprocal %162 : vector<16x1xf32> -> vector<16x1xf32>
    %166 = vector.broadcast %165 : vector<16x1xf32> to vector<16x128xf32>
    %167 = arith.mulf %164, %166 : vector<16x128xf32>
    %c16_72 = arith.constant 16 : index
    %c128_73 = arith.constant 128 : index
    %168 = vector.load %arg11[%c16_72, %c128_73] : memref<32x256xf32, #tpu.memory_space<vmem>>, vector<16x128xf32>
    tpu.vector_store %arg11[%c16_72, %c128_73], %167 {strides = array<i32>} : memref<32x256xf32, #tpu.memory_space<vmem>>, vector<16x128xf32>,
    %c0_74 = arith.constant 0 : index
    %c0_75 = arith.constant 0 : index
    %169 = vector.load %arg11[%c0_74, %c0_75] : memref<32x256xf32, #tpu.memory_space<vmem>>, vector<32x256xf32>
    %c0_76 = arith.constant 0 : index
    %c0_77 = arith.constant 0 : index
    %170 = vector.load %arg7[%c0_76, %c0_77] : memref<256x256xf32, #tpu.memory_space<vmem>>, vector<256x256xf32>
    %cst_78 = arith.constant dense<0.000000e+00> : vector<32x256xf32>
    %171 = tpu.matmul %169, %170, %cst_78 {dimension_numbers = #tpu.dot_dimension_numbers<[1], [0], [0], [1], [0, 0, 1, 1], [], []>} : vector<32x256xf32>, vector<256x256xf32>, vector<32x256xf32> -> vector<32x256xf32>
    %c0_79 = arith.constant 0 : index
    %c0_80 = arith.constant 0 : index
    %172 = vector.load %arg8[%c0_79, %c0_80] : memref<1x256xf32, #tpu.memory_space<vmem>>, vector<1x256xf32>
    %173 = vector.broadcast %172 : vector<1x256xf32> to vector<32x256xf32>
    %174 = arith.addf %171, %173 : vector<32x256xf32>
    %175 = arith.addf %174, %87 : vector<32x256xf32>
    %176 = vector.shape_cast %175 : vector<32x256xf32> to vector<2x16x256xf32>
    %c0_81 = arith.constant 0 : index
    %c0_82 = arith.constant 0 : index
    %c0_83 = arith.constant 0 : index
    %177 = vector.load %arg9[%c0_81, %c0_82, %c0_83] : memref<2x16x256xf32, #tpu.memory_space<vmem>>, vector<2x16x256xf32>
    tpu.vector_store %arg9[%c0_81, %c0_82, %c0_83], %176 {strides = array<i32>} : memref<2x16x256xf32, #tpu.memory_space<vmem>>, vector<2x16x256xf32>,
    return
  }
  func.func @transform_0(%arg0: i32) -> (i32, i32, i32) {
    %c0_i32 = arith.constant 0 : i32
    %c0_i32_0 = arith.constant 0 : i32
    %c0_i32_1 = arith.constant 0 : i32
    return %arg0, %c0_i32, %c0_i32_0 : i32, i32, i32
  }
  func.func @transform_1(%arg0: i32) -> (i32, i32, i32) {
    %c0_i32 = arith.constant 0 : i32
    %c0_i32_0 = arith.constant 0 : i32
    %c0_i32_1 = arith.constant 0 : i32
    return %arg0, %c0_i32, %c0_i32_0 : i32, i32, i32
  }
  func.func @transform_2(%arg0: i32) -> (i32, i32, i32) {
    %c0_i32 = arith.constant 0 : i32
    %c0_i32_0 = arith.constant 0 : i32
    %c0_i32_1 = arith.constant 0 : i32
    return %arg0, %c0_i32, %c0_i32_0 : i32, i32, i32
  }
  func.func @transform_3(%arg0: i32) -> (i32, i32) {
    %c0_i32 = arith.constant 0 : i32
    %c0_i32_0 = arith.constant 0 : i32
    %c0_i32_1 = arith.constant 0 : i32
    return %c0_i32, %c0_i32_0 : i32, i32
  }
  func.func @transform_4(%arg0: i32) -> (i32, i32) {
    %c0_i32 = arith.constant 0 : i32
    %c0_i32_0 = arith.constant 0 : i32
    %c0_i32_1 = arith.constant 0 : i32
    return %c0_i32, %c0_i32_0 : i32, i32
  }
  func.func @transform_5(%arg0: i32) -> (i32, i32) {
    %c0_i32 = arith.constant 0 : i32
    %c0_i32_0 = arith.constant 0 : i32
    %c0_i32_1 = arith.constant 0 : i32
    return %c0_i32, %c0_i32_0 : i32, i32
  }
  func.func @transform_6(%arg0: i32) -> (i32, i32) {
    %c0_i32 = arith.constant 0 : i32
    %c0_i32_0 = arith.constant 0 : i32
    %c0_i32_1 = arith.constant 0 : i32
    return %c0_i32, %c0_i32_0 : i32, i32
  }
  func.func @transform_7(%arg0: i32) -> (i32, i32) {
    %c0_i32 = arith.constant 0 : i32
    %c0_i32_0 = arith.constant 0 : i32
    %c0_i32_1 = arith.constant 0 : i32
    return %c0_i32, %c0_i32_0 : i32, i32
  }
  func.func @transform_8(%arg0: i32) -> (i32, i32, i32) {
    %c0_i32 = arith.constant 0 : i32
    %c0_i32_0 = arith.constant 0 : i32
    %c0_i32_1 = arith.constant 0 : i32
    return %arg0, %c0_i32, %c0_i32_0 : i32, i32, i32
  }
}

</mosaic_0001>

<bundles_post_ra>
// kernel: tpu_custom_call.1
= control target key start
LH: loop header
LB: loop body
LE: loop exit
PB: predicated region body
PF: predicated region fallthrough
CT: control target
= control target key end

     0   :  { %13 = vsyncpa [#allocation5], 0  ;;  %s3133_s0 = inlined_call_operand.hbm [shape: f32[2,16,256], index: 0, kind: input, shape index: {}]   ;;  %s3134_s1 = inlined_call_operand.vmem [shape: f32[2,16,1], index: 1, kind: input, shape index: {}]   ;;  %s3135_s2 = inlined_call_operand.vmem [shape: f32[2,1,16], index: 2, kind: input, shape index: {}]   ;;  %s3136_s3 = inlined_call_operand.hbm [shape: f32[256,768], index: 3, kind: input, shape index: {}]   ;;  %s3137_s4 = inlined_call_operand.vmem [shape: f32[1,768], index: 4, kind: input, shape index: {}]   ;;  %s3138_s5 = inlined_call_operand.vmem [shape: f32[5,256], index: 5, kind: input, shape index: {}]   ;;  %s3139_s6 = inlined_call_operand.hbm [shape: f32[256,256], index: 6, kind: input, shape index: {}]   ;;  %s3140_s7 = inlined_call_operand.vmem [shape: f32[1,256], index: 7, kind: input, shape index: {}]   ;;  %s3141_s8 = inlined_call_operand.hbm [shape: f32[2,16,256], index: 8, kind: output, shape index: {}]  }
   0x1   :  { %14 = vsyncpa [#allocation8], 0 }
   0x2   :  { %15 = vsyncpa [#allocation6], 0  ;;  %s2512_s27 = smov [#allocation7]   ;;  %s2418_s9 = scalar_lea.hbm %s3136_s3, 24576 }
   0x3   :  { %s37_s28 = sshll.u32 %s2512_s27, 4  ;;  %p2419_p0 = scmp.ne.s32.totalorder %s3136_s3, %s2418_s9  ;;  %s38_s28 = int_to_ptr.vmem [resolvable:$true] %s37_s28 }
   0x4   :  { %p2422_p1 = scmp.lt.u32.totalorder %s2418_s9, %s3136_s3 }
   0x6   :  { %p2424_p2 = pnand %p2422_p1, %p2419_p0 }
   0x8   :  { %2427 = shalt.err (!%p2424_p2)
}
   0x9   :  { %s2428_s14 = scalar_lea.vmem %s38_s28, 24576  ;;  %p2433_p4 = scmp.lt.s32.totalorder %s38_s28, %s38_s28 }
   0xa   :  { %p2429_p3 = scmp.ne.s32.totalorder %s38_s28, %s2428_s14  ;;  %p2434_p5 = scmp.lt.s32.totalorder %s2428_s14, %s2428_s14 }
   0xc   :  { %p2435_p6 = por %p2434_p5, %p2433_p4 }
   0xe   :  { %p2436_p7 = pnand %p2435_p6, %p2429_p3 }
  0x10   :  { %2439 = shalt.err (!%p2436_p7)
}
  0x11   :  { %s2513_s15 = smov 768   ;;  %s2514_s16 = smov 48  }
  0x12   :  { %43 = dma.hbm_to_vmem [thread:$0]  %s3136_s3, 24576, %s38_s28, [#allocation8], %s2513_s15, %s2513_s15, %s2514_s16  }
  0x13   :  { %s2515_s19 = smov [#allocation4]   ;;  %s2440_s23 = scalar_lea.hbm %s3133_s0, 1024 }
  0x14   :  { %s21_s20 = sshll.u32 %s2515_s19, 4  ;;  %p2441_p8 = scmp.ne.s32.totalorder %s3133_s0, %s2440_s23  ;;  %s22_s20 = int_to_ptr.vmem [resolvable:$true] %s21_s20 }
  0x15   :  { %p2444_p9 = scmp.lt.u32.totalorder %s2440_s23, %s3133_s0 }
  0x17   :  { %p2446_p10 = pnand %p2444_p9, %p2441_p8 }
  0x19   :  { %2449 = shalt.err (!%p2446_p10)
}
  0x1a   :  { %s2450_s29 = scalar_lea.vmem %s22_s20, 1024  ;;  %p2455_p12 = scmp.lt.s32.totalorder %s22_s20, %s22_s20 }
  0x1b   :  { %p2451_p11 = scmp.ne.s32.totalorder %s22_s20, %s2450_s29  ;;  %p2456_p13 = scmp.lt.s32.totalorder %s2450_s29, %s2450_s29 }
  0x1d   :  { %p2457_p0 = por %p2456_p13, %p2455_p12 }
  0x1f   :  { %p2458_p1 = pnand %p2457_p0, %p2451_p11 }
  0x21   :  { %2461 = shalt.err (!%p2458_p1)
}
  0x22   :  { %s2516_s3 = smov 256   ;;  %s2517_s28 = smov 16  }
  0x23   :  { %27 = dma.hbm_to_vmem [thread:$0]  %s3133_s0, 1024, %s22_s20, [#allocation5], %s2516_s3, %s2516_s3, %s2517_s28  }
  0x24   :  { %s2518_s10 = smov [#allocation9]   ;;  %s2462_s14 = scalar_lea.hbm %s3139_s6, 8192 }
  0x25   :  { %s53_s11 = sshll.u32 %s2518_s10, 4  ;;  %p2463_p2 = scmp.ne.s32.totalorder %s3139_s6, %s2462_s14  ;;  %s54_s11 = int_to_ptr.vmem [resolvable:$true] %s53_s11 }
  0x26   :  { %p2466_p3 = scmp.lt.u32.totalorder %s2462_s14, %s3139_s6 }
  0x28   :  { %p2468_p4 = pnand %p2466_p3, %p2463_p2 }
  0x2a   :  { %2471 = shalt.err (!%p2468_p4)
}
  0x2b   :  { %s2472_s19 = scalar_lea.vmem %s54_s11, 8192  ;;  %p2477_p6 = scmp.lt.s32.totalorder %s54_s11, %s54_s11 }
  0x2c   :  { %p2473_p5 = scmp.ne.s32.totalorder %s54_s11, %s2472_s19  ;;  %p2478_p7 = scmp.lt.s32.totalorder %s2472_s19, %s2472_s19 }
  0x2e   :  { %p2479_p8 = por %p2478_p7, %p2477_p6 }
  0x30   :  { %p2480_p9 = pnand %p2479_p8, %p2473_p5 }
  0x32   :  { %2483 = shalt.err (!%p2480_p9)
}
  0x33   :  { %59 = dma.hbm_to_vmem [thread:$0]  %s3139_s6, 8192, %s54_s11, [#allocation8], %s2516_s3, %s2516_s3, %s2517_s28  }
  0x34   :  { %2506 = dma.done.wait [#allocation5], 1024  }
  0x35   :  { %2507 = vsyncadd [#allocation5], 4294966272 }
  0x36   :  { %2508 = dma.done.wait [#allocation8], 32768  }
  0x37   :  { %2509 = vsyncadd [#allocation8], 4294934528  ;;  %v86_v0 = vld [vmem:[#allocation7 + $0x18] sm:$0xff]  ;;  %v92_v1 = vld [vmem:[#allocation7 + $0x48] sm:$0xff]  ;;  %vm1106_vm0 = vcmask 130048   ;;  %vm708_vm1 = vcmask 1043456  }
  0x38   :  { %v85_v2 = vld [vmem:[#allocation7 + $0x10] sm:$0xff]  ;;  %v2151_v3 = vpack.c.bf16 %v92_v1, %v86_v0  ;;  %v91_v4 = vld [vmem:[#allocation7 + $0x40] sm:$0xff]  ;;  %v98_v5 = vld [vmem:[#allocation7 + $0x78] sm:$0xff]  ;;  %vm781_vm2 = vcmask 1042432   ;;  %vm855_vm3 = vcmask 1041408   ;;  %vm929_vm4 = vcmask 1040384  }
  0x39   :  { %v104_v6 = vld [vmem:[#allocation7 + $0xa8] sm:$0xff]  ;;  %v2153_v7 = vpack.c.bf16 %v91_v4, %v85_v2  ;;  %v97_v9 = vld [vmem:[#allocation7 + $0x70] sm:$0xff]  ;;  %v103_v10 = vld [vmem:[#allocation7 + $0xa0] sm:$0xff] }
  0x3a   :  { %v2155_v8 = vpack.c.bf16 %v104_v6, %v98_v5  ;;  %v110_v11 = vld [vmem:[#allocation7 + $0xd8] sm:$0xff]  ;;  %2152 = vmatprep.subr.bf16.mxu1 %v2151_v3  ;;  %v116_v12 = vld [vmem:[#allocation7 + $0x108] sm:$0xff]  ;;  %v2157_v13 = vpack.c.bf16 %v103_v10, %v97_v9  ;;  %v83_v16 = vld [vmem:[#allocation7] sm:$0xff] }
  0x3b   :  { %2154 = vmatpush1.bf16.msra.mxu1 %v2153_v7  ;;  %v84_v14 = vld [vmem:[#allocation7 + $0x8] sm:$0xff]  ;;  %v90_v15 = vld [vmem:[#allocation7 + $0x38] sm:$0xff]  ;;  %v2159_v17 = vpack.c.bf16 %v116_v12, %v110_v11  ;;  %v109_v18 = vld [vmem:[#allocation7 + $0xd0] sm:$0xff] }
  0x3c   :  { %2156 = vmatprep.subr.bf16.mxu1 %v2155_v8  ;;  %v115_v19 = vld [vmem:[#allocation7 + $0x100] sm:$0xff]  ;;  %v2087_v20 = vpack.c.bf16 %v90_v15, %v84_v14  ;;  %v89_v21 = vld [vmem:[#allocation7 + $0x30] sm:$0xff]  ;;  %v122_v23 = vld [vmem:[#allocation7 + $0x138] sm:$0xff] }
  0x3d   :  { %v2089_v22 = vpack.c.bf16 %v89_v21, %v83_v16  ;;  %v128_v24 = vld [vmem:[#allocation7 + $0x168] sm:$0xff]  ;;  %v102_v26 = vld [vmem:[#allocation7 + $0x98] sm:$0xff]  ;;  %v95_v27 = vld [vmem:[#allocation7 + $0x60] sm:$0xff]  ;;  %v2161_v29 = vpack.c.bf16 %v115_v19, %v109_v18 }
  0x3e   :  { %v96_v25 = vld [vmem:[#allocation7 + $0x68] sm:$0xff]  ;;  %2088 = vmatprep.subr.bf16.mxu0 %v2087_v20  ;;  %v101_v28 = vld [vmem:[#allocation7 + $0x90] sm:$0xff]  ;;  %v127_v31 = vld [vmem:[#allocation7 + $0x160] sm:$0xff]  ;;  %v2163_v34 = vpack.c.bf16 %v128_v24, %v122_v23 }
  0x3f   :  { %2158 = vmatpush1.bf16.msra.mxu1 %v2157_v13  ;;  %2090 = vmatpush1.bf16.msra.mxu0 %v2089_v22  ;;  %v121_v30 = vld [vmem:[#allocation7 + $0x130] sm:$0xff]  ;;  %v2091_v32 = vpack.c.bf16 %v102_v26, %v96_v25  ;;  %v2093_v33 = vpack.c.bf16 %v101_v28, %v95_v27  ;;  %v134_v35 = vld [vmem:[#allocation7 + $0x198] sm:$0xff]  ;;  %v108_v36 = vld [vmem:[#allocation7 + $0xc8] sm:$0xff] }
  0x40   :  { %2160 = vmatprep.subr.bf16.mxu1 %v2159_v17  ;;  %v114_v37 = vld [vmem:[#allocation7 + $0xf8] sm:$0xff]  ;;  %v140_v38 = vld [vmem:[#allocation7 + $0x1c8] sm:$0xff]  ;;  %v107_v40 = vld [vmem:[#allocation7 + $0xc0] sm:$0xff]  ;;  %v2165_v42 = vpack.c.bf16 %v127_v31, %v121_v30 }
  0x41   :  { %2092 = vmatprep.subr.bf16.mxu0 %v2091_v32  ;;  %v2095_v39 = vpack.c.bf16 %v114_v37, %v108_v36  ;;  %v113_v41 = vld [vmem:[#allocation7 + $0xf0] sm:$0xff]  ;;  %v120_v45 = vld [vmem:[#allocation7 + $0x128] sm:$0xff]  ;;  %v126_v46 = vld [vmem:[#allocation7 + $0x158] sm:$0xff]  ;;  %v2167_v47 = vpack.c.bf16 %v140_v38, %v134_v35 }
  0x42   :  { %v133_v43 = vld [vmem:[#allocation7 + $0x190] sm:$0xff]  ;;  %v2097_v44 = vpack.c.bf16 %v113_v41, %v107_v40  ;;  %v139_v48 = vld [vmem:[#allocation7 + $0x1c0] sm:$0xff]  ;;  %v2099_v49 = vpack.c.bf16 %v126_v46, %v120_v45  ;;  %v146_v52 = vld [vmem:[#allocation7 + $0x1f8] sm:$0xff] }
  0x43   :  { %2162 = vmatpush1.bf16.msra.mxu1 %v2161_v29  ;;  %2094 = vmatpush1.bf16.msra.mxu0 %v2093_v33  ;;  %v119_v50 = vld [vmem:[#allocation7 + $0x120] sm:$0xff]  ;;  %v125_v51 = vld [vmem:[#allocation7 + $0x150] sm:$0xff]  ;;  %v152_v53 = vld [vmem:[#allocation7 + $0x228] sm:$0xff]  ;;  %v2169_v56 = vpack.c.bf16 %v139_v48, %v133_v43 }
  0x44   :  { %2164 = vmatprep.subr.bf16.mxu1 %v2163_v34  ;;  %2096 = vmatprep.subr.bf16.mxu0 %v2095_v39  ;;  %v132_v54 = vld [vmem:[#allocation7 + $0x188] sm:$0xff]  ;;  %v138_v55 = vld [vmem:[#allocation7 + $0x1b8] sm:$0xff]  ;;  %v145_v57 = vld [vmem:[#allocation7 + $0x1f0] sm:$0xff]  ;;  %v2101_v59 = vpack.c.bf16 %v125_v51, %v119_v50  ;;  %v2171_v60 = vpack.c.bf16 %v152_v53, %v146_v52 }
  0x45   :  { %v151_v58 = vld [vmem:[#allocation7 + $0x220] sm:$0xff]  ;;  %v158_v61 = vld [vmem:[#allocation7 + $0x258] sm:$0xff]  ;;  %v2103_v62 = vpack.c.bf16 %v138_v55, %v132_v54  ;;  %v137_v0 = vld [vmem:[#allocation7 + $0x1b0] sm:$0xff] }
  0x46   :  { %v131_v63 = vld [vmem:[#allocation7 + $0x180] sm:$0xff]  ;;  %v164_v1 = vld [vmem:[#allocation7 + $0x288] sm:$0xff]  ;;  %v150_v3 = vld [vmem:[#allocation7 + $0x218] sm:$0xff]  ;;  %v2173_v4 = vpack.c.bf16 %v151_v58, %v145_v57 }
  0x47   :  { %2166 = vmatpush1.bf16.msra.mxu1 %v2165_v42  ;;  %2098 = vmatpush1.bf16.msra.mxu0 %v2097_v44  ;;  %v144_v2 = vld [vmem:[#allocation7 + $0x1e8] sm:$0xff]  ;;  %v157_v5 = vld [vmem:[#allocation7 + $0x250] sm:$0xff]  ;;  %v163_v6 = vld [vmem:[#allocation7 + $0x280] sm:$0xff]  ;;  %v2105_v7 = vpack.c.bf16 %v137_v0, %v131_v63  ;;  %v2175_v8 = vpack.c.bf16 %v164_v1, %v158_v61 }
  0x48   :  { %2168 = vmatprep.subr.bf16.mxu1 %v2167_v47  ;;  %2100 = vmatprep.subr.bf16.mxu0 %v2099_v49  ;;  %v170_v9 = vld [vmem:[#allocation7 + $0x2b8] sm:$0xff]  ;;  %v2107_v10 = vpack.c.bf16 %v150_v3, %v144_v2  ;;  %v143_v11 = vld [vmem:[#allocation7 + $0x1e0] sm:$0xff]  ;;  %v149_v12 = vld [vmem:[#allocation7 + $0x210] sm:$0xff]  ;;  %v2177_v16 = vpack.c.bf16 %v163_v6, %v157_v5 }
  0x49   :  { %v176_v13 = vld [vmem:[#allocation7 + $0x2e8] sm:$0xff]  ;;  %v162_v15 = vld [vmem:[#allocation7 + $0x278] sm:$0xff]  ;;  %v169_v17 = vld [vmem:[#allocation7 + $0x2b0] sm:$0xff]  ;;  %v2109_v19 = vpack.c.bf16 %v149_v12, %v143_v11 }
  0x4a   :  { %v156_v14 = vld [vmem:[#allocation7 + $0x248] sm:$0xff]  ;;  %v175_v18 = vld [vmem:[#allocation7 + $0x2e0] sm:$0xff]  ;;  %v2179_v20 = vpack.c.bf16 %v176_v13, %v170_v9  ;;  %v182_v21 = vld [vmem:[#allocation7 + $0x318] sm:$0xff] }
  0x4b   :  { %2170 = vmatpush1.bf16.msra.mxu1 %v2169_v56  ;;  %2102 = vmatpush1.bf16.msra.mxu0 %v2101_v59  ;;  %v2111_v22 = vpack.c.bf16 %v162_v15, %v156_v14  ;;  %v155_v23 = vld [vmem:[#allocation7 + $0x240] sm:$0xff]  ;;  %v161_v24 = vld [vmem:[#allocation7 + $0x270] sm:$0xff]  ;;  %v188_v25 = vld [vmem:[#allocation7 + $0x348] sm:$0xff]  ;;  %v2181_v28 = vpack.c.bf16 %v175_v18, %v169_v17 }
  0x4c   :  { %2172 = vmatprep.subr.bf16.mxu1 %v2171_v60  ;;  %2104 = vmatprep.subr.bf16.mxu0 %v2103_v62  ;;  %v168_v26 = vld [vmem:[#allocation7 + $0x2a8] sm:$0xff]  ;;  %v174_v27 = vld [vmem:[#allocation7 + $0x2d8] sm:$0xff]  ;;  %v181_v29 = vld [vmem:[#allocation7 + $0x310] sm:$0xff]  ;;  %v2113_v31 = vpack.c.bf16 %v161_v24, %v155_v23  ;;  %v2183_v32 = vpack.c.bf16 %v188_v25, %v182_v21 }
  0x4d   :  { %v187_v30 = vld [vmem:[#allocation7 + $0x340] sm:$0xff]  ;;  %v194_v33 = vld [vmem:[#allocation7 + $0x378] sm:$0xff]  ;;  %v2115_v34 = vpack.c.bf16 %v174_v27, %v168_v26  ;;  %v173_v36 = vld [vmem:[#allocation7 + $0x2d0] sm:$0xff] }
  0x4e   :  { %v167_v35 = vld [vmem:[#allocation7 + $0x2a0] sm:$0xff]  ;;  %v200_v37 = vld [vmem:[#allocation7 + $0x3a8] sm:$0xff]  ;;  %v186_v39 = vld [vmem:[#allocation7 + $0x338] sm:$0xff]  ;;  %v2185_v40 = vpack.c.bf16 %v187_v30, %v181_v29 }
  0x4f   :  { %2174 = vmatpush1.bf16.msra.mxu1 %v2173_v4  ;;  %2106 = vmatpush1.bf16.msra.mxu0 %v2105_v7  ;;  %v180_v38 = vld [vmem:[#allocation7 + $0x308] sm:$0xff]  ;;  %v193_v41 = vld [vmem:[#allocation7 + $0x370] sm:$0xff]  ;;  %v199_v42 = vld [vmem:[#allocation7 + $0x3a0] sm:$0xff]  ;;  %v2117_v43 = vpack.c.bf16 %v173_v36, %v167_v35  ;;  %v2187_v44 = vpack.c.bf16 %v200_v37, %v194_v33 }
  0x50   :  { %2176 = vmatprep.subr.bf16.mxu1 %v2175_v8  ;;  %2108 = vmatprep.subr.bf16.mxu0 %v2107_v10  ;;  %v206_v45 = vld [vmem:[#allocation7 + $0x3d8] sm:$0xff]  ;;  %v2119_v46 = vpack.c.bf16 %v186_v39, %v180_v38  ;;  %v179_v47 = vld [vmem:[#allocation7 + $0x300] sm:$0xff]  ;;  %v185_v48 = vld [vmem:[#allocation7 + $0x330] sm:$0xff]  ;;  %v2189_v52 = vpack.c.bf16 %v199_v42, %v193_v41 }
  0x51   :  { %v212_v49 = vld [vmem:[#allocation7 + $0x408] sm:$0xff]  ;;  %v198_v51 = vld [vmem:[#allocation7 + $0x398] sm:$0xff]  ;;  %v205_v53 = vld [vmem:[#allocation7 + $0x3d0] sm:$0xff]  ;;  %v2121_v55 = vpack.c.bf16 %v185_v48, %v179_v47 }
  0x52   :  { %v192_v50 = vld [vmem:[#allocation7 + $0x368] sm:$0xff]  ;;  %v211_v54 = vld [vmem:[#allocation7 + $0x400] sm:$0xff]  ;;  %v2191_v56 = vpack.c.bf16 %v212_v49, %v206_v45  ;;  %v218_v57 = vld [vmem:[#allocation7 + $0x438] sm:$0xff] }
  0x53   :  { %2178 = vmatpush1.bf16.msra.mxu1 %v2177_v16  ;;  %2110 = vmatpush1.bf16.msra.mxu0 %v2109_v19  ;;  %v2123_v58 = vpack.c.bf16 %v198_v51, %v192_v50  ;;  %v191_v59 = vld [vmem:[#allocation7 + $0x360] sm:$0xff]  ;;  %v197_v60 = vld [vmem:[#allocation7 + $0x390] sm:$0xff]  ;;  %v224_v61 = vld [vmem:[#allocation7 + $0x468] sm:$0xff]  ;;  %v2193_v0 = vpack.c.bf16 %v211_v54, %v205_v53 }
  0x54   :  { %2180 = vmatprep.subr.bf16.mxu1 %v2179_v20  ;;  %2112 = vmatprep.subr.bf16.mxu0 %v2111_v22  ;;  %v204_v62 = vld [vmem:[#allocation7 + $0x3c8] sm:$0xff]  ;;  %v210_v63 = vld [vmem:[#allocation7 + $0x3f8] sm:$0xff]  ;;  %v217_v1 = vld [vmem:[#allocation7 + $0x430] sm:$0xff]  ;;  %v2125_v3 = vpack.c.bf16 %v197_v60, %v191_v59  ;;  %v2195_v5 = vpack.c.bf16 %v224_v61, %v218_v57 }
  0x55   :  { %v223_v2 = vld [vmem:[#allocation7 + $0x460] sm:$0xff]  ;;  %v2608_v4 = vld [vmem:[#allocation4 + $0x8] sm:$0xff]  ;;  %v230_v6 = vld [vmem:[#allocation7 + $0x498] sm:$0xff]  ;;  %v2127_v7 = vpack.c.bf16 %v210_v63, %v204_v62 }
  0x56   :  { %v203_v8 = vld [vmem:[#allocation7 + $0x3c0] sm:$0xff]  ;;  %v209_v9 = vld [vmem:[#allocation7 + $0x3f0] sm:$0xff]  ;;  %v236_v10 = vld [vmem:[#allocation7 + $0x4c8] sm:$0xff]  ;;  %460 = vmatprep.mubr.f32.mxu1 %v2608_v4  ;;  %371 = vmatprep.mubr.f32.mxu0 %v2608_v4  ;;  %v2197_v13 = vpack.c.bf16 %v223_v2, %v217_v1 }
  0x57   :  { %2182 = vmatpush1.bf16.msra.mxu1 %v2181_v28  ;;  %2114 = vmatpush1.bf16.msra.mxu0 %v2113_v31  ;;  %v216_v11 = vld [vmem:[#allocation7 + $0x428] sm:$0xff]  ;;  %v222_v12 = vld [vmem:[#allocation7 + $0x458] sm:$0xff]  ;;  %v229_v14 = vld [vmem:[#allocation7 + $0x490] sm:$0xff]  ;;  %v2129_v16 = vpack.c.bf16 %v209_v9, %v203_v8  ;;  %v2199_v17 = vpack.c.bf16 %v236_v10, %v230_v6 }
  0x58   :  { %2184 = vmatprep.subr.bf16.mxu1 %v2183_v32  ;;  %2116 = vmatprep.subr.bf16.mxu0 %v2115_v34  ;;  %v235_v15 = vld [vmem:[#allocation7 + $0x4c0] sm:$0xff]  ;;  %v242_v18 = vld [vmem:[#allocation7 + $0x4f8] sm:$0xff]  ;;  %v2131_v19 = vpack.c.bf16 %v222_v12, %v216_v11  ;;  %v221_v21 = vld [vmem:[#allocation7 + $0x450] sm:$0xff] }
  0x59   :  { %v215_v20 = vld [vmem:[#allocation7 + $0x420] sm:$0xff]  ;;  %v248_v22 = vld [vmem:[#allocation7 + $0x528] sm:$0xff]  ;;  %v234_v24 = vld [vmem:[#allocation7 + $0x4b8] sm:$0xff]  ;;  %v2201_v25 = vpack.c.bf16 %v235_v15, %v229_v14 }
  0x5a   :  { %v228_v23 = vld [vmem:[#allocation7 + $0x488] sm:$0xff]  ;;  %v241_v26 = vld [vmem:[#allocation7 + $0x4f0] sm:$0xff]  ;;  %v247_v27 = vld [vmem:[#allocation7 + $0x520] sm:$0xff]  ;;  %v2133_v28 = vpack.c.bf16 %v221_v21, %v215_v20  ;;  %v2203_v29 = vpack.c.bf16 %v248_v22, %v242_v18 }
  0x5b   :  { %2186 = vmatpush1.bf16.msra.mxu1 %v2185_v40  ;;  %2118 = vmatpush1.bf16.msra.mxu0 %v2117_v43  ;;  %v254_v30 = vld [vmem:[#allocation7 + $0x558] sm:$0xff]  ;;  %v2135_v31 = vpack.c.bf16 %v234_v24, %v228_v23  ;;  %v227_v32 = vld [vmem:[#allocation7 + $0x480] sm:$0xff]  ;;  %v233_v33 = vld [vmem:[#allocation7 + $0x4b0] sm:$0xff]  ;;  %v2205_v37 = vpack.c.bf16 %v247_v27, %v241_v26 }
  0x5c   :  { %2188 = vmatprep.subr.bf16.mxu1 %v2187_v44  ;;  %2120 = vmatprep.subr.bf16.mxu0 %v2119_v46  ;;  %v260_v34 = vld [vmem:[#allocation7 + $0x588] sm:$0xff]  ;;  %v246_v36 = vld [vmem:[#allocation7 + $0x518] sm:$0xff]  ;;  %v253_v38 = vld [vmem:[#allocation7 + $0x550] sm:$0xff]  ;;  %v2137_v40 = vpack.c.bf16 %v233_v33, %v227_v32 }
  0x5d   :  { %v240_v35 = vld [vmem:[#allocation7 + $0x4e8] sm:$0xff]  ;;  %v259_v39 = vld [vmem:[#allocation7 + $0x580] sm:$0xff]  ;;  %v2207_v41 = vpack.c.bf16 %v260_v34, %v254_v30  ;;  %v266_v42 = vld [vmem:[#allocation7 + $0x5b8] sm:$0xff] }
  0x5e   :  { %v2139_v43 = vpack.c.bf16 %v246_v36, %v240_v35  ;;  %v239_v44 = vld [vmem:[#allocation7 + $0x4e0] sm:$0xff]  ;;  %v245_v45 = vld [vmem:[#allocation7 + $0x510] sm:$0xff]  ;;  %v272_v46 = vld [vmem:[#allocation7 + $0x5e8] sm:$0xff]  ;;  %v2209_v49 = vpack.c.bf16 %v259_v39, %v253_v38 }
  0x5f   :  { %2190 = vmatpush1.bf16.msra.mxu1 %v2189_v52  ;;  %2122 = vmatpush1.bf16.msra.mxu0 %v2121_v55  ;;  %v252_v47 = vld [vmem:[#allocation7 + $0x548] sm:$0xff]  ;;  %v258_v48 = vld [vmem:[#allocation7 + $0x578] sm:$0xff]  ;;  %v265_v50 = vld [vmem:[#allocation7 + $0x5b0] sm:$0xff]  ;;  %v2141_v51 = vpack.c.bf16 %v245_v45, %v239_v44  ;;  %v2211_v52 = vpack.c.bf16 %v272_v46, %v266_v42 }
  0x60   :  { %2192 = vmatprep.subr.bf16.mxu1 %v2191_v56  ;;  %2124 = vmatprep.subr.bf16.mxu0 %v2123_v58  ;;  %v271_v53 = vld [vmem:[#allocation7 + $0x5e0] sm:$0xff]  ;;  %v2143_v54 = vpack.c.bf16 %v258_v48, %v252_v47  ;;  %v257_v56 = vld [vmem:[#allocation7 + $0x570] sm:$0xff]  ;;  %v264_v57 = vld [vmem:[#allocation7 + $0x5a8] sm:$0xff] }
  0x61   :  { %v251_v55 = vld [vmem:[#allocation7 + $0x540] sm:$0xff]  ;;  %v270_v58 = vld [vmem:[#allocation7 + $0x5d8] sm:$0xff]  ;;  %v2213_v59 = vpack.c.bf16 %v271_v53, %v265_v50  ;;  %v269_v63 = vld [vmem:[#allocation7 + $0x5d0] sm:$0xff] }
  0x62   :  { %v2145_v60 = vpack.c.bf16 %v257_v56, %v251_v55  ;;  %v2147_v61 = vpack.c.bf16 %v270_v58, %v264_v57  ;;  %v263_v62 = vld [vmem:[#allocation7 + $0x5a0] sm:$0xff]  ;;  %v94_v1 = vld [vmem:[#allocation7 + $0x58] sm:$0xff]  ;;  %v93_v8 = vld [vmem:[#allocation7 + $0x50] sm:$0xff] }
  0x63   :  { %2194 = vmatpush1.bf16.msra.mxu1 %v2193_v0  ;;  %2126 = vmatpush1.bf16.msra.mxu0 %v2125_v3  ;;  %v88_v0 = vld [vmem:[#allocation7 + $0x28] sm:$0xff]  ;;  %v2612_v2 = vld [vmem:[#allocation4] sm:$0xff]  ;;  %v2149_v3 = vpack.c.bf16 %v269_v63, %v263_v62  ;;  %v106_v10 = vld [vmem:[#allocation7 + $0xb8] sm:$0xff] }
  0x64   :  { %2196 = vmatprep.subr.bf16.mxu1 %v2195_v5  ;;  %2128 = vmatprep.subr.bf16.mxu0 %v2127_v7  ;;  %v2614_v5 = vld [vmem:[#allocation4 + $0x18] sm:$0xff]  ;;  %v2215_v6 = vpack.c.bf16 %v94_v1, %v88_v0  ;;  %v87_v7 = vld [vmem:[#allocation7 + $0x20] sm:$0xff]  ;;  %v100_v9 = vld [vmem:[#allocation7 + $0x88] sm:$0xff] }
  0x65   :  { %v2618_v11 = vld [vmem:[#allocation4 + $0x10] sm:$0xff]  ;;  %v2620_v12 = vld [vmem:[#allocation4 + $0x28] sm:$0xff]  ;;  %v2219_v14 = vpack.c.bf16 %v106_v10, %v100_v9  ;;  %v99_v15 = vld [vmem:[#allocation7 + $0x80] sm:$0xff] }
  0x66   :  { %v118_v18 = vld [vmem:[#allocation7 + $0x118] sm:$0xff]  ;;  %v111_v23 = vld [vmem:[#allocation7 + $0xe0] sm:$0xff]  ;;  %v117_v24 = vld [vmem:[#allocation7 + $0x110] sm:$0xff] }
  0x67   :  { %2198 = vmatpush1.bf16.msra.mxu1 %v2197_v13  ;;  %2130 = vmatpush1.bf16.msra.mxu0 %v2129_v16  ;;  %v2217_v13 = vpack.c.bf16 %v93_v8, %v87_v7  ;;  %v105_v16 = vld [vmem:[#allocation7 + $0xb0] sm:$0xff]  ;;  %v2628_v20 = vld [vmem:[#allocation4 + $0x38] sm:$0xff]  ;;  %v123_v30 = vld [vmem:[#allocation7 + $0x140] sm:$0xff] }
  0x68   :  { %2200 = vmatprep.subr.bf16.mxu1 %v2199_v17  ;;  %2132 = vmatprep.subr.bf16.mxu0 %v2131_v19  ;;  %v112_v17 = vld [vmem:[#allocation7 + $0xe8] sm:$0xff]  ;;  %v2626_v19 = vld [vmem:[#allocation4 + $0x20] sm:$0xff]  ;;  %v2221_v21 = vpack.c.bf16 %v105_v16, %v99_v15  ;;  %v130_v26 = vld [vmem:[#allocation7 + $0x178] sm:$0xff] }
  0x69   :  { %v2223_v22 = vpack.c.bf16 %v118_v18, %v112_v17  ;;  %v2633_v27 = vld [vmem:[#allocation4 + $0x30] sm:$0xff]  ;;  %v136_v32 = vld [vmem:[#allocation7 + $0x1a8] sm:$0xff]  ;;  %v142_v33 = vld [vmem:[#allocation7 + $0x1d8] sm:$0xff] }
  0x6a   :  { %v2231_v35 = vpack.c.bf16 %v142_v33, %v136_v32  ;;  %v135_v36 = vld [vmem:[#allocation7 + $0x1a0] sm:$0xff]  ;;  %v148_v38 = vld [vmem:[#allocation7 + $0x208] sm:$0xff]  ;;  %v154_v39 = vld [vmem:[#allocation7 + $0x238] sm:$0xff] }
  0x6b   :  { %2202 = vmatpush1.bf16.msra.mxu1 %v2201_v25  ;;  %2134 = vmatpush1.bf16.msra.mxu0 %v2133_v28  ;;  %v124_v25 = vld [vmem:[#allocation7 + $0x148] sm:$0xff]  ;;  %v2225_v28 = vpack.c.bf16 %v117_v24, %v111_v23  ;;  %v147_v42 = vld [vmem:[#allocation7 + $0x200] sm:$0xff]  ;;  %v166_v45 = vld [vmem:[#allocation7 + $0x298] sm:$0xff] }
  0x6c   :  { %2204 = vmatprep.subr.bf16.mxu1 %v2203_v29  ;;  %2136 = vmatprep.subr.bf16.mxu0 %v2135_v31  ;;  %v2227_v29 = vpack.c.bf16 %v130_v26, %v124_v25  ;;  %v129_v31 = vld [vmem:[#allocation7 + $0x170] sm:$0xff]  ;;  %v160_v44 = vld [vmem:[#allocation7 + $0x268] sm:$0xff]  ;;  %v159_v48 = vld [vmem:[#allocation7 + $0x260] sm:$0xff] }
  0x6d   :  { %v2229_v34 = vpack.c.bf16 %v129_v31, %v123_v30  ;;  %v2239_v47 = vpack.c.bf16 %v166_v45, %v160_v44  ;;  %v172_v50 = vld [vmem:[#allocation7 + $0x2c8] sm:$0xff]  ;;  %v171_v53 = vld [vmem:[#allocation7 + $0x2c0] sm:$0xff]  ;;  %v190_v56 = vld [vmem:[#allocation7 + $0x358] sm:$0xff] }
  0x6e   :  { %v184_v55 = vld [vmem:[#allocation7 + $0x328] sm:$0xff]  ;;  %v202_v62 = vld [vmem:[#allocation7 + $0x3b8] sm:$0xff]  ;;  %v195_v1 = vld [vmem:[#allocation7 + $0x380] sm:$0xff] }
  0x6f   :  { %2206 = vmatpush1.bf16.msra.mxu1 %v2205_v37  ;;  %2138 = vmatpush1.bf16.msra.mxu0 %v2137_v40  ;;  %v141_v37 = vld [vmem:[#allocation7 + $0x1d0] sm:$0xff]  ;;  %v2247_v58 = vpack.c.bf16 %v190_v56, %v184_v55  ;;  %v214_v7 = vld [vmem:[#allocation7 + $0x418] sm:$0xff]  ;;  %v207_v10 = vld [vmem:[#allocation7 + $0x3e0] sm:$0xff] }
  0x70   :  { %2208 = vmatprep.subr.bf16.mxu1 %v2207_v41  ;;  %2140 = vmatprep.subr.bf16.mxu0 %v2139_v43  ;;  %v2233_v40 = vpack.c.bf16 %v141_v37, %v135_v36  ;;  %v2235_v41 = vpack.c.bf16 %v154_v39, %v148_v38  ;;  %v153_v43 = vld [vmem:[#allocation7 + $0x230] sm:$0xff]  ;;  %v226_v15 = vld [vmem:[#allocation7 + $0x478] sm:$0xff]  ;;  %v219_v18 = vld [vmem:[#allocation7 + $0x440] sm:$0xff] }
  0x71   :  { %v2237_v46 = vpack.c.bf16 %v153_v43, %v147_v42  ;;  %v238_v23 = vld [vmem:[#allocation7 + $0x4d8] sm:$0xff]  ;;  %v231_v26 = vld [vmem:[#allocation7 + $0x4a0] sm:$0xff] }
  0x72   :  { %v250_v30 = vld [vmem:[#allocation7 + $0x538] sm:$0xff]  ;;  %v243_v33 = vld [vmem:[#allocation7 + $0x500] sm:$0xff] }
  0x73   :  { %2210 = vmatpush1.bf16.msra.mxu1 %v2209_v49  ;;  %2142 = vmatpush1.bf16.msra.mxu0 %v2141_v51  ;;  %v165_v49 = vld [vmem:[#allocation7 + $0x290] sm:$0xff]  ;;  %v178_v51 = vld [vmem:[#allocation7 + $0x2f8] sm:$0xff]  ;;  %v255_v39 = vld [vmem:[#allocation7 + $0x560] sm:$0xff] }
  0x74   :  { %2212 = vmatprep.subr.bf16.mxu1 %v2211_v52  ;;  %2144 = vmatprep.subr.bf16.mxu0 %v2143_v54  ;;  %v2241_v52 = vpack.c.bf16 %v165_v49, %v159_v48  ;;  %v177_v54 = vld [vmem:[#allocation7 + $0x2f0] sm:$0xff]  ;;  %v262_v36 = vld [vmem:[#allocation7 + $0x598] sm:$0xff]  ;;  %v267_v45 = vld [vmem:[#allocation7 + $0x5c0] sm:$0xff]  ;;  %v277_v48 = vlaneseq }
  0x75   :  { %v2245_v57 = vpack.c.bf16 %v177_v54, %v171_v53  ;;  %v274_v42 = vld [vmem:[#allocation7 + $0x5f8] sm:$0xff] }
  0x76   :  { %v2648_v49 = vshrl.u32 %v277_v48, 7 }
  0x77   :  { %2214 = vmatpush1.bf16.msra.mxu1 %v2213_v59  ;;  %2146 = vmatpush1.bf16.msra.mxu0 %v2145_v60  ;;  %v183_v59 = vld [vmem:[#allocation7 + $0x320] sm:$0xff]  ;;  %v189_v60 = vld [vmem:[#allocation7 + $0x350] sm:$0xff] }
  0x78   :  { %2148 = vmatprep.subr.bf16.mxu0 %v2147_v61  ;;  %v196_v61 = vld [vmem:[#allocation7 + $0x388] sm:$0xff]  ;;  %v2249_v63 = vpack.c.bf16 %v189_v60, %v183_v59 }
  0x79   :  { %v2251_v0 = vpack.c.bf16 %v202_v62, %v196_v61  ;;  %v2665_v62 = vsub.s32 1, %v2648_v49 }
  0x7a   :  { %461 = vmatmul.mubr.f32.vlgmr.msra.gmra.mrb[0].mxu1 %v2612_v2 }
  0x7b   :  { %466 = vmatprep.mubr.f32.mxu1 %v2614_v5  ;;  %2150 = vmatpush1.bf16.msra.mxu0 %v2149_v3  ;;  %v201_v3 = vld [vmem:[#allocation7 + $0x3b0] sm:$0xff] }
  0x7c   :  { %2216 = vmatprep.subr.bf16.mxu0 %v2215_v6  ;;  %v208_v6 = vld [vmem:[#allocation7 + $0x3e8] sm:$0xff]  ;;  %v2253_v8 = vpack.c.bf16 %v201_v3, %v195_v1 }
  0x7d   :  { %v2255_v9 = vpack.c.bf16 %v214_v7, %v208_v6 }
  0x7e   :  { %467 = vmatmul.mubr.f32.gmra.mrb[2].mxu1 %v2618_v11  ;;  %372 = vmatmul.mubr.f32.vlgmr.msra.gmra.mrb[0].mxu0 %v2612_v2 }
  0x7f   :  { %377 = vmatprep.mubr.f32.mxu0 %v2614_v5  ;;  %472 = vmatprep.mubr.f32.mxu1 %v2620_v12 }
  0x80   :  { %2218 = vmatpush1.bf16.msra.mxu0 %v2217_v13  ;;  %v213_v13 = vld [vmem:[#allocation7 + $0x410] sm:$0xff] }
  0x81   :  { %2220 = vmatprep.subr.bf16.mxu0 %v2219_v14  ;;  %v220_v14 = vld [vmem:[#allocation7 + $0x448] sm:$0xff]  ;;  %v2257_v16 = vpack.c.bf16 %v213_v13, %v207_v10 }
  0x82   :  { %378 = vmatmul.mubr.f32.gmra.mrb[2].mxu0 %v2618_v11  ;;  %473 = vmatmul.mubr.f32.gmra.mrb[4].mxu1 %v2626_v19  ;;  %v2259_v17 = vpack.c.bf16 %v226_v15, %v220_v14 }
  0x83   :  { %478 = vmatprep.mubr.f32.mxu1 %v2628_v20  ;;  %383 = vmatprep.mubr.f32.mxu0 %v2620_v12 }
  0x84   :  { %2222 = vmatpush1.bf16.msra.mxu0 %v2221_v21  ;;  %v225_v21 = vld [vmem:[#allocation7 + $0x470] sm:$0xff] }
  0x85   :  { %2224 = vmatprep.subr.bf16.mxu0 %v2223_v22  ;;  %v232_v22 = vld [vmem:[#allocation7 + $0x4a8] sm:$0xff]  ;;  %v2261_v24 = vpack.c.bf16 %v225_v21, %v219_v18 }
  0x86   :  { %479 = vmatmul.mubr.f32.gmra.mrb[6].mxu1 %v2633_v27  ;;  %384 = vmatmul.mubr.f32.gmra.mrb[4].mxu0 %v2626_v19  ;;  %v2263_v25 = vpack.c.bf16 %v238_v23, %v232_v22 }
  0x87   :  { %389 = vmatprep.mubr.f32.mxu0 %v2628_v20 }
  0x88   :  { %2226 = vmatpush1.bf16.msra.mxu0 %v2225_v28  ;;  %v237_v28 = vld [vmem:[#allocation7 + $0x4d0] sm:$0xff] }
  0x89   :  { %2228 = vmatprep.subr.bf16.mxu0 %v2227_v29  ;;  %v244_v29 = vld [vmem:[#allocation7 + $0x508] sm:$0xff]  ;;  %v2265_v31 = vpack.c.bf16 %v237_v28, %v231_v26 }
  0x8a   :  { %390 = vmatmul.mubr.f32.gmra.mrb[6].mxu0 %v2633_v27  ;;  %v2267_v32 = vpack.c.bf16 %v250_v30, %v244_v29 }
  0x8b   :  { %549 = vmatprep.mubr.f32.mxu0 %v2608_v4  ;;  %v2243_v4 = vpack.c.bf16 %v178_v51, %v172_v50  ;;  %v287_v50 = vsub.s32 2, %v2648_v49  ;;  %v2652_v51 = vsub.s32 0, %v2648_v49 }
  0x8c   :  { %2230 = vmatpush1.bf16.msra.mxu0 %v2229_v34  ;;  %v249_v34 = vld [vmem:[#allocation7 + $0x530] sm:$0xff] }
  0x8d   :  { %2232 = vmatprep.subr.bf16.mxu0 %v2231_v35  ;;  %v256_v35 = vld [vmem:[#allocation7 + $0x568] sm:$0xff]  ;;  %v2269_v37 = vpack.c.bf16 %v249_v34, %v243_v33 }
  0x8e   :  { %v2271_v38 = vpack.c.bf16 %v262_v36, %v256_v35 }
  0x90   :  { %2234 = vmatpush1.bf16.msra.mxu0 %v2233_v40  ;;  %v261_v40 = vld [vmem:[#allocation7 + $0x590] sm:$0xff] }
  0x91   :  { %2236 = vmatprep.subr.bf16.mxu0 %v2235_v41  ;;  %v268_v41 = vld [vmem:[#allocation7 + $0x5c8] sm:$0xff]  ;;  %v2273_v43 = vpack.c.bf16 %v261_v40, %v255_v39 }
  0x92   :  { %v2275_v44 = vpack.c.bf16 %v274_v42, %v268_v41 }
  0x94   :  { %2238 = vmatpush1.bf16.msra.mxu0 %v2237_v46  ;;  %v273_v46 = vld [vmem:[#allocation7 + $0x5f0] sm:$0xff] }
  0x95   :  { %2240 = vmatprep.subr.bf16.mxu0 %v2239_v47  ;;  %v2277_v47 = vpack.c.bf16 %v273_v46, %v267_v45 }
  0x98   :  { %2242 = vmatpush1.bf16.msra.mxu0 %v2241_v52 }
  0x99   :  { %2244 = vmatprep.subr.bf16.mxu0 %v2243_v4 }
  0x9c   :  { %2246 = vmatpush1.bf16.msra.mxu0 %v2245_v57 }
  0x9d   :  { %2248 = vmatprep.subr.bf16.mxu0 %v2247_v58 }
  0xa0   :  { %2250 = vmatpush1.bf16.msra.mxu0 %v2249_v63 }
  0xa1   :  { %2252 = vmatprep.subr.bf16.mxu0 %v2251_v0 }
  0xa4   :  { %2254 = vmatpush1.bf16.msra.mxu0 %v2253_v8 }
  0xa5   :  { %2256 = vmatprep.subr.bf16.mxu0 %v2255_v9 }
  0xa8   :  { %2258 = vmatpush1.bf16.msra.mxu0 %v2257_v16 }
  0xa9   :  { %2260 = vmatprep.subr.bf16.mxu0 %v2259_v17 }
  0xac   :  { %2262 = vmatpush1.bf16.msra.mxu0 %v2261_v24 }
  0xad   :  { %2264 = vmatprep.subr.bf16.mxu0 %v2263_v25 }
  0xb0   :  { %2266 = vmatpush1.bf16.msra.mxu0 %v2265_v31  ;;  %v295_v31 = vsub.s32 4, %v2648_v49 }
  0xb1   :  { %2268 = vmatprep.subr.bf16.mxu0 %v2267_v32  ;;  %v299_v32 = vsub.s32 5, %v2648_v49 }
  0xb4   :  { %2270 = vmatpush1.bf16.msra.mxu0 %v2269_v37 }
  0xb5   :  { %2272 = vmatprep.subr.bf16.mxu0 %v2271_v38 }
  0xb8   :  { %2274 = vmatpush1.bf16.msra.mxu0 %v2273_v43 }
  0xb9   :  { %2276 = vmatprep.subr.bf16.mxu0 %v2275_v44 }
  0xbc   :  { %2278 = vmatpush1.bf16.msra.mxu0 %v2277_v47 }
  0xbf   :  { %550 = vmatmul.mubr.f32.vlgmr.msra.gmra.mrb[8].mxu0 %v2612_v2  ;;  %v2657_v2 = vld [vmem:[%s3137_s4] sm:$0x3f] }
  0xc0   :  { %555 = vmatprep.mubr.f32.mxu0 %v2614_v5  ;;  %v291_v5 = vsub.s32 3, %v2648_v49  ;;  %v284_v7 = vrot.slane %v2657_v2, %v2665_v62  ;;  %v296_v33 = vrot.slane %v2657_v2, %v295_v31  ;;  %v300_v35 = vrot.slane %v2657_v2, %v299_v32 }
  0xc3   :  { %556 = vmatmul.mubr.f32.gmra.mrb[10].mxu0 %v2618_v11 }
  0xc4   :  { %561 = vmatprep.mubr.f32.mxu0 %v2620_v12  ;;  %v288_v12 = vrot.slane %v2657_v2, %v287_v50 }
  0xc7   :  { %562 = vmatmul.mubr.f32.gmra.mrb[12].mxu0 %v2626_v19 }
  0xc8   :  { %567 = vmatprep.mubr.f32.mxu0 %v2628_v20  ;;  %v280_v20 = vrot.slane %v2657_v2, %v2652_v51 }
  0xcb   :  { %568 = vmatmul.mubr.f32.gmra.mrb[14].mxu0 %v2633_v27  ;;  %v292_v27 = vrot.slane %v2657_v2, %v291_v5 }
 0x14d   :  { %v462_v11 = vpop.f32.mrb[0].mxu1 }
 0x14e   :  { %v464_v19 = vpop.f32.mrb[1].mxu1  ;;  %v463_v53 = vadd.f32 %v462_v11, %v288_v12 }
 0x14f   :  { %v465_v58 = vadd.f32 %v464_v19, %v292_v27 }
 0x151   :  { %v468_v52 = vpop.f32.mrb[2].mxu1  ;;  %v373_v4 = vpop.f32.mrb[0].mxu0 }
 0x152   :  { %v469_v54 = vadd.f32 %v468_v52, %v288_v12  ;;  %v470_v55 = vpop.f32.mrb[3].mxu1  ;;  %v374_v56 = vadd.f32 %v373_v4, %v280_v20  ;;  %v375_v57 = vpop.f32.mrb[1].mxu0 }
 0x153   :  { %v471_v59 = vadd.f32 %v470_v55, %v292_v27  ;;  %v376_v21 = vadd.f32 %v375_v57, %v284_v7 }
 0x154   :  { %v2279_v60 = vpack.c.bf16 %v469_v54, %v463_v53  ;;  %2035 = vmatprep.mubr.f32.mxu0 %v374_v56 }
 0x155   :  { %v2287_v61 = vpack.c.bf16 %v471_v59, %v465_v58  ;;  %v379_v63 = vpop.f32.mrb[2].mxu0  ;;  %v474_v0 = vpop.f32.mrb[4].mxu1  ;;  %v1994_v59 = vld [vmem:[%s3135_s2 + $0x1] ss:$0 sm:$0xff] }
 0x156   :  { %2280 = vmatprep.subr.bf16.mxu0 %v2279_v60  ;;  %v476_v1 = vpop.f32.mrb[5].mxu1  ;;  %v381_v3 = vpop.f32.mrb[3].mxu0  ;;  %v475_v6 = vadd.f32 %v474_v0, %v288_v12  ;;  %v380_v13 = vadd.f32 %v379_v63, %v280_v20 }
 0x157   :  { %2282 = vmatpush3.bf16.xpose.msra.mxu0 %v2279_v60  ;;  %v477_v8 = vadd.f32 %v476_v1, %v292_v27  ;;  %v382_v26 = vadd.f32 %v381_v3, %v284_v7 }
 0x158   :  { %2288 = vmatprep.subr.bf16.mxu0 %v2287_v61 }
 0x159   :  { %v480_v9 = vpop.f32.mrb[6].mxu1  ;;  %v385_v10 = vpop.f32.mrb[4].mxu0 }
 0x15a   :  { %v481_v14 = vadd.f32 %v480_v9, %v288_v12  ;;  %v482_v15 = vpop.f32.mrb[7].mxu1  ;;  %v387_v16 = vpop.f32.mrb[5].mxu0  ;;  %v386_v25 = vadd.f32 %v385_v10, %v280_v20  ;;  %v1989_v12 = vld [vmem:[%s3135_s2] ss:$0 sm:$0xff] }
 0x15b   :  { %v483_v17 = vadd.f32 %v482_v15, %v292_v27  ;;  %v388_v29 = vadd.f32 %v387_v16, %v284_v7  ;;  %v2519_v15 = vmov 0  }
 0x15c   :  { %v2295_v18 = vpack.c.bf16 %v481_v14, %v475_v6  ;;  %2385 = vset.pattern.permute.xlu1 %v2519_v15  ;;  %2384 = vset.pattern.permute.xlu0 %v2519_v15 }
 0x15d   :  { %v2303_v22 = vpack.c.bf16 %v483_v17, %v477_v8  ;;  %v391_v23 = vpop.f32.mrb[6].mxu0 }
 0x15e   :  { %2036 = vmatmul.mubr.f32.vlgmr.msra.gmra.mrb[16].mxu0 %v380_v13  ;;  %v393_v24 = vpop.f32.mrb[7].mxu0  ;;  %v392_v28 = vadd.f32 %v391_v23, %v280_v20 }
 0x15f   :  { %2290 = vmatpush3.bf16.xpose.msra.mxu0 %v2287_v61  ;;  %2049 = vmatprep.mubr.f32.mxu0 %v376_v21  ;;  %v394_v30 = vadd.f32 %v393_v24, %v284_v7 }
 0x160   :  { %2296 = vmatprep.subr.bf16.mxu0 %v2295_v18 }
 0x166   :  { %2050 = vmatmul.mubr.f32.vlgmr.msra.gmra.mrb[18].mxu0 %v382_v26 }
 0x167   :  { %2298 = vmatpush3.bf16.xpose.msra.mxu0 %v2295_v18  ;;  %2063 = vmatprep.mubr.f32.mxu0 %v386_v25 }
 0x168   :  { %2304 = vmatprep.subr.bf16.mxu0 %v2303_v22 }
 0x16e   :  { %2064 = vmatmul.mubr.f32.vlgmr.msra.gmra.mrb[20].mxu0 %v392_v28 }
 0x16f   :  { %2306 = vmatpush3.bf16.xpose.msra.mxu0 %v2303_v22  ;;  %2077 = vmatprep.mubr.f32.mxu0 %v388_v29 }
 0x176   :  { %2078 = vmatmul.mubr.f32.vlgmr.msra.gmra.mrb[22].mxu0 %v394_v30 }
 0x192   :  { %v551_v34 = vpop.f32.mrb[8].mxu0 }
 0x193   :  { %v553_v36 = vpop.f32.mrb[9].mxu0  ;;  %v2673_v37 = vadd.f32 %v551_v34, %v296_v33 }
 0x194   :  { %v2675_v38 = vadd.f32 %v553_v36, %v300_v35 }
 0x196   :  { %v557_v39 = vpop.f32.mrb[10].mxu0 }
 0x197   :  { %v2677_v40 = vadd.f32 %v557_v39, %v296_v33  ;;  %v559_v41 = vpop.f32.mrb[11].mxu0 }
 0x198   :  { %v2679_v42 = vadd.f32 %v559_v41, %v300_v35 }
 0x199   :  { %v2283_v43 = vpack.c.bf16 %v2677_v40, %v2673_v37 }
 0x19a   :  { %v2685_v44 = vpack.c.bf16 %v2679_v42, %v2675_v38  ;;  %v563_v45 = vpop.f32.mrb[12].mxu0 }
 0x19b   :  { %v2687_v46 = vadd.f32 %v563_v45, %v296_v33  ;;  %2284 = vmatprep.subr.bf16.mxu1 %v2283_v43  ;;  %v565_v47 = vpop.f32.mrb[13].mxu0 }
 0x19c   :  { %v2689_v48 = vadd.f32 %v565_v47, %v300_v35  ;;  %2286 = vmatpush3.bf16.msra.mxu1 %v2283_v43 }
 0x19d   :  { %2292 = vmatprep.subr.bf16.mxu1 %v2685_v44 }
 0x19e   :  { %v569_v50 = vpop.f32.mrb[14].mxu0 }
 0x19f   :  { %v2692_v2 = vadd.f32 %v569_v50, %v296_v33  ;;  %v571_v5 = vpop.f32.mrb[15].mxu0 }
 0x1a0   :  { %v2694_v11 = vadd.f32 %v571_v5, %v300_v35 }
 0x1a1   :  { %v2299_v45 = vpack.c.bf16 %v2692_v2, %v2687_v46 }
 0x231   :  { %v2037_v19 = vpop.f32.mrb[16].mxu0 }
 0x232   :  { %v1097_v20 = vpop.f32.mrb[17].mxu0  ;;  %v1103_v52 = vadd.f32 %v2037_v19, %v1989_v12 }
 0x233   :  { %v1098_v27 = vadd.f32 %v1989_v12, %v1097_v20 }
 0x234   :  { %v1110_v54 = vsel %vm1106_vm0, %v1103_v52, -inf }
 0x235   :  { %v1107_v4 = vsel %vm1106_vm0, %v1098_v27, -inf }
 0x236   :  { %1108 = vmax.xlane.f32.xlu0 %v1107_v4 }
 0x239   :  { %v2051_v53 = vpop.f32.mrb[18].mxu0 }
 0x23a   :  { %v1284_v55 = vpop.f32.mrb[19].mxu0  ;;  %1111 = vmax.xlane.f32.xlu0 %v1110_v54  ;;  %v1290_v57 = vadd.f32 %v2051_v53, %v1989_v12  ;;  %v2307_v54 = vpack.c.bf16 %v2694_v11, %v2689_v48 }
 0x23b   :  { %v1285_v56 = vadd.f32 %v1989_v12, %v1284_v55 }
 0x23c   :  { %v1296_v61 = vsel %vm1106_vm0, %v1290_v57, -inf }
 0x23d   :  { %v1293_v58 = vsel %vm1106_vm0, %v1285_v56, -inf }
 0x23e   :  { %1294 = vmax.xlane.f32.xlu1 %v1293_v58 }
 0x241   :  { %v2065_v60 = vpop.f32.mrb[20].mxu0 }
 0x242   :  { %v1482_v63 = vadd.f32 %v2065_v60, %v1994_v59  ;;  %v1476_v0 = vpop.f32.mrb[21].mxu0  ;;  %1297 = vmax.xlane.f32.xlu1 %v1296_v61 }
 0x243   :  { %v1477_v1 = vadd.f32 %v1994_v59, %v1476_v0  ;;  %v1787_v0 = vld [vmem:[#allocation9 + $0x8] sm:$0xff] }
 0x244   :  { %v1488_v3 = vsel %vm1106_vm0, %v1482_v63, -inf }
 0x245   :  { %v1485_v6 = vsel %vm1106_vm0, %v1477_v1, -inf }
 0x246   :  { %1489 = vmax.xlane.f32.xlu1 %v1488_v3  ;;  %1486 = vmax.xlane.f32.xlu0 %v1485_v6  ;;  %v80_v3 = vld [vmem:[%s3134_s1 + $0x8] sm:$0xff] }
 0x249   :  { %v2079_v7 = vpop.f32.mrb[22].mxu0 }
 0x24a   :  { %v1668_v8 = vadd.f32 %v2079_v7, %v1994_v59  ;;  %v1662_v9 = vpop.f32.mrb[23].mxu0  ;;  %v1786_v7 = vld [vmem:[#allocation9] sm:$0xff] }
 0x24b   :  { %v1663_v10 = vadd.f32 %v1994_v59, %v1662_v9 }
 0x24c   :  { %v1674_v13 = vsel %vm1106_vm0, %v1668_v8, -inf }
 0x24d   :  { %1675 = vmax.xlane.f32.xlu1 %v1674_v13  ;;  %v1671_v14 = vsel %vm1106_vm0, %v1663_v10, -inf  ;;  %v1793_v13 = vld [vmem:[#allocation9 + $0x38] sm:$0xff] }
 0x24e   :  { %1672 = vmax.xlane.f32.xlu0 %v1671_v14  ;;  %v81_v14 = vld [vmem:[%s3134_s1 + $0x10] sm:$0xff] }
 0x2c3   :  { %v1109_v16 = vpop.xlane.xlu0 %1108 }
 0x2c4   :  { %v1113_v17 = vsub.f32 %v1098_v27, %v1109_v16  ;;  %v1790_v16 = vld [vmem:[#allocation9 + $0x20] sm:$0xff] }
 0x2c6   :  { %v1115_v18 = vmul.f32 1.442695, %v1113_v17  ;;  %v1792_v17 = vld [vmem:[#allocation9 + $0x30] sm:$0xff] }
 0x2c7   :  { %v1112_v21 = vpop.xlane.xlu0 %1111 }
 0x2c8   :  { %2386 = vpow2.f32 %v1115_v18  ;;  %v1114_v22 = vsub.f32 %v1103_v52, %v1112_v21  ;;  %v2317_v18 = vpack.c.bf16 %v1792_v17, %v1790_v16  ;;  %v1795_v21 = vld [vmem:[#allocation9 + $0x48] sm:$0xff]  ;;  %v1829_v16 = vld [vmem:[#allocation9 + $0x158] sm:$0xff] }
 0x2ca   :  { %v1117_v23 = vmul.f32 1.442695, %v1114_v22  ;;  %v1797_v22 = vld [vmem:[#allocation9 + $0x58] sm:$0xff] }
 0x2cb   :  { %v1295_v24 = vpop.xlane.xlu1 %1294 }
 0x2cc   :  { %2388 = vpow2.f32 %v1117_v23  ;;  %v1299_v25 = vsub.f32 %v1285_v56, %v1295_v24  ;;  %v82_v23 = vld [vmem:[%s3134_s1 + $0x18] sm:$0xff]  ;;  %v2319_v24 = vpack.c.bf16 %v1797_v22, %v1795_v21  ;;  %v1826_v21 = vld [vmem:[#allocation9 + $0x140] sm:$0xff]  ;;  %v1828_v22 = vld [vmem:[#allocation9 + $0x150] sm:$0xff] }
 0x2ce   :  { %v1301_v26 = vmul.f32 1.442695, %v1299_v25  ;;  %v1794_v25 = vld [vmem:[#allocation9 + $0x40] sm:$0xff] }
 0x2cf   :  { %v1298_v28 = vpop.xlane.xlu1 %1297 }
 0x2d0   :  { %2390 = vpow2.f32 %v1301_v26  ;;  %v1300_v29 = vsub.f32 %v1290_v57, %v1298_v28  ;;  %v1796_v26 = vld [vmem:[#allocation9 + $0x50] sm:$0xff] }
 0x2d1   :  { %v2321_v28 = vpack.c.bf16 %v1796_v26, %v1794_v25  ;;  %v2353_v25 = vpack.c.bf16 %v1828_v22, %v1826_v21 }
 0x2d2   :  { %v2387_v30 = vpop.eup %2386  ;;  %v1303_v31 = vmul.f32 1.442695, %v1300_v29  ;;  %v79_v29 = vld [vmem:[%s3134_s1] sm:$0xff] }
 0x2d3   :  { %v1490_v32 = vpop.xlane.xlu1 %1489  ;;  %2042 = vmatprep.mubr.msk.f32.mxu1 %vm1106_vm0, %v2387_v30  ;;  %v1487_v33 = vpop.xlane.xlu0 %1486  ;;  %v1119_v34 = vsel %vm1106_vm0, %v2387_v30, 0.0  ;;  %v1799_v30 = vld [vmem:[#allocation9 + $0x68] sm:$0xff] }
 0x2d4   :  { %2392 = vpow2.f32 %v1303_v31  ;;  %v1492_v35 = vsub.f32 %v1482_v63, %v1490_v32  ;;  %v1491_v36 = vsub.f32 %v1477_v1, %v1487_v33  ;;  %1120 = vadd.xlane.f32.xlu1 %v1119_v34  ;;  %v1789_v1 = vld [vmem:[#allocation9 + $0x18] sm:$0xff]  ;;  %v1798_v33 = vld [vmem:[#allocation9 + $0x60] sm:$0xff]  ;;  %v1800_v34 = vld [vmem:[#allocation9 + $0x70] sm:$0xff] }
 0x2d5   :  { %v2311_v6 = vpack.c.bf16 %v1789_v1, %v1787_v0  ;;  %v1801_v31 = vld [vmem:[#allocation9 + $0x78] sm:$0xff]  ;;  %v1818_v1 = vld [vmem:[#allocation9 + $0x100] sm:$0xff] }
 0x2d6   :  { %v2389_v39 = vpop.eup %2388  ;;  %v1495_v41 = vmul.f32 1.442695, %v1492_v35  ;;  %v1493_v43 = vmul.f32 1.442695, %v1491_v36  ;;  %v2323_v32 = vpack.c.bf16 %v1801_v31, %v1799_v30  ;;  %v2325_v35 = vpack.c.bf16 %v1800_v34, %v1798_v33  ;;  %v1803_v36 = vld [vmem:[#allocation9 + $0x88] sm:$0xff]  ;;  %v1821_v0 = vld [vmem:[#allocation9 + $0x118] sm:$0xff] }
 0x2d7   :  { %2043 = vmatmul.mubr.msk.f32.vlgmr.msra.gmra.mrb[8].mxu1 %vm1106_vm0, %v2389_v39  ;;  %v1122_v47 = vsel %vm1106_vm0, %v2389_v39, 0.0  ;;  %v1805_v39 = vld [vmem:[#allocation9 + $0x98] sm:$0xff]  ;;  %v1835_v30 = vld [vmem:[#allocation9 + $0x188] sm:$0xff]  ;;  %v1834_v34 = vld [vmem:[#allocation9 + $0x180] sm:$0xff] }
 0x2d8   :  { %2394 = vpow2.f32 %v1495_v41  ;;  %2294 = vmatpush3.bf16.msra.mxu1 %v2685_v44  ;;  %1123 = vadd.xlane.f32.xlu1 %v1122_v47  ;;  %v2327_v41 = vpack.c.bf16 %v1805_v39, %v1803_v36  ;;  %v1837_v31 = vld [vmem:[#allocation9 + $0x198] sm:$0xff]  ;;  %v1839_v36 = vld [vmem:[#allocation9 + $0x1a8] sm:$0xff] }
 0x2d9   :  { %2396 = vpow2.f32 %v1493_v43  ;;  %2300 = vmatprep.subr.bf16.mxu1 %v2299_v45  ;;  %v1802_v43 = vld [vmem:[#allocation9 + $0x80] sm:$0xff]  ;;  %v2359_v33 = vpack.c.bf16 %v1837_v31, %v1835_v30  ;;  %v1841_v39 = vld [vmem:[#allocation9 + $0x1b8] sm:$0xff] }
 0x2da   :  { %v2391_v50 = vpop.eup %2390  ;;  %v1676_v5 = vpop.xlane.xlu1 %1675 }
 0x2db   :  { %v1678_v12 = vsub.f32 %v1668_v8, %v1676_v5  ;;  %2056 = vmatprep.mubr.msk.f32.mxu1 %vm1106_vm0, %v2391_v50  ;;  %v1673_v19 = vpop.xlane.xlu0 %1672  ;;  %v1305_v20 = vsel %vm1106_vm0, %v2391_v50, 0.0  ;;  %v1788_v8 = vld [vmem:[#allocation9 + $0x10] sm:$0xff]  ;;  %v1807_v50 = vld [vmem:[#allocation9 + $0xa8] sm:$0xff]  ;;  %v1809_v5 = vld [vmem:[#allocation9 + $0xb8] sm:$0xff] }
 0x2dc   :  { %v1677_v27 = vsub.f32 %v1663_v10, %v1673_v19  ;;  %1306 = vadd.xlane.f32.xlu0 %v1305_v20  ;;  %v2313_v9 = vpack.c.bf16 %v1788_v8, %v1786_v7  ;;  %v1791_v10 = vld [vmem:[#allocation9 + $0x28] sm:$0xff]  ;;  %v1806_v19 = vld [vmem:[#allocation9 + $0xa0] sm:$0xff]  ;;  %v1808_v20 = vld [vmem:[#allocation9 + $0xb0] sm:$0xff] }
 0x2dd   :  { %v1681_v52 = vmul.f32 1.442695, %v1678_v12  ;;  %v2315_v15 = vpack.c.bf16 %v1793_v13, %v1791_v10  ;;  %v2331_v12 = vpack.c.bf16 %v1809_v5, %v1807_v50  ;;  %v1823_v7 = vld [vmem:[#allocation9 + $0x128] sm:$0xff]  ;;  %v1825_v8 = vld [vmem:[#allocation9 + $0x138] sm:$0xff]  ;;  %v1822_v13 = vld [vmem:[#allocation9 + $0x120] sm:$0xff] }
 0x2de   :  { %v2393_v4 = vpop.eup %2392  ;;  %v1679_v53 = vmul.f32 1.442695, %v1677_v27  ;;  %v2333_v27 = vpack.c.bf16 %v1808_v20, %v1806_v19  ;;  %v2347_v10 = vpack.c.bf16 %v1825_v8, %v1823_v7  ;;  %v1843_v50 = vld [vmem:[#allocation9 + $0x1c8] sm:$0xff]  ;;  %v1845_v5 = vld [vmem:[#allocation9 + $0x1d8] sm:$0xff]  ;;  %v1842_v20 = vld [vmem:[#allocation9 + $0x1c0] sm:$0xff] }
 0x2df   :  { %2057 = vmatmul.mubr.msk.f32.vlgmr.msra.gmra.mrb[10].mxu1 %vm1106_vm0, %v2393_v4  ;;  %v1308_v44 = vsel %vm1106_vm0, %v2393_v4, 0.0  ;;  %v1813_v4 = vld [vmem:[#allocation9 + $0xd8] sm:$0xff]  ;;  %v2367_v19 = vpack.c.bf16 %v1845_v5, %v1843_v50  ;;  %v1986_v50 = vld [vmem:[%s3138_s5 + $0x1] ss:$8 sm:$0x3] }
 0x2e0   :  { %2398 = vpow2.f32 %v1679_v53  ;;  %2302 = vmatpush3.bf16.msra.mxu1 %v2299_v45  ;;  %1309 = vadd.xlane.f32.xlu0 %v1308_v44  ;;  %v1804_v45 = vld [vmem:[#allocation9 + $0x90] sm:$0xff]  ;;  %v1987_v5 = vld [vmem:[%s3138_s5 + $0x2] ss:$8 sm:$0x3] }
 0x2e1   :  { %2400 = vpow2.f32 %v1681_v52  ;;  %2308 = vmatprep.subr.bf16.mxu1 %v2307_v54  ;;  %v2329_v47 = vpack.c.bf16 %v1804_v45, %v1802_v43  ;;  %v1811_v52 = vld [vmem:[#allocation9 + $0xc8] sm:$0xff]  ;;  %v1812_v44 = vld [vmem:[#allocation9 + $0xd0] sm:$0xff]  ;;  %v2363_v43 = vpack.c.bf16 %v1841_v39, %v1839_v36  ;;  %v1838_v45 = vld [vmem:[#allocation9 + $0x1a0] sm:$0xff]  ;;  %v629_v39 = vadd.s32 16, %v2648_v49 }
 0x2e2   :  { %v2395_v55 = vpop.eup %2394  ;;  %v2335_v53 = vpack.c.bf16 %v1813_v4, %v1811_v52  ;;  %v1847_v52 = vld [vmem:[#allocation9 + $0x1e8] sm:$0xff]  ;;  %v1849_v4 = vld [vmem:[#allocation9 + $0x1f8] sm:$0xff] }
 0x2e3   :  { %v2397_v56 = vpop.eup %2396  ;;  %v1500_v58 = vsel %vm1106_vm0, %v2395_v55, 0.0 }
 0x2e4   :  { %2070 = vmatprep.mubr.msk.f32.mxu1 %vm1106_vm0, %v2397_v56  ;;  %v1497_v57 = vsel %vm1106_vm0, %v2397_v56, 0.0  ;;  %v1815_v56 = vld [vmem:[#allocation9 + $0xe8] sm:$0xff] }
 0x2e5   :  { %2071 = vmatmul.mubr.msk.f32.vlgmr.msra.gmra.mrb[12].mxu1 %vm1106_vm0, %v2395_v55  ;;  %1498 = vadd.xlane.f32.xlu1 %v1497_v57  ;;  %v1817_v57 = vld [vmem:[#allocation9 + $0xf8] sm:$0xff] }
 0x2e6   :  { %2310 = vmatpush3.bf16.msra.mxu1 %v2307_v54  ;;  %v1810_v54 = vld [vmem:[#allocation9 + $0xc0] sm:$0xff] }
 0x2e7   :  { %2312 = vmatprep.subr.bf16.mxu1 %v2311_v6  ;;  %v2337_v55 = vpack.c.bf16 %v1812_v44, %v1810_v54  ;;  %v1820_v6 = vld [vmem:[#allocation9 + $0x110] sm:$0xff]  ;;  %v2371_v54 = vpack.c.bf16 %v1849_v4, %v1847_v52  ;;  %v1846_v44 = vld [vmem:[#allocation9 + $0x1e0] sm:$0xff] }
 0x2e9   :  { %1501 = vadd.xlane.f32.xlu1 %v1500_v58  ;;  %v2339_v58 = vpack.c.bf16 %v1817_v57, %v1815_v56 }
 0x2ea   :  { %v2399_v59 = vpop.eup %2398 }
 0x2eb   :  { %v2401_v60 = vpop.eup %2400  ;;  %2084 = vmatprep.mubr.msk.f32.mxu1 %vm1106_vm0, %v2399_v59  ;;  %v1683_v61 = vsel %vm1106_vm0, %v2399_v59, 0.0  ;;  %v1814_v59 = vld [vmem:[#allocation9 + $0xe0] sm:$0xff] }
 0x2ec   :  { %2085 = vmatmul.mubr.msk.f32.vlgmr.msra.gmra.mrb[14].mxu1 %vm1106_vm0, %v2401_v60  ;;  %1684 = vadd.xlane.f32.xlu0 %v1683_v61  ;;  %v1686_v63 = vsel %vm1106_vm0, %v2401_v60, 0.0  ;;  %v1816_v60 = vld [vmem:[#allocation9 + $0xf0] sm:$0xff] }
 0x2ed   :  { %2314 = vmatpush1.bf16.msra.mxu1 %v2313_v9  ;;  %v2341_v61 = vpack.c.bf16 %v1816_v60, %v1814_v59  ;;  %v2345_v9 = vpack.c.bf16 %v1820_v6, %v1818_v1 }
 0x2ee   :  { %2316 = vmatprep.subr.bf16.mxu1 %v2315_v15  ;;  %v1827_v15 = vld [vmem:[#allocation9 + $0x148] sm:$0xff] }
 0x2f0   :  { %1687 = vadd.xlane.f32.xlu0 %v1686_v63  ;;  %v1819_v63 = vld [vmem:[#allocation9 + $0x108] sm:$0xff] }
 0x2f1   :  { %2318 = vmatpush1.bf16.msra.mxu1 %v2317_v18  ;;  %v2351_v18 = vpack.c.bf16 %v1829_v16, %v1827_v15 }
 0x2f2   :  { %2320 = vmatprep.subr.bf16.mxu1 %v2319_v24  ;;  %v1833_v24 = vld [vmem:[#allocation9 + $0x178] sm:$0xff] }
 0x2f5   :  { %2322 = vmatpush1.bf16.msra.mxu1 %v2321_v28  ;;  %v1830_v28 = vld [vmem:[#allocation9 + $0x160] sm:$0xff] }
 0x2f6   :  { %2324 = vmatprep.subr.bf16.mxu1 %v2323_v32 }
 0x2f9   :  { %2326 = vmatpush1.bf16.msra.mxu1 %v2325_v35  ;;  %v1836_v35 = vld [vmem:[#allocation9 + $0x190] sm:$0xff] }
 0x2fa   :  { %605 = vperm.xlu1 %2385, %v80_v3   ;;  %2328 = vmatprep.subr.bf16.mxu1 %v2327_v41  ;;  %v2343_v3 = vpack.c.bf16 %v1821_v0, %v1819_v63  ;;  %v2361_v41 = vpack.c.bf16 %v1836_v35, %v1834_v34  ;;  %v1985_v35 = vld [vmem:[%s3138_s5 + $0x4] ss:$8 sm:$0x3] }
 0x2fd   :  { %2330 = vmatpush1.bf16.msra.mxu1 %v2329_v47  ;;  %v1840_v47 = vld [vmem:[#allocation9 + $0x1b0] sm:$0xff] }
 0x2fe   :  { %610 = vperm.xlu1 %2385, %v81_v14   ;;  %2332 = vmatprep.subr.bf16.mxu1 %v2331_v12  ;;  %v1824_v14 = vld [vmem:[#allocation9 + $0x130] sm:$0xff]  ;;  %v2365_v12 = vpack.c.bf16 %v1840_v47, %v1838_v45  ;;  %v2757_v45 = vrot.slane %v1985_v35, %v2652_v51  ;;  %v2760_v47 = vrot.slane %v1985_v35, %v2665_v62 }
 0x2ff   :  { %v2349_v17 = vpack.c.bf16 %v1824_v14, %v1822_v13 }
 0x301   :  { %2334 = vmatpush1.bf16.msra.mxu1 %v2333_v27  ;;  %v1844_v27 = vld [vmem:[#allocation9 + $0x1d0] sm:$0xff] }
 0x302   :  { %615 = vperm.xlu1 %2385, %v82_v23   ;;  %2336 = vmatprep.subr.bf16.mxu1 %v2335_v53  ;;  %v1831_v23 = vld [vmem:[#allocation9 + $0x168] sm:$0xff]  ;;  %v2369_v53 = vpack.c.bf16 %v1844_v27, %v1842_v20 }
 0x303   :  { %v2355_v26 = vpack.c.bf16 %v1833_v24, %v1831_v23 }
 0x305   :  { %2338 = vmatpush1.bf16.msra.mxu1 %v2337_v55  ;;  %v1848_v55 = vld [vmem:[#allocation9 + $0x1f0] sm:$0xff] }
 0x306   :  { %600 = vperm.xlu0 %2384, %v79_v29   ;;  %2340 = vmatprep.subr.bf16.mxu1 %v2339_v58  ;;  %v1832_v29 = vld [vmem:[#allocation9 + $0x170] sm:$0xff]  ;;  %v2373_v56 = vpack.c.bf16 %v1848_v55, %v1846_v44  ;;  %v2817_v55 = vrot.slane %v1987_v5, %v2665_v62 }
 0x307   :  { %v2357_v32 = vpack.c.bf16 %v1832_v29, %v1830_v28 }
 0x309   :  { %2342 = vmatpush1.bf16.msra.mxu1 %v2341_v61 }
 0x30a   :  { %2344 = vmatprep.subr.bf16.mxu1 %v2343_v3 }
 0x30d   :  { %2346 = vmatpush1.bf16.msra.mxu1 %v2345_v9 }
 0x30e   :  { %2348 = vmatprep.subr.bf16.mxu1 %v2347_v10 }
 0x311   :  { %2350 = vmatpush1.bf16.msra.mxu1 %v2349_v17 }
 0x312   :  { %2352 = vmatprep.subr.bf16.mxu1 %v2351_v18 }
 0x315   :  { %2354 = vmatpush1.bf16.msra.mxu1 %v2353_v25 }
 0x316   :  { %2356 = vmatprep.subr.bf16.mxu1 %v2355_v26 }
 0x319   :  { %2358 = vmatpush1.bf16.msra.mxu1 %v2357_v32 }
 0x31a   :  { %2360 = vmatprep.subr.bf16.mxu1 %v2359_v33 }
 0x31d   :  { %2362 = vmatpush1.bf16.msra.mxu1 %v2361_v41 }
 0x31e   :  { %2364 = vmatprep.subr.bf16.mxu1 %v2363_v43  ;;  %v753_v43 = vld [vmem:[%s3138_s5] ss:$8 sm:$0x3] }
 0x321   :  { %2366 = vmatpush1.bf16.msra.mxu1 %v2365_v12  ;;  %v1988_v12 = vld [vmem:[%s3138_s5 + $0x3] ss:$8 sm:$0x3] }
 0x322   :  { %2368 = vmatprep.subr.bf16.mxu1 %v2367_v19  ;;  %v2772_v19 = vand.u32 15, %v2648_v49  ;;  %v2793_v49 = vand.u32 15, %v629_v39 }
 0x324   :  { %vm733_vm5 = vcmp.ge.s32.totalorder %v2772_v19, 4  ;;  %vm735_vm6 = vcmp.ge.s32.totalorder %v2793_v49, 4  ;;  %vm806_vm7 = vcmp.ge.s32.totalorder %v2772_v19, 3  ;;  %vm880_vm8 = vcmp.ge.s32.totalorder %v2772_v19, 2 }
 0x325   :  { %2370 = vmatpush1.bf16.msra.mxu1 %v2369_v53  ;;  %v2791_v53 = vrot.slane %v753_v43, %v2652_v51  ;;  %vm954_vm9 = vcmp.ge.s32.totalorder %v2772_v19, 1  ;;  %vm808_vm10 = vcmp.ge.s32.totalorder %v2793_v49, 3  ;;  %vm882_vm11 = vcmp.ge.s32.totalorder %v2793_v49, 2 }
 0x326   :  { %2372 = vmatprep.subr.bf16.mxu1 %v2371_v54  ;;  %v2802_v54 = vrot.slane %v1986_v50, %v2665_v62  ;;  %vm956_vm12 = vcmp.ge.s32.totalorder %v2793_v49, 1 }
 0x329   :  { %2374 = vmatpush1.bf16.msra.mxu1 %v2373_v56  ;;  %v2820_v56 = vrot.slane %v1988_v12, %v2652_v51 }
 0x361   :  { %v1121_v58 = vpop.xlane.xlu1 %1120 }
 0x365   :  { %v1124_v61 = vpop.xlane.xlu1 %1123 }
 0x369   :  { %v1307_v57 = vpop.xlane.xlu0 %1306 }
 0x36a   :  { %2402 = vrcp.f32 %v1307_v57  ;;  %v2823_v57 = vrot.slane %v1988_v12, %v2665_v62 }
 0x36b   :  { %2404 = vrcp.f32 %v1121_v58 }
 0x36d   :  { %v1310_v59 = vpop.xlane.xlu0 %1309 }
 0x36e   :  { %2406 = vrcp.f32 %v1310_v59 }
 0x36f   :  { %2408 = vrcp.f32 %v1124_v61 }
 0x372   :  { %v1499_v1 = vpop.xlane.xlu1 %1498 }
 0x374   :  { %v2403_v6 = vpop.eup %2402 }
 0x375   :  { %v2405_v8 = vpop.eup %2404 }
 0x376   :  { %v1502_v17 = vpop.xlane.xlu1 %1501 }
 0x378   :  { %v2407_v10 = vpop.eup %2406 }
 0x379   :  { %v1685_v0 = vpop.xlane.xlu0 %1684  ;;  %v2409_v16 = vpop.eup %2408 }
 0x37a   :  { %2410 = vrcp.f32 %v1685_v0  ;;  %v2743_v34 = vpop.permute.xlu1 %605 }
 0x37b   :  { %2412 = vrcp.f32 %v1499_v1  ;;  %v2784_v52 = vmul.f32 %v2743_v34, %v2677_v40  ;;  %v2805_v40 = vrot.slane %v1987_v5, %v2652_v51  ;;  %v2814_v44 = vmul.f32 %v2743_v34, %v2679_v42 }
 0x37d   :  { %v1688_v13 = vpop.xlane.xlu0 %1687  ;;  %v2835_v61 = vmul.f32 %v2757_v45, %v2784_v52  ;;  %v711_v1 = vrot.slane %v2784_v52, 4 }
 0x37e   :  { %2414 = vrcp.f32 %v1688_v13  ;;  %v2751_v41 = vpop.permute.xlu1 %610 }
 0x37f   :  { %2416 = vrcp.f32 %v1502_v17  ;;  %v2788_v4 = vmul.f32 %v2751_v41, %v2687_v46  ;;  %v2810_v46 = vld [vmem:[%s3140_s7] sm:$0x3]  ;;  %s2520_s7 = smov [#allocation10]  }
 0x380   :  { %v2831_v42 = vrot.slane %v2810_v46, %v2652_v51  ;;  %s1972_s20 = sshll.u32 %s2520_s7, 4  ;;  %s1973_s20 = int_to_ptr.vmem [resolvable:$true] %s1972_s20 }
 0x381   :  { %s2484_s6 = scalar_lea.vmem %s1973_s20, 1024  ;;  %p2489_p11 = scmp.lt.s32.totalorder %s1973_s20, %s1973_s20 }
 0x382   :  { %v2842_v0 = vpop.permute.xlu1 %615  ;;  %p2485_p10 = scmp.ne.s32.totalorder %s1973_s20, %s2484_s6  ;;  %p2490_p12 = scmp.lt.s32.totalorder %s2484_s6, %s2484_s6 }
 0x383   :  { %v2863_v17 = vmul.f32 %v2842_v0, %v2692_v2 }
 0x384   :  { %v2411_v24 = vpop.eup %2410  ;;  %p2491_p13 = por %p2490_p12, %p2489_p11 }
 0x385   :  { %v2413_v26 = vpop.eup %2412  ;;  %v2748_v36 = vpop.permute.xlu0 %600 }
 0x386   :  { %v2776_v20 = vmul.f32 %v2748_v36, %v2673_v37  ;;  %v2780_v27 = vmul.f32 %v2748_v36, %v2675_v38  ;;  %v2796_v37 = vrot.slane %v753_v43, %v2665_v62  ;;  %v2799_v38 = vrot.slane %v1986_v50, %v2652_v51  ;;  %p2492_p0 = pnand %p2491_p13, %p2485_p10 }
 0x387   :  { %v3145_v51 = vrot.slane %v2784_v52, 6 }
 0x388   :  { %v2415_v29 = vpop.eup %2414  ;;  %v709_v58 = vrot.slane %v2776_v20, 4  ;;  %v710_v59 = vrot.slane %v2780_v27, 4 }
 0x389   :  { %v2417_v32 = vpop.eup %2416 }
 0x38a   :  { %v732_v13 = vsel %vm708_vm1, 0.0, %v710_v59 }
 0x3aa   :  { %v2044_v60 = vpop.f32.mrb[8].mxu1 }
 0x3ab   :  { %v1199_v63 = vpop.f32.mrb[9].mxu1  ;;  %v1211_v21 = vmul.f32 %v2409_v16, %v2044_v60  ;;  %v715_v60 = vrot.slane %v2788_v4, 4  ;;  %v3142_v16 = vrot.slane %v2788_v4, 7 }
 0x3ac   :  { %v1210_v14 = vmul.f32 %v2405_v8, %v1199_v63  ;;  %v2840_v63 = vmul.f32 %v2751_v41, %v2689_v48  ;;  %v713_v8 = vrot.slane %v2814_v44, 4 }
 0x3b2   :  { %v2058_v3 = vpop.f32.mrb[10].mxu1 }
 0x3b3   :  { %v1385_v7 = vpop.f32.mrb[11].mxu1  ;;  %v1397_v15 = vmul.f32 %v2407_v10, %v2058_v3  ;;  %v3147_v3 = vrot.slane %v2784_v52, 5  ;;  %v731_v10 = vsel %vm708_vm1, 0.0, %v709_v58 }
 0x3b4   :  { %v1396_v9 = vmul.f32 %v2403_v6, %v1385_v7  ;;  %v3144_v6 = vrot.slane %v2784_v52, 7  ;;  %v2851_v7 = vmul.f32 %v2760_v47, %v2814_v44  ;;  %v745_v2 = vsel %vm733_vm5, %v731_v10, 0.0 }
 0x3b5   :  { %v765_v50 = vmul.f32 %v2791_v53, %v745_v2  ;;  %v719_v10 = vrot.slane %v2863_v17, 4  ;;  %v692_v2 = vmul.f32 %v2757_v45, %v2776_v20 }
 0x3b6   :  { %1926 = vmatprep.mubr.f32.mxu1 %v1396_v9  ;;  %v3146_v9 = vrot.slane %v2788_v4, 5  ;;  %v2915_v39 = vsel %vm929_vm4, %v3144_v6, %v3142_v16  ;;  %v857_v16 = vrot.slane %v2780_v27, 6 }
 0x3b7   :  { %1927 = vmatmul.mubr.f32.vlgmr.msra.gmra.mrb[16].mxu1 %v1210_v14  ;;  %v712_v14 = vsel %vm708_vm1, %v709_v58, %v711_v1  ;;  %v720_v58 = vsel %vm708_vm1, %v715_v60, %v719_v10 }
 0x3b8   :  { %v2072_v18 = vpop.f32.mrb[12].mxu1  ;;  %1932 = vmatprep.mubr.f32.mxu1 %v1397_v15  ;;  %v3143_v15 = vrot.slane %v2788_v4, 6 }
 0x3b9   :  { %v1577_v22 = vpop.f32.mrb[13].mxu1  ;;  %v1589_v33 = vmul.f32 %v2417_v32, %v2072_v18  ;;  %v716_v18 = vsel %vm708_vm1, %v711_v1, %v715_v60  ;;  %v2894_v32 = vmul.f32 %v2757_v45, %v2863_v17 }
 0x3ba   :  { %v1588_v30 = vmul.f32 %v2413_v26, %v1577_v22  ;;  %v2871_v22 = vmul.f32 %v2842_v0, %v2694_v11  ;;  %v746_v26 = vsel %vm733_vm5, %v732_v13, 0.0  ;;  %v2908_v35 = vsel %vm855_vm3, %v3145_v51, %v3143_v15 }
 0x3bb   :  { %1933 = vmatmul.mubr.f32.gmra.mrb[18].mxu1 %v1211_v21  ;;  %v766_v5 = vmul.f32 %v2796_v37, %v746_v26  ;;  %v792_v15 = vrot.slane %v2863_v17, 5  ;;  %v693_v26 = vmul.f32 %v2760_v47, %v2780_v27  ;;  %v931_v21 = vrot.slane %v2780_v27, 7 }
 0x3bc   :  { %v2919_v43 = vmul.f32 %v2760_v47, %v2871_v22  ;;  %v721_v11 = vrot.slane %v2871_v22, 4  ;;  %v3170_v49 = vrot.slane %v2871_v22, 7 }
 0x3bd   :  { %v774_v51 = vadd.f32 %v766_v5, %v693_v26  ;;  %v767_v5 = vmul.f32 %v2791_v53, %v712_v14 }
 0x3bf   :  { %v2086_v23 = vpop.f32.mrb[14].mxu1  ;;  %v775_v60 = vadd.f32 %v767_v5, %v2835_v61 }
 0x3c0   :  { %v1763_v25 = vpop.f32.mrb[15].mxu1  ;;  %v1775_v31 = vmul.f32 %v2415_v29, %v2086_v23  ;;  %v782_v23 = vrot.slane %v2776_v20, 5  ;;  %v794_v29 = vrot.slane %v2871_v22, 5 }
 0x3c1   :  { %v1774_v28 = vmul.f32 %v2411_v24, %v1763_v25  ;;  %v773_v25 = vadd.f32 %v765_v50, %v692_v2  ;;  %v930_v24 = vrot.slane %v2776_v20, 7 }
 0x3c2   :  { %v804_v12 = vsel %vm781_vm2, 0.0, %v782_v23 }
 0x3c3   :  { %1938 = vmatprep.mubr.f32.mxu1 %v1774_v28  ;;  %v783_v28 = vrot.slane %v2780_v27, 5  ;;  %v818_v6 = vsel %vm806_vm7, %v804_v12, 0.0 }
 0x3c4   :  { %1939 = vmatmul.mubr.f32.gmra.mrb[20].mxu1 %v1588_v30  ;;  %v2886_v30 = vmul.f32 %v2757_v45, %v2788_v4  ;;  %v714_v45 = vsel %vm708_vm1, %v710_v59, %v713_v8  ;;  %v839_v50 = vmul.f32 %v2799_v38, %v818_v6  ;;  %v3148_v59 = vrot.slane %v2840_v63, 4 }
 0x3c5   :  { %1944 = vmatprep.mubr.f32.mxu1 %v1775_v31  ;;  %v2890_v31 = vsel %vm735_vm6, %v716_v18, 0.0  ;;  %v805_v13 = vsel %vm781_vm2, 0.0, %v783_v28  ;;  %v856_v18 = vrot.slane %v2776_v20, 6  ;;  %v768_v26 = vmul.f32 %v2796_v37, %v714_v45 }
 0x3c6   :  { %v722_v12 = vsel %vm708_vm1, %v3148_v59, %v721_v11  ;;  %v847_v10 = vadd.f32 %v839_v50, %v773_v25  ;;  %v952_v11 = vsel %vm929_vm4, 0.0, %v930_v24  ;;  %v953_v59 = vsel %vm929_vm4, 0.0, %v931_v21 }
 0x3c7   :  { %v878_v48 = vsel %vm855_vm3, 0.0, %v856_v18  ;;  %v3150_v25 = vrot.slane %v2814_v44, 5  ;;  %v3151_v50 = vrot.slane %v2840_v63, 4  ;;  %v776_v61 = vadd.f32 %v768_v26, %v2851_v7 }
 0x3c8   :  { %1945 = vmatmul.mubr.f32.gmra.mrb[22].mxu1 %v1589_v33  ;;  %v2901_v33 = vsel %vm781_vm2, %v3147_v3, %v3146_v9  ;;  %v819_v9 = vsel %vm806_vm7, %v805_v13, 0.0  ;;  %v879_v3 = vsel %vm855_vm3, 0.0, %v857_v16  ;;  %v892_v6 = vsel %vm880_vm8, %v878_v48, 0.0 }
 0x3c9   :  { %v840_v2 = vmul.f32 %v2802_v54, %v819_v9  ;;  %v893_v14 = vsel %vm880_vm8, %v879_v3, 0.0  ;;  %v3149_v9 = vrot.slane %v2784_v52, 5  ;;  %v771_v13 = vmul.f32 %v2791_v53, %v720_v58 }
 0x3ca   :  { %v787_v48 = vsel %vm781_vm2, %v783_v28, %v3150_v25  ;;  %v718_v3 = vsel %vm708_vm1, %v713_v8, %v3151_v50  ;;  %v914_v58 = vmul.f32 %v2817_v55, %v893_v14  ;;  %v966_v28 = vsel %vm954_vm9, %v952_v11, 0.0 }
 0x3cb   :  { %v848_v1 = vadd.f32 %v840_v2, %v774_v51  ;;  %v785_v45 = vsel %vm781_vm2, %v782_v23, %v3149_v9  ;;  %v3152_v51 = vrot.slane %v2788_v4, 5  ;;  %v913_v23 = vmul.f32 %v2805_v40, %v892_v6 }
 0x3cc   :  { %v967_v5 = vsel %vm954_vm9, %v953_v59, 0.0  ;;  %v841_v8 = vmul.f32 %v2799_v38, %v785_v45  ;;  %v3153_v9 = vrot.slane %v2784_v52, 6  ;;  %v842_v14 = vmul.f32 %v2802_v54, %v787_v48 }
 0x3cd   :  { %v793_v2 = vsel %vm781_vm2, %v3152_v51, %v792_v15  ;;  %v921_v25 = vadd.f32 %v913_v23, %v847_v10  ;;  %v922_v6 = vadd.f32 %v914_v58, %v848_v1  ;;  %v750_v7 = vsel %vm735_vm6, %v718_v3, 0.0 }
 0x3ce   :  { %v859_v15 = vsel %vm855_vm3, %v856_v18, %v3153_v9  ;;  %v772_v26 = vmul.f32 %v2796_v37, %v722_v12  ;;  %v3154_v11 = vrot.slane %v2840_v63, 5  ;;  %v849_v59 = vadd.f32 %v841_v8, %v775_v60 }
 0x3cf   :  { %v3155_v45 = vrot.slane %v2814_v44, 6  ;;  %v987_v18 = vmul.f32 %v2820_v56, %v966_v28  ;;  %v988_v1 = vmul.f32 %v2823_v57, %v967_v5  ;;  %v850_v10 = vadd.f32 %v842_v14, %v776_v61 }
 0x3d0   :  { %v795_v19 = vsel %vm781_vm2, %v3154_v11, %v794_v29  ;;  %v769_v48 = vmul.f32 %v2791_v53, %v2890_v31  ;;  %v845_v12 = vmul.f32 %v2799_v38, %v793_v2  ;;  %v915_v3 = vmul.f32 %v2805_v40, %v859_v15 }
 0x3d1   :  { %v861_v50 = vsel %vm855_vm3, %v857_v16, %v3155_v45  ;;  %v770_v29 = vmul.f32 %v2796_v37, %v750_v7  ;;  %v3156_v60 = vmov %v3154_v11  ;;  %v3157_v16 = vrot.slane %v2814_v44, 5 }
 0x3d2   :  { %v995_v23 = vadd.f32 %v987_v18, %v921_v25  ;;  %v996_v58 = vadd.f32 %v988_v1, %v922_v6  ;;  %v3158_v61 = vrot.slane %v2784_v52, 7  ;;  %v916_v31 = vmul.f32 %v2817_v55, %v861_v50 }
 0x3d3   :  { %v791_v51 = vsel %vm781_vm2, %v3157_v16, %v3156_v60  ;;  %v923_v28 = vadd.f32 %v915_v3, %v849_v59  ;;  %v3159_v2 = vrot.slane %v2814_v44, 7  ;;  %v822_v37 = vsel %vm808_vm10, %v2901_v33, 0.0 }
 0x3d4   :  { %v933_v53 = vsel %vm929_vm4, %v930_v24, %v3158_v61  ;;  %v697_v8 = vmul.f32 %v2760_v47, %v2840_v63  ;;  %v846_v9 = vmul.f32 %v2802_v54, %v795_v19  ;;  %v924_v15 = vadd.f32 %v916_v31, %v850_v10 }
 0x3d5   :  { %v935_v5 = vsel %vm929_vm4, %v931_v21, %v3159_v2  ;;  %v777_v25 = vadd.f32 %v769_v48, %v2886_v30  ;;  %v823_v24 = vsel %vm808_vm10, %v791_v51, 0.0  ;;  %v779_v6 = vadd.f32 %v771_v13, %v2894_v32 }
 0x3d6   :  { %v989_v14 = vmul.f32 %v2820_v56, %v933_v53  ;;  %v778_v21 = vadd.f32 %v770_v29, %v697_v8  ;;  %v3160_v7 = vrot.slane %v2840_v63, 6  ;;  %v3161_v33 = vmov %v3155_v45 }
 0x3d7   :  { %v1003_v47 = vadd.f32 %v995_v23, %v2776_v20  ;;  %v1004_v19 = vadd.f32 %v996_v58, %v2780_v27  ;;  %v990_v30 = vmul.f32 %v2823_v57, %v935_v5  ;;  %v843_v59 = vmul.f32 %v2799_v38, %v822_v37 }
 0x3d8   :  { %v865_v11 = vsel %vm855_vm3, %v3161_v33, %v3160_v7  ;;  %v3162_v45 = vrot.slane %v2863_v17, 6  ;;  %v3163_v32 = vrot.slane %v2788_v4, 6  ;;  %v997_v50 = vadd.f32 %v989_v14, %v923_v28 }
 0x3d9   :  { %v896_v18 = vsel %vm882_vm11, %v2908_v35, 0.0  ;;  %v844_v1 = vmul.f32 %v2802_v54, %v823_v24  ;;  %v3058_v20 = vrot.slane %v2810_v46, %v2665_v62  ;;  %v998_v27 = vadd.f32 %v990_v30, %v924_v15 }
 0x3da   :  { %v867_v13 = vsel %vm855_vm3, %v3163_v32, %v3162_v45  ;;  %v851_v10 = vadd.f32 %v843_v59, %v777_v25  ;;  %v897_v38 = vsel %vm882_vm11, %v865_v11, 0.0  ;;  %v780_v48 = vadd.f32 %v772_v26, %v2919_v43 }
 0x3db   :  { %v3164_v3 = vrot.slane %v2871_v22, 6  ;;  %v3165_v29 = vmov %v3160_v7  ;;  %v852_v35 = vadd.f32 %v844_v1, %v778_v21  ;;  %v3166_v54 = vrot.slane %v2840_v63, 7 }
 0x3dc   :  { %v3167_v16 = vmov %v3159_v2  ;;  %v853_v46 = vadd.f32 %v845_v12, %v779_v6  ;;  %v1011_v51 = vmul.f32 %v1003_v47, %v2748_v36  ;;  %v1012_v23 = vmul.f32 %v1004_v19, %v2748_v36 }
 0x3dd   :  { %v869_v60 = vsel %vm855_vm3, %v3165_v29, %v3164_v3  ;;  %v939_v62 = vsel %vm929_vm4, %v3167_v16, %v3166_v54  ;;  %v917_v43 = vmul.f32 %v2805_v40, %v896_v18  ;;  %v1005_v53 = vadd.f32 %v997_v50, %v2784_v52 }
 0x3de   :  { %v970_v31 = vsel %vm956_vm12, %v2915_v39, 0.0  ;;  %v918_v28 = vmul.f32 %v2817_v55, %v897_v38  ;;  %v1006_v2 = vadd.f32 %v998_v27, %v2814_v44  ;;  %v971_v36 = vsel %vm956_vm12, %v939_v62, 0.0 }
 0x3df   :  { %v925_v5 = vadd.f32 %v917_v43, %v851_v10  ;;  %v854_v37 = vadd.f32 %v846_v9, %v780_v48  ;;  %v919_v8 = vmul.f32 %v2805_v40, %v867_v13  ;;  %v920_v52 = vmul.f32 %v2817_v55, %v869_v60 }
 0x3e0   :  { %v926_v25 = vadd.f32 %v918_v28, %v852_v35  ;;  %v3168_v24 = vrot.slane %v2863_v17, 7  ;;  %v3169_v39 = vrot.slane %v2788_v4, 7  ;;  %v991_v44 = vmul.f32 %v2820_v56, %v970_v31 }
 0x3e1   :  { %v3171_v9 = vmov %v3166_v54  ;;  %v1013_v7 = vmul.f32 %v1005_v53, %v2743_v34  ;;  %v992_v11 = vmul.f32 %v2823_v57, %v971_v36  ;;  %v927_v47 = vadd.f32 %v919_v8, %v853_v46 }
 0x3e2   :  { %v941_v6 = vsel %vm929_vm4, %v3169_v39, %v3168_v24  ;;  %v943_v40 = vsel %vm929_vm4, %v3171_v9, %v3170_v49  ;;  %v1014_v19 = vmul.f32 %v1006_v2, %v2743_v34  ;;  %v999_v59 = vadd.f32 %v991_v44, %v925_v5 }
 0x3e3   :  { %v928_v45 = vadd.f32 %v920_v52, %v854_v37  ;;  %v1000_v13 = vadd.f32 %v992_v11, %v926_v25  ;;  %v993_v50 = vmul.f32 %v2820_v56, %v941_v6  ;;  %v994_v1 = vmul.f32 %v2823_v57, %v943_v40 }
 0x3e4   :  { %v1007_v10 = vadd.f32 %v999_v59, %v2788_v4 }
 0x3e5   :  { %v1001_v27 = vadd.f32 %v993_v50, %v927_v47  ;;  %v1002_v38 = vadd.f32 %v994_v1, %v928_v45  ;;  %v1008_v48 = vadd.f32 %v1000_v13, %v2840_v63 }
 0x3e6   :  { %v1015_v29 = vmul.f32 %v1007_v10, %v2751_v41 }
 0x3e7   :  { %v1009_v3 = vadd.f32 %v1001_v27, %v2863_v17  ;;  %v1010_v56 = vadd.f32 %v1002_v38, %v2871_v22  ;;  %v1016_v57 = vmul.f32 %v1008_v48, %v2751_v41 }
 0x3e9   :  { %v1017_v46 = vmul.f32 %v1009_v3, %v2842_v0 }
 0x48a   :  { %v1928_v58 = vpop.f32.mrb[16].mxu1 }
 0x48b   :  { %v1929_v26 = vadd.f32 %v1928_v58, %v2831_v42  ;;  %v1930_v61 = vpop.f32.mrb[17].mxu1 }
 0x48c   :  { %v1931_v12 = vadd.f32 %v1930_v61, %v3058_v20 }
 0x48d   :  { %v1951_v15 = vadd.f32 %v1929_v26, %v1011_v51  ;;  %v1018_v51 = vmul.f32 %v1010_v56, %v2842_v0 }
 0x48e   :  { %v1952_v14 = vadd.f32 %v1931_v12, %v1012_v23  ;;  %v1934_v21 = vpop.f32.mrb[18].mxu1 }
 0x48f   :  { %1959 = vst [vmem:[#allocation10] sm:$0xff] %v1951_v15  ;;  %v1935_v55 = vadd.f32 %v1934_v21, %v2831_v42  ;;  %v1936_v33 = vpop.f32.mrb[19].mxu1 }
 0x490   :  { %1960 = vst [vmem:[#allocation10 + $0x8] sm:$0xff] %v1952_v14  ;;  %v1937_v30 = vadd.f32 %v1936_v33, %v3058_v20 }
 0x491   :  { %v1953_v32 = vadd.f32 %v1935_v55, %v1013_v7 }
 0x492   :  { %v1954_v18 = vadd.f32 %v1937_v30, %v1014_v19 }
 0x493   :  { %1961 = vst [vmem:[#allocation10 + $0x10] sm:$0xff] %v1953_v32 }
 0x494   :  { %1962 = vst [vmem:[#allocation10 + $0x18] sm:$0xff] %v1954_v18 }
 0x497   :  { %v1940_v34 = vpop.f32.mrb[20].mxu1 }
 0x498   :  { %v1941_v60 = vadd.f32 %v1940_v34, %v2831_v42  ;;  %v1942_v35 = vpop.f32.mrb[21].mxu1 }
 0x499   :  { %v1943_v54 = vadd.f32 %v1942_v35, %v3058_v20 }
 0x49a   :  { %v1955_v16 = vadd.f32 %v1941_v60, %v1015_v29 }
 0x49b   :  { %v1956_v62 = vadd.f32 %v1943_v54, %v1016_v57  ;;  %v1946_v4 = vpop.f32.mrb[22].mxu1 }
 0x49c   :  { %1963 = vst [vmem:[#allocation10 + $0x20] sm:$0xff] %v1955_v16  ;;  %v1947_v63 = vadd.f32 %v1946_v4, %v2831_v42  ;;  %v1948_v17 = vpop.f32.mrb[23].mxu1 }
 0x49d   :  { %1964 = vst [vmem:[#allocation10 + $0x28] sm:$0xff] %v1956_v62  ;;  %v1949_v22 = vadd.f32 %v1948_v17, %v3058_v20 }
 0x49e   :  { %v1957_v23 = vadd.f32 %v1947_v63, %v1017_v46 }
 0x49f   :  { %v1958_v41 = vadd.f32 %v1949_v22, %v1018_v51 }
 0x4a0   :  { %1965 = vst [vmem:[#allocation10 + $0x30] sm:$0xff] %v1957_v23 }
 0x4a1   :  { %1966 = vst [vmem:[#allocation10 + $0x38] sm:$0xff] %v1958_v41 }
 0x4a2   :  { %2495 = shalt.err (!%p2492_p0)
}
 0x4a3   :  { %s2496_s22 = scalar_lea.hbm %s3141_s8, 1024 }
 0x4a4   :  { %p2497_p1 = scmp.ne.s32.totalorder %s3141_s8, %s2496_s22  ;;  %p2500_p2 = scmp.lt.u32.totalorder %s2496_s22, %s3141_s8 }
 0x4a6   :  { %p2502_p3 = pnand %p2500_p2, %p2497_p1 }
 0x4a8   :  { %2505 = shalt.err (!%p2502_p3)
}
 0x4a9   :  { %1978 = dma.vmem_to_hbm [thread:$0]  %s1973_s20, 1024, %s3141_s8, [#allocation6], %s2516_s3, %s2516_s3, %s2517_s28  }
 0x4aa   :  { %2510 = dma.done.wait [#allocation6], 1024  }
 0x4ab   :  { %2511 = vsyncadd [#allocation6], 4294966272 }
 0x4ac   :  { %1982 = vsyncpa [#allocation5], 1 }
 0x4ad   :  { %1983 = vsyncpa [#allocation8], 1 }
 0x4ae   :  { %1984 = vsyncpa [#allocation6], 1 }

// kernel: tpu_custom_call.1
= control target key start
LH: loop header
LB: loop body
LE: loop exit
PB: predicated region body
PF: predicated region fallthrough
CT: control target
= control target key end

     0   :  { %13 = vsyncpa [#allocation5], 0  ;;  %s3133_s0 = inlined_call_operand.hbm [shape: f32[2,16,256], index: 0, kind: input, shape index: {}]   ;;  %s3134_s1 = inlined_call_operand.vmem [shape: f32[2,16,1], index: 1, kind: input, shape index: {}]   ;;  %s3135_s2 = inlined_call_operand.vmem [shape: f32[2,1,16], index: 2, kind: input, shape index: {}]   ;;  %s3136_s3 = inlined_call_operand.hbm [shape: f32[256,768], index: 3, kind: input, shape index: {}]   ;;  %s3137_s4 = inlined_call_operand.vmem [shape: f32[1,768], index: 4, kind: input, shape index: {}]   ;;  %s3138_s5 = inlined_call_operand.vmem [shape: f32[5,256], index: 5, kind: input, shape index: {}]   ;;  %s3139_s6 = inlined_call_operand.hbm [shape: f32[256,256], index: 6, kind: input, shape index: {}]   ;;  %s3140_s7 = inlined_call_operand.vmem [shape: f32[1,256], index: 7, kind: input, shape index: {}]   ;;  %s3141_s8 = inlined_call_operand.hbm [shape: f32[2,16,256], index: 8, kind: output, shape index: {}]  }
   0x1   :  { %14 = vsyncpa [#allocation8], 0 }
   0x2   :  { %15 = vsyncpa [#allocation6], 0  ;;  %s2512_s27 = smov [#allocation7]   ;;  %s2418_s9 = scalar_lea.hbm %s3136_s3, 24576 }
   0x3   :  { %s37_s28 = sshll.u32 %s2512_s27, 4  ;;  %p2419_p0 = scmp.ne.s32.totalorder %s3136_s3, %s2418_s9  ;;  %s38_s28 = int_to_ptr.vmem [resolvable:$true] %s37_s28 }
   0x4   :  { %p2422_p1 = scmp.lt.u32.totalorder %s2418_s9, %s3136_s3 }
   0x6   :  { %p2424_p2 = pnand %p2422_p1, %p2419_p0 }
   0x8   :  { %2427 = shalt.err (!%p2424_p2)
}
   0x9   :  { %s2428_s14 = scalar_lea.vmem %s38_s28, 24576  ;;  %p2433_p4 = scmp.lt.s32.totalorder %s38_s28, %s38_s28 }
   0xa   :  { %p2429_p3 = scmp.ne.s32.totalorder %s38_s28, %s2428_s14  ;;  %p2434_p5 = scmp.lt.s32.totalorder %s2428_s14, %s2428_s14 }
   0xc   :  { %p2435_p6 = por %p2434_p5, %p2433_p4 }
   0xe   :  { %p2436_p7 = pnand %p2435_p6, %p2429_p3 }
  0x10   :  { %2439 = shalt.err (!%p2436_p7)
}
  0x11   :  { %s2513_s15 = smov 768   ;;  %s2514_s16 = smov 48  }
  0x12   :  { %43 = dma.hbm_to_vmem [thread:$0]  %s3136_s3, 24576, %s38_s28, [#allocation8], %s2513_s15, %s2513_s15, %s2514_s16  }
  0x13   :  { %s2515_s19 = smov [#allocation4]   ;;  %s2440_s23 = scalar_lea.hbm %s3133_s0, 1024 }
  0x14   :  { %s21_s20 = sshll.u32 %s2515_s19, 4  ;;  %p2441_p8 = scmp.ne.s32.totalorder %s3133_s0, %s2440_s23  ;;  %s22_s20 = int_to_ptr.vmem [resolvable:$true] %s21_s20 }
  0x15   :  { %p2444_p9 = scmp.lt.u32.totalorder %s2440_s23, %s3133_s0 }
  0x17   :  { %p2446_p10 = pnand %p2444_p9, %p2441_p8 }
  0x19   :  { %2449 = shalt.err (!%p2446_p10)
}
  0x1a   :  { %s2450_s29 = scalar_lea.vmem %s22_s20, 1024  ;;  %p2455_p12 = scmp.lt.s32.totalorder %s22_s20, %s22_s20 }
  0x1b   :  { %p2451_p11 = scmp.ne.s32.totalorder %s22_s20, %s2450_s29  ;;  %p2456_p13 = scmp.lt.s32.totalorder %s2450_s29, %s2450_s29 }
  0x1d   :  { %p2457_p0 = por %p2456_p13, %p2455_p12 }
  0x1f   :  { %p2458_p1 = pnand %p2457_p0, %p2451_p11 }
  0x21   :  { %2461 = shalt.err (!%p2458_p1)
}
  0x22   :  { %s2516_s3 = smov 256   ;;  %s2517_s28 = smov 16  }
  0x23   :  { %27 = dma.hbm_to_vmem [thread:$0]  %s3133_s0, 1024, %s22_s20, [#allocation5], %s2516_s3, %s2516_s3, %s2517_s28  }
  0x24   :  { %s2518_s10 = smov [#allocation9]   ;;  %s2462_s14 = scalar_lea.hbm %s3139_s6, 8192 }
  0x25   :  { %s53_s11 = sshll.u32 %s2518_s10, 4  ;;  %p2463_p2 = scmp.ne.s32.totalorder %s3139_s6, %s2462_s14  ;;  %s54_s11 = int_to_ptr.vmem [resolvable:$true] %s53_s11 }
  0x26   :  { %p2466_p3 = scmp.lt.u32.totalorder %s2462_s14, %s3139_s6 }
  0x28   :  { %p2468_p4 = pnand %p2466_p3, %p2463_p2 }
  0x2a   :  { %2471 = shalt.err (!%p2468_p4)
}
  0x2b   :  { %s2472_s19 = scalar_lea.vmem %s54_s11, 8192  ;;  %p2477_p6 = scmp.lt.s32.totalorder %s54_s11, %s54_s11 }
  0x2c   :  { %p2473_p5 = scmp.ne.s32.totalorder %s54_s11, %s2472_s19  ;;  %p2478_p7 = scmp.lt.s32.totalorder %s2472_s19, %s2472_s19 }
  0x2e   :  { %p2479_p8 = por %p2478_p7, %p2477_p6 }
  0x30   :  { %p2480_p9 = pnand %p2479_p8, %p2473_p5 }
  0x32   :  { %2483 = shalt.err (!%p2480_p9)
}
  0x33   :  { %59 = dma.hbm_to_vmem [thread:$0]  %s3139_s6, 8192, %s54_s11, [#allocation8], %s2516_s3, %s2516_s3, %s2517_s28  }
  0x34   :  { %2506 = dma.done.wait [#allocation5], 1024  }
  0x35   :  { %2507 = vsyncadd [#allocation5], 4294966272 }
  0x36   :  { %2508 = dma.done.wait [#allocation8], 32768  }
  0x37   :  { %2509 = vsyncadd [#allocation8], 4294934528  ;;  %v86_v0 = vld [vmem:[#allocation7 + $0x18] sm:$0xff]  ;;  %v92_v1 = vld [vmem:[#allocation7 + $0x48] sm:$0xff]  ;;  %vm1106_vm0 = vcmask 130048   ;;  %vm708_vm1 = vcmask 1043456  }
  0x38   :  { %v85_v2 = vld [vmem:[#allocation7 + $0x10] sm:$0xff]  ;;  %v2151_v3 = vpack.c.bf16 %v92_v1, %v86_v0  ;;  %v91_v4 = vld [vmem:[#allocation7 + $0x40] sm:$0xff]  ;;  %v98_v5 = vld [vmem:[#allocation7 + $0x78] sm:$0xff]  ;;  %vm781_vm2 = vcmask 1042432   ;;  %vm855_vm3 = vcmask 1041408   ;;  %vm929_vm4 = vcmask 1040384  }
  0x39   :  { %v104_v6 = vld [vmem:[#allocation7 + $0xa8] sm:$0xff]  ;;  %v2153_v7 = vpack.c.bf16 %v91_v4, %v85_v2  ;;  %v97_v9 = vld [vmem:[#allocation7 + $0x70] sm:$0xff]  ;;  %v103_v10 = vld [vmem:[#allocation7 + $0xa0] sm:$0xff] }
  0x3a   :  { %v2155_v8 = vpack.c.bf16 %v104_v6, %v98_v5  ;;  %v110_v11 = vld [vmem:[#allocation7 + $0xd8] sm:$0xff]  ;;  %2152 = vmatprep.subr.bf16.mxu1 %v2151_v3  ;;  %v116_v12 = vld [vmem:[#allocation7 + $0x108] sm:$0xff]  ;;  %v2157_v13 = vpack.c.bf16 %v103_v10, %v97_v9  ;;  %v83_v16 = vld [vmem:[#allocation7] sm:$0xff] }
  0x3b   :  { %2154 = vmatpush1.bf16.msra.mxu1 %v2153_v7  ;;  %v84_v14 = vld [vmem:[#allocation7 + $0x8] sm:$0xff]  ;;  %v90_v15 = vld [vmem:[#allocation7 + $0x38] sm:$0xff]  ;;  %v2159_v17 = vpack.c.bf16 %v116_v12, %v110_v11  ;;  %v109_v18 = vld [vmem:[#allocation7 + $0xd0] sm:$0xff] }
  0x3c   :  { %2156 = vmatprep.subr.bf16.mxu1 %v2155_v8  ;;  %v115_v19 = vld [vmem:[#allocation7 + $0x100] sm:$0xff]  ;;  %v2087_v20 = vpack.c.bf16 %v90_v15, %v84_v14  ;;  %v89_v21 = vld [vmem:[#allocation7 + $0x30] sm:$0xff]  ;;  %v122_v23 = vld [vmem:[#allocation7 + $0x138] sm:$0xff] }
  0x3d   :  { %v2089_v22 = vpack.c.bf16 %v89_v21, %v83_v16  ;;  %v128_v24 = vld [vmem:[#allocation7 + $0x168] sm:$0xff]  ;;  %v102_v26 = vld [vmem:[#allocation7 + $0x98] sm:$0xff]  ;;  %v95_v27 = vld [vmem:[#allocation7 + $0x60] sm:$0xff]  ;;  %v2161_v29 = vpack.c.bf16 %v115_v19, %v109_v18 }
  0x3e   :  { %v96_v25 = vld [vmem:[#allocation7 + $0x68] sm:$0xff]  ;;  %2088 = vmatprep.subr.bf16.mxu0 %v2087_v20  ;;  %v101_v28 = vld [vmem:[#allocation7 + $0x90] sm:$0xff]  ;;  %v127_v31 = vld [vmem:[#allocation7 + $0x160] sm:$0xff]  ;;  %v2163_v34 = vpack.c.bf16 %v128_v24, %v122_v23 }
  0x3f   :  { %2158 = vmatpush1.bf16.msra.mxu1 %v2157_v13  ;;  %2090 = vmatpush1.bf16.msra.mxu0 %v2089_v22  ;;  %v121_v30 = vld [vmem:[#allocation7 + $0x130] sm:$0xff]  ;;  %v2091_v32 = vpack.c.bf16 %v102_v26, %v96_v25  ;;  %v2093_v33 = vpack.c.bf16 %v101_v28, %v95_v27  ;;  %v134_v35 = vld [vmem:[#allocation7 + $0x198] sm:$0xff]  ;;  %v108_v36 = vld [vmem:[#allocation7 + $0xc8] sm:$0xff] }
  0x40   :  { %2160 = vmatprep.subr.bf16.mxu1 %v2159_v17  ;;  %v114_v37 = vld [vmem:[#allocation7 + $0xf8] sm:$0xff]  ;;  %v140_v38 = vld [vmem:[#allocation7 + $0x1c8] sm:$0xff]  ;;  %v107_v40 = vld [vmem:[#allocation7 + $0xc0] sm:$0xff]  ;;  %v2165_v42 = vpack.c.bf16 %v127_v31, %v121_v30 }
  0x41   :  { %2092 = vmatprep.subr.bf16.mxu0 %v2091_v32  ;;  %v2095_v39 = vpack.c.bf16 %v114_v37, %v108_v36  ;;  %v113_v41 = vld [vmem:[#allocation7 + $0xf0] sm:$0xff]  ;;  %v120_v45 = vld [vmem:[#allocation7 + $0x128] sm:$0xff]  ;;  %v126_v46 = vld [vmem:[#allocation7 + $0x158] sm:$0xff]  ;;  %v2167_v47 = vpack.c.bf16 %v140_v38, %v134_v35 }
  0x42   :  { %v133_v43 = vld [vmem:[#allocation7 + $0x190] sm:$0xff]  ;;  %v2097_v44 = vpack.c.bf16 %v113_v41, %v107_v40  ;;  %v139_v48 = vld [vmem:[#allocation7 + $0x1c0] sm:$0xff]  ;;  %v2099_v49 = vpack.c.bf16 %v126_v46, %v120_v45  ;;  %v146_v52 = vld [vmem:[#allocation7 + $0x1f8] sm:$0xff] }
  0x43   :  { %2162 = vmatpush1.bf16.msra.mxu1 %v2161_v29  ;;  %2094 = vmatpush1.bf16.msra.mxu0 %v2093_v33  ;;  %v119_v50 = vld [vmem:[#allocation7 + $0x120] sm:$0xff]  ;;  %v125_v51 = vld [vmem:[#allocation7 + $0x150] sm:$0xff]  ;;  %v152_v53 = vld [vmem:[#allocation7 + $0x228] sm:$0xff]  ;;  %v2169_v56 = vpack.c.bf16 %v139_v48, %v133_v43 }
  0x44   :  { %2164 = vmatprep.subr.bf16.mxu1 %v2163_v34  ;;  %2096 = vmatprep.subr.bf16.mxu0 %v2095_v39  ;;  %v132_v54 = vld [vmem:[#allocation7 + $0x188] sm:$0xff]  ;;  %v138_v55 = vld [vmem:[#allocation7 + $0x1b8] sm:$0xff]  ;;  %v145_v57 = vld [vmem:[#allocation7 + $0x1f0] sm:$0xff]  ;;  %v2101_v59 = vpack.c.bf16 %v125_v51, %v119_v50  ;;  %v2171_v60 = vpack.c.bf16 %v152_v53, %v146_v52 }
  0x45   :  { %v151_v58 = vld [vmem:[#allocation7 + $0x220] sm:$0xff]  ;;  %v158_v61 = vld [vmem:[#allocation7 + $0x258] sm:$0xff]  ;;  %v2103_v62 = vpack.c.bf16 %v138_v55, %v132_v54  ;;  %v137_v0 = vld [vmem:[#allocation7 + $0x1b0] sm:$0xff] }
  0x46   :  { %v131_v63 = vld [vmem:[#allocation7 + $0x180] sm:$0xff]  ;;  %v164_v1 = vld [vmem:[#allocation7 + $0x288] sm:$0xff]  ;;  %v150_v3 = vld [vmem:[#allocation7 + $0x218] sm:$0xff]  ;;  %v2173_v4 = vpack.c.bf16 %v151_v58, %v145_v57 }
  0x47   :  { %2166 = vmatpush1.bf16.msra.mxu1 %v2165_v42  ;;  %2098 = vmatpush1.bf16.msra.mxu0 %v2097_v44  ;;  %v144_v2 = vld [vmem:[#allocation7 + $0x1e8] sm:$0xff]  ;;  %v157_v5 = vld [vmem:[#allocation7 + $0x250] sm:$0xff]  ;;  %v163_v6 = vld [vmem:[#allocation7 + $0x280] sm:$0xff]  ;;  %v2105_v7 = vpack.c.bf16 %v137_v0, %v131_v63  ;;  %v2175_v8 = vpack.c.bf16 %v164_v1, %v158_v61 }
  0x48   :  { %2168 = vmatprep.subr.bf16.mxu1 %v2167_v47  ;;  %2100 = vmatprep.subr.bf16.mxu0 %v2099_v49  ;;  %v170_v9 = vld [vmem:[#allocation7 + $0x2b8] sm:$0xff]  ;;  %v2107_v10 = vpack.c.bf16 %v150_v3, %v144_v2  ;;  %v143_v11 = vld [vmem:[#allocation7 + $0x1e0] sm:$0xff]  ;;  %v149_v12 = vld [vmem:[#allocation7 + $0x210] sm:$0xff]  ;;  %v2177_v16 = vpack.c.bf16 %v163_v6, %v157_v5 }
  0x49   :  { %v176_v13 = vld [vmem:[#allocation7 + $0x2e8] sm:$0xff]  ;;  %v162_v15 = vld [vmem:[#allocation7 + $0x278] sm:$0xff]  ;;  %v169_v17 = vld [vmem:[#allocation7 + $0x2b0] sm:$0xff]  ;;  %v2109_v19 = vpack.c.bf16 %v149_v12, %v143_v11 }
  0x4a   :  { %v156_v14 = vld [vmem:[#allocation7 + $0x248] sm:$0xff]  ;;  %v175_v18 = vld [vmem:[#allocation7 + $0x2e0] sm:$0xff]  ;;  %v2179_v20 = vpack.c.bf16 %v176_v13, %v170_v9  ;;  %v182_v21 = vld [vmem:[#allocation7 + $0x318] sm:$0xff] }
  0x4b   :  { %2170 = vmatpush1.bf16.msra.mxu1 %v2169_v56  ;;  %2102 = vmatpush1.bf16.msra.mxu0 %v2101_v59  ;;  %v2111_v22 = vpack.c.bf16 %v162_v15, %v156_v14  ;;  %v155_v23 = vld [vmem:[#allocation7 + $0x240] sm:$0xff]  ;;  %v161_v24 = vld [vmem:[#allocation7 + $0x270] sm:$0xff]  ;;  %v188_v25 = vld [vmem:[#allocation7 + $0x348] sm:$0xff]  ;;  %v2181_v28 = vpack.c.bf16 %v175_v18, %v169_v17 }
  0x4c   :  { %2172 = vmatprep.subr.bf16.mxu1 %v2171_v60  ;;  %2104 = vmatprep.subr.bf16.mxu0 %v2103_v62  ;;  %v168_v26 = vld [vmem:[#allocation7 + $0x2a8] sm:$0xff]  ;;  %v174_v27 = vld [vmem:[#allocation7 + $0x2d8] sm:$0xff]  ;;  %v181_v29 = vld [vmem:[#allocation7 + $0x310] sm:$0xff]  ;;  %v2113_v31 = vpack.c.bf16 %v161_v24, %v155_v23  ;;  %v2183_v32 = vpack.c.bf16 %v188_v25, %v182_v21 }
  0x4d   :  { %v187_v30 = vld [vmem:[#allocation7 + $0x340] sm:$0xff]  ;;  %v194_v33 = vld [vmem:[#allocation7 + $0x378] sm:$0xff]  ;;  %v2115_v34 = vpack.c.bf16 %v174_v27, %v168_v26  ;;  %v173_v36 = vld [vmem:[#allocation7 + $0x2d0] sm:$0xff] }
  0x4e   :  { %v167_v35 = vld [vmem:[#allocation7 + $0x2a0] sm:$0xff]  ;;  %v200_v37 = vld [vmem:[#allocation7 + $0x3a8] sm:$0xff]  ;;  %v186_v39 = vld [vmem:[#allocation7 + $0x338] sm:$0xff]  ;;  %v2185_v40 = vpack.c.bf16 %v187_v30, %v181_v29 }
  0x4f   :  { %2174 = vmatpush1.bf16.msra.mxu1 %v2173_v4  ;;  %2106 = vmatpush1.bf16.msra.mxu0 %v2105_v7  ;;  %v180_v38 = vld [vmem:[#allocation7 + $0x308] sm:$0xff]  ;;  %v193_v41 = vld [vmem:[#allocation7 + $0x370] sm:$0xff]  ;;  %v199_v42 = vld [vmem:[#allocation7 + $0x3a0] sm:$0xff]  ;;  %v2117_v43 = vpack.c.bf16 %v173_v36, %v167_v35  ;;  %v2187_v44 = vpack.c.bf16 %v200_v37, %v194_v33 }
  0x50   :  { %2176 = vmatprep.subr.bf16.mxu1 %v2175_v8  ;;  %2108 = vmatprep.subr.bf16.mxu0 %v2107_v10  ;;  %v206_v45 = vld [vmem:[#allocation7 + $0x3d8] sm:$0xff]  ;;  %v2119_v46 = vpack.c.bf16 %v186_v39, %v180_v38  ;;  %v179_v47 = vld [vmem:[#allocation7 + $0x300] sm:$0xff]  ;;  %v185_v48 = vld [vmem:[#allocation7 + $0x330] sm:$0xff]  ;;  %v2189_v52 = vpack.c.bf16 %v199_v42, %v193_v41 }
  0x51   :  { %v212_v49 = vld [vmem:[#allocation7 + $0x408] sm:$0xff]  ;;  %v198_v51 = vld [vmem:[#allocation7 + $0x398] sm:$0xff]  ;;  %v205_v53 = vld [vmem:[#allocation7 + $0x3d0] sm:$0xff]  ;;  %v2121_v55 = vpack.c.bf16 %v185_v48, %v179_v47 }
  0x52   :  { %v192_v50 = vld [vmem:[#allocation7 + $0x368] sm:$0xff]  ;;  %v211_v54 = vld [vmem:[#allocation7 + $0x400] sm:$0xff]  ;;  %v2191_v56 = vpack.c.bf16 %v212_v49, %v206_v45  ;;  %v218_v57 = vld [vmem:[#allocation7 + $0x438] sm:$0xff] }
  0x53   :  { %2178 = vmatpush1.bf16.msra.mxu1 %v2177_v16  ;;  %2110 = vmatpush1.bf16.msra.mxu0 %v2109_v19  ;;  %v2123_v58 = vpack.c.bf16 %v198_v51, %v192_v50  ;;  %v191_v59 = vld [vmem:[#allocation7 + $0x360] sm:$0xff]  ;;  %v197_v60 = vld [vmem:[#allocation7 + $0x390] sm:$0xff]  ;;  %v224_v61 = vld [vmem:[#allocation7 + $0x468] sm:$0xff]  ;;  %v2193_v0 = vpack.c.bf16 %v211_v54, %v205_v53 }
  0x54   :  { %2180 = vmatprep.subr.bf16.mxu1 %v2179_v20  ;;  %2112 = vmatprep.subr.bf16.mxu0 %v2111_v22  ;;  %v204_v62 = vld [vmem:[#allocation7 + $0x3c8] sm:$0xff]  ;;  %v210_v63 = vld [vmem:[#allocation7 + $0x3f8] sm:$0xff]  ;;  %v217_v1 = vld [vmem:[#allocation7 + $0x430] sm:$0xff]  ;;  %v2125_v3 = vpack.c.bf16 %v197_v60, %v191_v59  ;;  %v2195_v5 = vpack.c.bf16 %v224_v61, %v218_v57 }
  0x55   :  { %v223_v2 = vld [vmem:[#allocation7 + $0x460] sm:$0xff]  ;;  %v2608_v4 = vld [vmem:[#allocation4 + $0x8] sm:$0xff]  ;;  %v230_v6 = vld [vmem:[#allocation7 + $0x498] sm:$0xff]  ;;  %v2127_v7 = vpack.c.bf16 %v210_v63, %v204_v62 }
  0x56   :  { %v203_v8 = vld [vmem:[#allocation7 + $0x3c0] sm:$0xff]  ;;  %v209_v9 = vld [vmem:[#allocation7 + $0x3f0] sm:$0xff]  ;;  %v236_v10 = vld [vmem:[#allocation7 + $0x4c8] sm:$0xff]  ;;  %460 = vmatprep.mubr.f32.mxu1 %v2608_v4  ;;  %371 = vmatprep.mubr.f32.mxu0 %v2608_v4  ;;  %v2197_v13 = vpack.c.bf16 %v223_v2, %v217_v1 }
  0x57   :  { %2182 = vmatpush1.bf16.msra.mxu1 %v2181_v28  ;;  %2114 = vmatpush1.bf16.msra.mxu0 %v2113_v31  ;;  %v216_v11 = vld [vmem:[#allocation7 + $0x428] sm:$0xff]  ;;  %v222_v12 = vld [vmem:[#allocation7 + $0x458] sm:$0xff]  ;;  %v229_v14 = vld [vmem:[#allocation7 + $0x490] sm:$0xff]  ;;  %v2129_v16 = vpack.c.bf16 %v209_v9, %v203_v8  ;;  %v2199_v17 = vpack.c.bf16 %v236_v10, %v230_v6 }
  0x58   :  { %2184 = vmatprep.subr.bf16.mxu1 %v2183_v32  ;;  %2116 = vmatprep.subr.bf16.mxu0 %v2115_v34  ;;  %v235_v15 = vld [vmem:[#allocation7 + $0x4c0] sm:$0xff]  ;;  %v242_v18 = vld [vmem:[#allocation7 + $0x4f8] sm:$0xff]  ;;  %v2131_v19 = vpack.c.bf16 %v222_v12, %v216_v11  ;;  %v221_v21 = vld [vmem:[#allocation7 + $0x450] sm:$0xff] }
  0x59   :  { %v215_v20 = vld [vmem:[#allocation7 + $0x420] sm:$0xff]  ;;  %v248_v22 = vld [vmem:[#allocation7 + $0x528] sm:$0xff]  ;;  %v234_v24 = vld [vmem:[#allocation7 + $0x4b8] sm:$0xff]  ;;  %v2201_v25 = vpack.c.bf16 %v235_v15, %v229_v14 }
  0x5a   :  { %v228_v23 = vld [vmem:[#allocation7 + $0x488] sm:$0xff]  ;;  %v241_v26 = vld [vmem:[#allocation7 + $0x4f0] sm:$0xff]  ;;  %v247_v27 = vld [vmem:[#allocation7 + $0x520] sm:$0xff]  ;;  %v2133_v28 = vpack.c.bf16 %v221_v21, %v215_v20  ;;  %v2203_v29 = vpack.c.bf16 %v248_v22, %v242_v18 }
  0x5b   :  { %2186 = vmatpush1.bf16.msra.mxu1 %v2185_v40  ;;  %2118 = vmatpush1.bf16.msra.mxu0 %v2117_v43  ;;  %v254_v30 = vld [vmem:[#allocation7 + $0x558] sm:$0xff]  ;;  %v2135_v31 = vpack.c.bf16 %v234_v24, %v228_v23  ;;  %v227_v32 = vld [vmem:[#allocation7 + $0x480] sm:$0xff]  ;;  %v233_v33 = vld [vmem:[#allocation7 + $0x4b0] sm:$0xff]  ;;  %v2205_v37 = vpack.c.bf16 %v247_v27, %v241_v26 }
  0x5c   :  { %2188 = vmatprep.subr.bf16.mxu1 %v2187_v44  ;;  %2120 = vmatprep.subr.bf16.mxu0 %v2119_v46  ;;  %v260_v34 = vld [vmem:[#allocation7 + $0x588] sm:$0xff]  ;;  %v246_v36 = vld [vmem:[#allocation7 + $0x518] sm:$0xff]  ;;  %v253_v38 = vld [vmem:[#allocation7 + $0x550] sm:$0xff]  ;;  %v2137_v40 = vpack.c.bf16 %v233_v33, %v227_v32 }
  0x5d   :  { %v240_v35 = vld [vmem:[#allocation7 + $0x4e8] sm:$0xff]  ;;  %v259_v39 = vld [vmem:[#allocation7 + $0x580] sm:$0xff]  ;;  %v2207_v41 = vpack.c.bf16 %v260_v34, %v254_v30  ;;  %v266_v42 = vld [vmem:[#allocation7 + $0x5b8] sm:$0xff] }
  0x5e   :  { %v2139_v43 = vpack.c.bf16 %v246_v36, %v240_v35  ;;  %v239_v44 = vld [vmem:[#allocation7 + $0x4e0] sm:$0xff]  ;;  %v245_v45 = vld [vmem:[#allocation7 + $0x510] sm:$0xff]  ;;  %v272_v46 = vld [vmem:[#allocation7 + $0x5e8] sm:$0xff]  ;;  %v2209_v49 = vpack.c.bf16 %v259_v39, %v253_v38 }
  0x5f   :  { %2190 = vmatpush1.bf16.msra.mxu1 %v2189_v52  ;;  %2122 = vmatpush1.bf16.msra.mxu0 %v2121_v55  ;;  %v252_v47 = vld [vmem:[#allocation7 + $0x548] sm:$0xff]  ;;  %v258_v48 = vld [vmem:[#allocation7 + $0x578] sm:$0xff]  ;;  %v265_v50 = vld [vmem:[#allocation7 + $0x5b0] sm:$0xff]  ;;  %v2141_v51 = vpack.c.bf16 %v245_v45, %v239_v44  ;;  %v2211_v52 = vpack.c.bf16 %v272_v46, %v266_v42 }
  0x60   :  { %2192 = vmatprep.subr.bf16.mxu1 %v2191_v56  ;;  %2124 = vmatprep.subr.bf16.mxu0 %v2123_v58  ;;  %v271_v53 = vld [vmem:[#allocation7 + $0x5e0] sm:$0xff]  ;;  %v2143_v54 = vpack.c.bf16 %v258_v48, %v252_v47  ;;  %v257_v56 = vld [vmem:[#allocation7 + $0x570] sm:$0xff]  ;;  %v264_v57 = vld [vmem:[#allocation7 + $0x5a8] sm:$0xff] }
  0x61   :  { %v251_v55 = vld [vmem:[#allocation7 + $0x540] sm:$0xff]  ;;  %v270_v58 = vld [vmem:[#allocation7 + $0x5d8] sm:$0xff]  ;;  %v2213_v59 = vpack.c.bf16 %v271_v53, %v265_v50  ;;  %v269_v63 = vld [vmem:[#allocation7 + $0x5d0] sm:$0xff] }
  0x62   :  { %v2145_v60 = vpack.c.bf16 %v257_v56, %v251_v55  ;;  %v2147_v61 = vpack.c.bf16 %v270_v58, %v264_v57  ;;  %v263_v62 = vld [vmem:[#allocation7 + $0x5a0] sm:$0xff]  ;;  %v94_v1 = vld [vmem:[#allocation7 + $0x58] sm:$0xff]  ;;  %v93_v8 = vld [vmem:[#allocation7 + $0x50] sm:$0xff] }
  0x63   :  { %2194 = vmatpush1.bf16.msra.mxu1 %v2193_v0  ;;  %2126 = vmatpush1.bf16.msra.mxu0 %v2125_v3  ;;  %v88_v0 = vld [vmem:[#allocation7 + $0x28] sm:$0xff]  ;;  %v2612_v2 = vld [vmem:[#allocation4] sm:$0xff]  ;;  %v2149_v3 = vpack.c.bf16 %v269_v63, %v263_v62  ;;  %v106_v10 = vld [vmem:[#allocation7 + $0xb8] sm:$0xff] }
  0x64   :  { %2196 = vmatprep.subr.bf16.mxu1 %v2195_v5  ;;  %2128 = vmatprep.subr.bf16.mxu0 %v2127_v7  ;;  %v2614_v5 = vld [vmem:[#allocation4 + $0x18] sm:$0xff]  ;;  %v2215_v6 = vpack.c.bf16 %v94_v1, %v88_v0  ;;  %v87_v7 = vld [vmem:[#allocation7 + $0x20] sm:$0xff]  ;;  %v100_v9 = vld [vmem:[#allocation7 + $0x88] sm:$0xff] }
  0x65   :  { %v2618_v11 = vld [vmem:[#allocation4 + $0x10] sm:$0xff]  ;;  %v2620_v12 = vld [vmem:[#allocation4 + $0x28] sm:$0xff]  ;;  %v2219_v14 = vpack.c.bf16 %v106_v10, %v100_v9  ;;  %v99_v15 = vld [vmem:[#allocation7 + $0x80] sm:$0xff] }
  0x66   :  { %v118_v18 = vld [vmem:[#allocation7 + $0x118] sm:$0xff]  ;;  %v111_v23 = vld [vmem:[#allocation7 + $0xe0] sm:$0xff]  ;;  %v117_v24 = vld [vmem:[#allocation7 + $0x110] sm:$0xff] }
  0x67   :  { %2198 = vmatpush1.bf16.msra.mxu1 %v2197_v13  ;;  %2130 = vmatpush1.bf16.msra.mxu0 %v2129_v16  ;;  %v2217_v13 = vpack.c.bf16 %v93_v8, %v87_v7  ;;  %v105_v16 = vld [vmem:[#allocation7 + $0xb0] sm:$0xff]  ;;  %v2628_v20 = vld [vmem:[#allocation4 + $0x38] sm:$0xff]  ;;  %v123_v30 = vld [vmem:[#allocation7 + $0x140] sm:$0xff] }
  0x68   :  { %2200 = vmatprep.subr.bf16.mxu1 %v2199_v17  ;;  %2132 = vmatprep.subr.bf16.mxu0 %v2131_v19  ;;  %v112_v17 = vld [vmem:[#allocation7 + $0xe8] sm:$0xff]  ;;  %v2626_v19 = vld [vmem:[#allocation4 + $0x20] sm:$0xff]  ;;  %v2221_v21 = vpack.c.bf16 %v105_v16, %v99_v15  ;;  %v130_v26 = vld [vmem:[#allocation7 + $0x178] sm:$0xff] }
  0x69   :  { %v2223_v22 = vpack.c.bf16 %v118_v18, %v112_v17  ;;  %v2633_v27 = vld [vmem:[#allocation4 + $0x30] sm:$0xff]  ;;  %v136_v32 = vld [vmem:[#allocation7 + $0x1a8] sm:$0xff]  ;;  %v142_v33 = vld [vmem:[#allocation7 + $0x1d8] sm:$0xff] }
  0x6a   :  { %v2231_v35 = vpack.c.bf16 %v142_v33, %v136_v32  ;;  %v135_v36 = vld [vmem:[#allocation7 + $0x1a0] sm:$0xff]  ;;  %v148_v38 = vld [vmem:[#allocation7 + $0x208] sm:$0xff]  ;;  %v154_v39 = vld [vmem:[#allocation7 + $0x238] sm:$0xff] }
  0x6b   :  { %2202 = vmatpush1.bf16.msra.mxu1 %v2201_v25  ;;  %2134 = vmatpush1.bf16.msra.mxu0 %v2133_v28  ;;  %v124_v25 = vld [vmem:[#allocation7 + $0x148] sm:$0xff]  ;;  %v2225_v28 = vpack.c.bf16 %v117_v24, %v111_v23  ;;  %v147_v42 = vld [vmem:[#allocation7 + $0x200] sm:$0xff]  ;;  %v166_v45 = vld [vmem:[#allocation7 + $0x298] sm:$0xff] }
  0x6c   :  { %2204 = vmatprep.subr.bf16.mxu1 %v2203_v29  ;;  %2136 = vmatprep.subr.bf16.mxu0 %v2135_v31  ;;  %v2227_v29 = vpack.c.bf16 %v130_v26, %v124_v25  ;;  %v129_v31 = vld [vmem:[#allocation7 + $0x170] sm:$0xff]  ;;  %v160_v44 = vld [vmem:[#allocation7 + $0x268] sm:$0xff]  ;;  %v159_v48 = vld [vmem:[#allocation7 + $0x260] sm:$0xff] }
  0x6d   :  { %v2229_v34 = vpack.c.bf16 %v129_v31, %v123_v30  ;;  %v2239_v47 = vpack.c.bf16 %v166_v45, %v160_v44  ;;  %v172_v50 = vld [vmem:[#allocation7 + $0x2c8] sm:$0xff]  ;;  %v171_v53 = vld [vmem:[#allocation7 + $0x2c0] sm:$0xff]  ;;  %v190_v56 = vld [vmem:[#allocation7 + $0x358] sm:$0xff] }
  0x6e   :  { %v184_v55 = vld [vmem:[#allocation7 + $0x328] sm:$0xff]  ;;  %v202_v62 = vld [vmem:[#allocation7 + $0x3b8] sm:$0xff]  ;;  %v195_v1 = vld [vmem:[#allocation7 + $0x380] sm:$0xff] }
  0x6f   :  { %2206 = vmatpush1.bf16.msra.mxu1 %v2205_v37  ;;  %2138 = vmatpush1.bf16.msra.mxu0 %v2137_v40  ;;  %v141_v37 = vld [vmem:[#allocation7 + $0x1d0] sm:$0xff]  ;;  %v2247_v58 = vpack.c.bf16 %v190_v56, %v184_v55  ;;  %v214_v7 = vld [vmem:[#allocation7 + $0x418] sm:$0xff]  ;;  %v207_v10 = vld [vmem:[#allocation7 + $0x3e0] sm:$0xff] }
  0x70   :  { %2208 = vmatprep.subr.bf16.mxu1 %v2207_v41  ;;  %2140 = vmatprep.subr.bf16.mxu0 %v2139_v43  ;;  %v2233_v40 = vpack.c.bf16 %v141_v37, %v135_v36  ;;  %v2235_v41 = vpack.c.bf16 %v154_v39, %v148_v38  ;;  %v153_v43 = vld [vmem:[#allocation7 + $0x230] sm:$0xff]  ;;  %v226_v15 = vld [vmem:[#allocation7 + $0x478] sm:$0xff]  ;;  %v219_v18 = vld [vmem:[#allocation7 + $0x440] sm:$0xff] }
  0x71   :  { %v2237_v46 = vpack.c.bf16 %v153_v43, %v147_v42  ;;  %v238_v23 = vld [vmem:[#allocation7 + $0x4d8] sm:$0xff]  ;;  %v231_v26 = vld [vmem:[#allocation7 + $0x4a0] sm:$0xff] }
  0x72   :  { %v250_v30 = vld [vmem:[#allocation7 + $0x538] sm:$0xff]  ;;  %v243_v33 = vld [vmem:[#allocation7 + $0x500] sm:$0xff] }
  0x73   :  { %2210 = vmatpush1.bf16.msra.mxu1 %v2209_v49  ;;  %2142 = vmatpush1.bf16.msra.mxu0 %v2141_v51  ;;  %v165_v49 = vld [vmem:[#allocation7 + $0x290] sm:$0xff]  ;;  %v178_v51 = vld [vmem:[#allocation7 + $0x2f8] sm:$0xff]  ;;  %v255_v39 = vld [vmem:[#allocation7 + $0x560] sm:$0xff] }
  0x74   :  { %2212 = vmatprep.subr.bf16.mxu1 %v2211_v52  ;;  %2144 = vmatprep.subr.bf16.mxu0 %v2143_v54  ;;  %v2241_v52 = vpack.c.bf16 %v165_v49, %v159_v48  ;;  %v177_v54 = vld [vmem:[#allocation7 + $0x2f0] sm:$0xff]  ;;  %v262_v36 = vld [vmem:[#allocation7 + $0x598] sm:$0xff]  ;;  %v267_v45 = vld [vmem:[#allocation7 + $0x5c0] sm:$0xff]  ;;  %v277_v48 = vlaneseq }
  0x75   :  { %v2245_v57 = vpack.c.bf16 %v177_v54, %v171_v53  ;;  %v274_v42 = vld [vmem:[#allocation7 + $0x5f8] sm:$0xff] }
  0x76   :  { %v2648_v49 = vshrl.u32 %v277_v48, 7 }
  0x77   :  { %2214 = vmatpush1.bf16.msra.mxu1 %v2213_v59  ;;  %2146 = vmatpush1.bf16.msra.mxu0 %v2145_v60  ;;  %v183_v59 = vld [vmem:[#allocation7 + $0x320] sm:$0xff]  ;;  %v189_v60 = vld [vmem:[#allocation7 + $0x350] sm:$0xff] }
  0x78   :  { %2148 = vmatprep.subr.bf16.mxu0 %v2147_v61  ;;  %v196_v61 = vld [vmem:[#allocation7 + $0x388] sm:$0xff]  ;;  %v2249_v63 = vpack.c.bf16 %v189_v60, %v183_v59 }
  0x79   :  { %v2251_v0 = vpack.c.bf16 %v202_v62, %v196_v61  ;;  %v2665_v62 = vsub.s32 1, %v2648_v49 }
  0x7a   :  { %461 = vmatmul.mubr.f32.vlgmr.msra.gmra.mrb[0].mxu1 %v2612_v2 }
  0x7b   :  { %466 = vmatprep.mubr.f32.mxu1 %v2614_v5  ;;  %2150 = vmatpush1.bf16.msra.mxu0 %v2149_v3  ;;  %v201_v3 = vld [vmem:[#allocation7 + $0x3b0] sm:$0xff] }
  0x7c   :  { %2216 = vmatprep.subr.bf16.mxu0 %v2215_v6  ;;  %v208_v6 = vld [vmem:[#allocation7 + $0x3e8] sm:$0xff]  ;;  %v2253_v8 = vpack.c.bf16 %v201_v3, %v195_v1 }
  0x7d   :  { %v2255_v9 = vpack.c.bf16 %v214_v7, %v208_v6 }
  0x7e   :  { %467 = vmatmul.mubr.f32.gmra.mrb[2].mxu1 %v2618_v11  ;;  %372 = vmatmul.mubr.f32.vlgmr.msra.gmra.mrb[0].mxu0 %v2612_v2 }
  0x7f   :  { %377 = vmatprep.mubr.f32.mxu0 %v2614_v5  ;;  %472 = vmatprep.mubr.f32.mxu1 %v2620_v12 }
  0x80   :  { %2218 = vmatpush1.bf16.msra.mxu0 %v2217_v13  ;;  %v213_v13 = vld [vmem:[#allocation7 + $0x410] sm:$0xff] }
  0x81   :  { %2220 = vmatprep.subr.bf16.mxu0 %v2219_v14  ;;  %v220_v14 = vld [vmem:[#allocation7 + $0x448] sm:$0xff]  ;;  %v2257_v16 = vpack.c.bf16 %v213_v13, %v207_v10 }
  0x82   :  { %378 = vmatmul.mubr.f32.gmra.mrb[2].mxu0 %v2618_v11  ;;  %473 = vmatmul.mubr.f32.gmra.mrb[4].mxu1 %v2626_v19  ;;  %v2259_v17 = vpack.c.bf16 %v226_v15, %v220_v14 }
  0x83   :  { %478 = vmatprep.mubr.f32.mxu1 %v2628_v20  ;;  %383 = vmatprep.mubr.f32.mxu0 %v2620_v12 }
  0x84   :  { %2222 = vmatpush1.bf16.msra.mxu0 %v2221_v21  ;;  %v225_v21 = vld [vmem:[#allocation7 + $0x470] sm:$0xff] }
  0x85   :  { %2224 = vmatprep.subr.bf16.mxu0 %v2223_v22  ;;  %v232_v22 = vld [vmem:[#allocation7 + $0x4a8] sm:$0xff]  ;;  %v2261_v24 = vpack.c.bf16 %v225_v21, %v219_v18 }
  0x86   :  { %479 = vmatmul.mubr.f32.gmra.mrb[6].mxu1 %v2633_v27  ;;  %384 = vmatmul.mubr.f32.gmra.mrb[4].mxu0 %v2626_v19  ;;  %v2263_v25 = vpack.c.bf16 %v238_v23, %v232_v22 }
  0x87   :  { %389 = vmatprep.mubr.f32.mxu0 %v2628_v20 }
  0x88   :  { %2226 = vmatpush1.bf16.msra.mxu0 %v2225_v28  ;;  %v237_v28 = vld [vmem:[#allocation7 + $0x4d0] sm:$0xff] }
  0x89   :  { %2228 = vmatprep.subr.bf16.mxu0 %v2227_v29  ;;  %v244_v29 = vld [vmem:[#allocation7 + $0x508] sm:$0xff]  ;;  %v2265_v31 = vpack.c.bf16 %v237_v28, %v231_v26 }
  0x8a   :  { %390 = vmatmul.mubr.f32.gmra.mrb[6].mxu0 %v2633_v27  ;;  %v2267_v32 = vpack.c.bf16 %v250_v30, %v244_v29 }
  0x8b   :  { %549 = vmatprep.mubr.f32.mxu0 %v2608_v4  ;;  %v2243_v4 = vpack.c.bf16 %v178_v51, %v172_v50  ;;  %v287_v50 = vsub.s32 2, %v2648_v49  ;;  %v2652_v51 = vsub.s32 0, %v2648_v49 }
  0x8c   :  { %2230 = vmatpush1.bf16.msra.mxu0 %v2229_v34  ;;  %v249_v34 = vld [vmem:[#allocation7 + $0x530] sm:$0xff] }
  0x8d   :  { %2232 = vmatprep.subr.bf16.mxu0 %v2231_v35  ;;  %v256_v35 = vld [vmem:[#allocation7 + $0x568] sm:$0xff]  ;;  %v2269_v37 = vpack.c.bf16 %v249_v34, %v243_v33 }
  0x8e   :  { %v2271_v38 = vpack.c.bf16 %v262_v36, %v256_v35 }
  0x90   :  { %2234 = vmatpush1.bf16.msra.mxu0 %v2233_v40  ;;  %v261_v40 = vld [vmem:[#allocation7 + $0x590] sm:$0xff] }
  0x91   :  { %2236 = vmatprep.subr.bf16.mxu0 %v2235_v41  ;;  %v268_v41 = vld [vmem:[#allocation7 + $0x5c8] sm:$0xff]  ;;  %v2273_v43 = vpack.c.bf16 %v261_v40, %v255_v39 }
  0x92   :  { %v2275_v44 = vpack.c.bf16 %v274_v42, %v268_v41 }
  0x94   :  { %2238 = vmatpush1.bf16.msra.mxu0 %v2237_v46  ;;  %v273_v46 = vld [vmem:[#allocation7 + $0x5f0] sm:$0xff] }
  0x95   :  { %2240 = vmatprep.subr.bf16.mxu0 %v2239_v47  ;;  %v2277_v47 = vpack.c.bf16 %v273_v46, %v267_v45 }
  0x98   :  { %2242 = vmatpush1.bf16.msra.mxu0 %v2241_v52 }
  0x99   :  { %2244 = vmatprep.subr.bf16.mxu0 %v2243_v4 }
  0x9c   :  { %2246 = vmatpush1.bf16.msra.mxu0 %v2245_v57 }
  0x9d   :  { %2248 = vmatprep.subr.bf16.mxu0 %v2247_v58 }
  0xa0   :  { %2250 = vmatpush1.bf16.msra.mxu0 %v2249_v63 }
  0xa1   :  { %2252 = vmatprep.subr.bf16.mxu0 %v2251_v0 }
  0xa4   :  { %2254 = vmatpush1.bf16.msra.mxu0 %v2253_v8 }
  0xa5   :  { %2256 = vmatprep.subr.bf16.mxu0 %v2255_v9 }
  0xa8   :  { %2258 = vmatpush1.bf16.msra.mxu0 %v2257_v16 }
  0xa9   :  { %2260 = vmatprep.subr.bf16.mxu0 %v2259_v17 }
  0xac   :  { %2262 = vmatpush1.bf16.msra.mxu0 %v2261_v24 }
  0xad   :  { %2264 = vmatprep.subr.bf16.mxu0 %v2263_v25 }
  0xb0   :  { %2266 = vmatpush1.bf16.msra.mxu0 %v2265_v31  ;;  %v295_v31 = vsub.s32 4, %v2648_v49 }
  0xb1   :  { %2268 = vmatprep.subr.bf16.mxu0 %v2267_v32  ;;  %v299_v32 = vsub.s32 5, %v2648_v49 }
  0xb4   :  { %2270 = vmatpush1.bf16.msra.mxu0 %v2269_v37 }
  0xb5   :  { %2272 = vmatprep.subr.bf16.mxu0 %v2271_v38 }
  0xb8   :  { %2274 = vmatpush1.bf16.msra.mxu0 %v2273_v43 }
  0xb9   :  { %2276 = vmatprep.subr.bf16.mxu0 %v2275_v44 }
  0xbc   :  { %2278 = vmatpush1.bf16.msra.mxu0 %v2277_v47 }
  0xbf   :  { %550 = vmatmul.mubr.f32.vlgmr.msra.gmra.mrb[8].mxu0 %v2612_v2  ;;  %v2657_v2 = vld [vmem:[%s3137_s4] sm:$0x3f] }
  0xc0   :  { %555 = vmatprep.mubr.f32.mxu0 %v2614_v5  ;;  %v291_v5 = vsub.s32 3, %v2648_v49  ;;  %v284_v7 = vrot.slane %v2657_v2, %v2665_v62  ;;  %v296_v33 = vrot.slane %v2657_v2, %v295_v31  ;;  %v300_v35 = vrot.slane %v2657_v2, %v299_v32 }
  0xc3   :  { %556 = vmatmul.mubr.f32.gmra.mrb[10].mxu0 %v2618_v11 }
  0xc4   :  { %561 = vmatprep.mubr.f32.mxu0 %v2620_v12  ;;  %v288_v12 = vrot.slane %v2657_v2, %v287_v50 }
  0xc7   :  { %562 = vmatmul.mubr.f32.gmra.mrb[12].mxu0 %v2626_v19 }
  0xc8   :  { %567 = vmatprep.mubr.f32.mxu0 %v2628_v20  ;;  %v280_v20 = vrot.slane %v2657_v2, %v2652_v51 }
  0xcb   :  { %568 = vmatmul.mubr.f32.gmra.mrb[14].mxu0 %v2633_v27  ;;  %v292_v27 = vrot.slane %v2657_v2, %v291_v5 }
 0x14d   :  { %v462_v11 = vpop.f32.mrb[0].mxu1 }
 0x14e   :  { %v464_v19 = vpop.f32.mrb[1].mxu1  ;;  %v463_v53 = vadd.f32 %v462_v11, %v288_v12 }
 0x14f   :  { %v465_v58 = vadd.f32 %v464_v19, %v292_v27 }
 0x151   :  { %v468_v52 = vpop.f32.mrb[2].mxu1  ;;  %v373_v4 = vpop.f32.mrb[0].mxu0 }
 0x152   :  { %v469_v54 = vadd.f32 %v468_v52, %v288_v12  ;;  %v470_v55 = vpop.f32.mrb[3].mxu1  ;;  %v374_v56 = vadd.f32 %v373_v4, %v280_v20  ;;  %v375_v57 = vpop.f32.mrb[1].mxu0 }
 0x153   :  { %v471_v59 = vadd.f32 %v470_v55, %v292_v27  ;;  %v376_v21 = vadd.f32 %v375_v57, %v284_v7 }
 0x154   :  { %v2279_v60 = vpack.c.bf16 %v469_v54, %v463_v53  ;;  %2035 = vmatprep.mubr.f32.mxu0 %v374_v56 }
 0x155   :  { %v2287_v61 = vpack.c.bf16 %v471_v59, %v465_v58  ;;  %v379_v63 = vpop.f32.mrb[2].mxu0  ;;  %v474_v0 = vpop.f32.mrb[4].mxu1  ;;  %v1994_v59 = vld [vmem:[%s3135_s2 + $0x1] ss:$0 sm:$0xff] }
 0x156   :  { %2280 = vmatprep.subr.bf16.mxu0 %v2279_v60  ;;  %v476_v1 = vpop.f32.mrb[5].mxu1  ;;  %v381_v3 = vpop.f32.mrb[3].mxu0  ;;  %v475_v6 = vadd.f32 %v474_v0, %v288_v12  ;;  %v380_v13 = vadd.f32 %v379_v63, %v280_v20 }
 0x157   :  { %2282 = vmatpush3.bf16.xpose.msra.mxu0 %v2279_v60  ;;  %v477_v8 = vadd.f32 %v476_v1, %v292_v27  ;;  %v382_v26 = vadd.f32 %v381_v3, %v284_v7 }
 0x158   :  { %2288 = vmatprep.subr.bf16.mxu0 %v2287_v61 }
 0x159   :  { %v480_v9 = vpop.f32.mrb[6].mxu1  ;;  %v385_v10 = vpop.f32.mrb[4].mxu0 }
 0x15a   :  { %v481_v14 = vadd.f32 %v480_v9, %v288_v12  ;;  %v482_v15 = vpop.f32.mrb[7].mxu1  ;;  %v387_v16 = vpop.f32.mrb[5].mxu0  ;;  %v386_v25 = vadd.f32 %v385_v10, %v280_v20  ;;  %v1989_v12 = vld [vmem:[%s3135_s2] ss:$0 sm:$0xff] }
 0x15b   :  { %v483_v17 = vadd.f32 %v482_v15, %v292_v27  ;;  %v388_v29 = vadd.f32 %v387_v16, %v284_v7  ;;  %v2519_v15 = vmov 0  }
 0x15c   :  { %v2295_v18 = vpack.c.bf16 %v481_v14, %v475_v6  ;;  %2385 = vset.pattern.permute.xlu1 %v2519_v15  ;;  %2384 = vset.pattern.permute.xlu0 %v2519_v15 }
 0x15d   :  { %v2303_v22 = vpack.c.bf16 %v483_v17, %v477_v8  ;;  %v391_v23 = vpop.f32.mrb[6].mxu0 }
 0x15e   :  { %2036 = vmatmul.mubr.f32.vlgmr.msra.gmra.mrb[16].mxu0 %v380_v13  ;;  %v393_v24 = vpop.f32.mrb[7].mxu0  ;;  %v392_v28 = vadd.f32 %v391_v23, %v280_v20 }
 0x15f   :  { %2290 = vmatpush3.bf16.xpose.msra.mxu0 %v2287_v61  ;;  %2049 = vmatprep.mubr.f32.mxu0 %v376_v21  ;;  %v394_v30 = vadd.f32 %v393_v24, %v284_v7 }
 0x160   :  { %2296 = vmatprep.subr.bf16.mxu0 %v2295_v18 }
 0x166   :  { %2050 = vmatmul.mubr.f32.vlgmr.msra.gmra.mrb[18].mxu0 %v382_v26 }
 0x167   :  { %2298 = vmatpush3.bf16.xpose.msra.mxu0 %v2295_v18  ;;  %2063 = vmatprep.mubr.f32.mxu0 %v386_v25 }
 0x168   :  { %2304 = vmatprep.subr.bf16.mxu0 %v2303_v22 }
 0x16e   :  { %2064 = vmatmul.mubr.f32.vlgmr.msra.gmra.mrb[20].mxu0 %v392_v28 }
 0x16f   :  { %2306 = vmatpush3.bf16.xpose.msra.mxu0 %v2303_v22  ;;  %2077 = vmatprep.mubr.f32.mxu0 %v388_v29 }
 0x176   :  { %2078 = vmatmul.mubr.f32.vlgmr.msra.gmra.mrb[22].mxu0 %v394_v30 }
 0x192   :  { %v551_v34 = vpop.f32.mrb[8].mxu0 }
 0x193   :  { %v553_v36 = vpop.f32.mrb[9].mxu0  ;;  %v2673_v37 = vadd.f32 %v551_v34, %v296_v33 }
 0x194   :  { %v2675_v38 = vadd.f32 %v553_v36, %v300_v35 }
 0x196   :  { %v557_v39 = vpop.f32.mrb[10].mxu0 }
 0x197   :  { %v2677_v40 = vadd.f32 %v557_v39, %v296_v33  ;;  %v559_v41 = vpop.f32.mrb[11].mxu0 }
 0x198   :  { %v2679_v42 = vadd.f32 %v559_v41, %v300_v35 }
 0x199   :  { %v2283_v43 = vpack.c.bf16 %v2677_v40, %v2673_v37 }
 0x19a   :  { %v2685_v44 = vpack.c.bf16 %v2679_v42, %v2675_v38  ;;  %v563_v45 = vpop.f32.mrb[12].mxu0 }
 0x19b   :  { %v2687_v46 = vadd.f32 %v563_v45, %v296_v33  ;;  %2284 = vmatprep.subr.bf16.mxu1 %v2283_v43  ;;  %v565_v47 = vpop.f32.mrb[13].mxu0 }
 0x19c   :  { %v2689_v48 = vadd.f32 %v565_v47, %v300_v35  ;;  %2286 = vmatpush3.bf16.msra.mxu1 %v2283_v43 }
 0x19d   :  { %2292 = vmatprep.subr.bf16.mxu1 %v2685_v44 }
 0x19e   :  { %v569_v50 = vpop.f32.mrb[14].mxu0 }
 0x19f   :  { %v2692_v2 = vadd.f32 %v569_v50, %v296_v33  ;;  %v571_v5 = vpop.f32.mrb[15].mxu0 }
 0x1a0   :  { %v2694_v11 = vadd.f32 %v571_v5, %v300_v35 }
 0x1a1   :  { %v2299_v45 = vpack.c.bf16 %v2692_v2, %v2687_v46 }
 0x231   :  { %v2037_v19 = vpop.f32.mrb[16].mxu0 }
 0x232   :  { %v1097_v20 = vpop.f32.mrb[17].mxu0  ;;  %v1103_v52 = vadd.f32 %v2037_v19, %v1989_v12 }
 0x233   :  { %v1098_v27 = vadd.f32 %v1989_v12, %v1097_v20 }
 0x234   :  { %v1110_v54 = vsel %vm1106_vm0, %v1103_v52, -inf }
 0x235   :  { %v1107_v4 = vsel %vm1106_vm0, %v1098_v27, -inf }
 0x236   :  { %1108 = vmax.xlane.f32.xlu0 %v1107_v4 }
 0x239   :  { %v2051_v53 = vpop.f32.mrb[18].mxu0 }
 0x23a   :  { %v1284_v55 = vpop.f32.mrb[19].mxu0  ;;  %1111 = vmax.xlane.f32.xlu0 %v1110_v54  ;;  %v1290_v57 = vadd.f32 %v2051_v53, %v1989_v12  ;;  %v2307_v54 = vpack.c.bf16 %v2694_v11, %v2689_v48 }
 0x23b   :  { %v1285_v56 = vadd.f32 %v1989_v12, %v1284_v55 }
 0x23c   :  { %v1296_v61 = vsel %vm1106_vm0, %v1290_v57, -inf }
 0x23d   :  { %v1293_v58 = vsel %vm1106_vm0, %v1285_v56, -inf }
 0x23e   :  { %1294 = vmax.xlane.f32.xlu1 %v1293_v58 }
 0x241   :  { %v2065_v60 = vpop.f32.mrb[20].mxu0 }
 0x242   :  { %v1482_v63 = vadd.f32 %v2065_v60, %v1994_v59  ;;  %v1476_v0 = vpop.f32.mrb[21].mxu0  ;;  %1297 = vmax.xlane.f32.xlu1 %v1296_v61 }
 0x243   :  { %v1477_v1 = vadd.f32 %v1994_v59, %v1476_v0  ;;  %v1787_v0 = vld [vmem:[#allocation9 + $0x8] sm:$0xff] }
 0x244   :  { %v1488_v3 = vsel %vm1106_vm0, %v1482_v63, -inf }
 0x245   :  { %v1485_v6 = vsel %vm1106_vm0, %v1477_v1, -inf }
 0x246   :  { %1489 = vmax.xlane.f32.xlu1 %v1488_v3  ;;  %1486 = vmax.xlane.f32.xlu0 %v1485_v6  ;;  %v80_v3 = vld [vmem:[%s3134_s1 + $0x8] sm:$0xff] }
 0x249   :  { %v2079_v7 = vpop.f32.mrb[22].mxu0 }
 0x24a   :  { %v1668_v8 = vadd.f32 %v2079_v7, %v1994_v59  ;;  %v1662_v9 = vpop.f32.mrb[23].mxu0  ;;  %v1786_v7 = vld [vmem:[#allocation9] sm:$0xff] }
 0x24b   :  { %v1663_v10 = vadd.f32 %v1994_v59, %v1662_v9 }
 0x24c   :  { %v1674_v13 = vsel %vm1106_vm0, %v1668_v8, -inf }
 0x24d   :  { %1675 = vmax.xlane.f32.xlu1 %v1674_v13  ;;  %v1671_v14 = vsel %vm1106_vm0, %v1663_v10, -inf  ;;  %v1793_v13 = vld [vmem:[#allocation9 + $0x38] sm:$0xff] }
 0x24e   :  { %1672 = vmax.xlane.f32.xlu0 %v1671_v14  ;;  %v81_v14 = vld [vmem:[%s3134_s1 + $0x10] sm:$0xff] }
 0x2c3   :  { %v1109_v16 = vpop.xlane.xlu0 %1108 }
 0x2c4   :  { %v1113_v17 = vsub.f32 %v1098_v27, %v1109_v16  ;;  %v1790_v16 = vld [vmem:[#allocation9 + $0x20] sm:$0xff] }
 0x2c6   :  { %v1115_v18 = vmul.f32 1.442695, %v1113_v17  ;;  %v1792_v17 = vld [vmem:[#allocation9 + $0x30] sm:$0xff] }
 0x2c7   :  { %v1112_v21 = vpop.xlane.xlu0 %1111 }
 0x2c8   :  { %2386 = vpow2.f32 %v1115_v18  ;;  %v1114_v22 = vsub.f32 %v1103_v52, %v1112_v21  ;;  %v2317_v18 = vpack.c.bf16 %v1792_v17, %v1790_v16  ;;  %v1795_v21 = vld [vmem:[#allocation9 + $0x48] sm:$0xff]  ;;  %v1829_v16 = vld [vmem:[#allocation9 + $0x158] sm:$0xff] }
 0x2ca   :  { %v1117_v23 = vmul.f32 1.442695, %v1114_v22  ;;  %v1797_v22 = vld [vmem:[#allocation9 + $0x58] sm:$0xff] }
 0x2cb   :  { %v1295_v24 = vpop.xlane.xlu1 %1294 }
 0x2cc   :  { %2388 = vpow2.f32 %v1117_v23  ;;  %v1299_v25 = vsub.f32 %v1285_v56, %v1295_v24  ;;  %v82_v23 = vld [vmem:[%s3134_s1 + $0x18] sm:$0xff]  ;;  %v2319_v24 = vpack.c.bf16 %v1797_v22, %v1795_v21  ;;  %v1826_v21 = vld [vmem:[#allocation9 + $0x140] sm:$0xff]  ;;  %v1828_v22 = vld [vmem:[#allocation9 + $0x150] sm:$0xff] }
 0x2ce   :  { %v1301_v26 = vmul.f32 1.442695, %v1299_v25  ;;  %v1794_v25 = vld [vmem:[#allocation9 + $0x40] sm:$0xff] }
 0x2cf   :  { %v1298_v28 = vpop.xlane.xlu1 %1297 }
 0x2d0   :  { %2390 = vpow2.f32 %v1301_v26  ;;  %v1300_v29 = vsub.f32 %v1290_v57, %v1298_v28  ;;  %v1796_v26 = vld [vmem:[#allocation9 + $0x50] sm:$0xff] }
 0x2d1   :  { %v2321_v28 = vpack.c.bf16 %v1796_v26, %v1794_v25  ;;  %v2353_v25 = vpack.c.bf16 %v1828_v22, %v1826_v21 }
 0x2d2   :  { %v2387_v30 = vpop.eup %2386  ;;  %v1303_v31 = vmul.f32 1.442695, %v1300_v29  ;;  %v79_v29 = vld [vmem:[%s3134_s1] sm:$0xff] }
 0x2d3   :  { %v1490_v32 = vpop.xlane.xlu1 %1489  ;;  %2042 = vmatprep.mubr.msk.f32.mxu1 %vm1106_vm0, %v2387_v30  ;;  %v1487_v33 = vpop.xlane.xlu0 %1486  ;;  %v1119_v34 = vsel %vm1106_vm0, %v2387_v30, 0.0  ;;  %v1799_v30 = vld [vmem:[#allocation9 + $0x68] sm:$0xff] }
 0x2d4   :  { %2392 = vpow2.f32 %v1303_v31  ;;  %v1492_v35 = vsub.f32 %v1482_v63, %v1490_v32  ;;  %v1491_v36 = vsub.f32 %v1477_v1, %v1487_v33  ;;  %1120 = vadd.xlane.f32.xlu1 %v1119_v34  ;;  %v1789_v1 = vld [vmem:[#allocation9 + $0x18] sm:$0xff]  ;;  %v1798_v33 = vld [vmem:[#allocation9 + $0x60] sm:$0xff]  ;;  %v1800_v34 = vld [vmem:[#allocation9 + $0x70] sm:$0xff] }
 0x2d5   :  { %v2311_v6 = vpack.c.bf16 %v1789_v1, %v1787_v0  ;;  %v1801_v31 = vld [vmem:[#allocation9 + $0x78] sm:$0xff]  ;;  %v1818_v1 = vld [vmem:[#allocation9 + $0x100] sm:$0xff] }
 0x2d6   :  { %v2389_v39 = vpop.eup %2388  ;;  %v1495_v41 = vmul.f32 1.442695, %v1492_v35  ;;  %v1493_v43 = vmul.f32 1.442695, %v1491_v36  ;;  %v2323_v32 = vpack.c.bf16 %v1801_v31, %v1799_v30  ;;  %v2325_v35 = vpack.c.bf16 %v1800_v34, %v1798_v33  ;;  %v1803_v36 = vld [vmem:[#allocation9 + $0x88] sm:$0xff]  ;;  %v1821_v0 = vld [vmem:[#allocation9 + $0x118] sm:$0xff] }
 0x2d7   :  { %2043 = vmatmul.mubr.msk.f32.vlgmr.msra.gmra.mrb[8].mxu1 %vm1106_vm0, %v2389_v39  ;;  %v1122_v47 = vsel %vm1106_vm0, %v2389_v39, 0.0  ;;  %v1805_v39 = vld [vmem:[#allocation9 + $0x98] sm:$0xff]  ;;  %v1835_v30 = vld [vmem:[#allocation9 + $0x188] sm:$0xff]  ;;  %v1834_v34 = vld [vmem:[#allocation9 + $0x180] sm:$0xff] }
 0x2d8   :  { %2394 = vpow2.f32 %v1495_v41  ;;  %2294 = vmatpush3.bf16.msra.mxu1 %v2685_v44  ;;  %1123 = vadd.xlane.f32.xlu1 %v1122_v47  ;;  %v2327_v41 = vpack.c.bf16 %v1805_v39, %v1803_v36  ;;  %v1837_v31 = vld [vmem:[#allocation9 + $0x198] sm:$0xff]  ;;  %v1839_v36 = vld [vmem:[#allocation9 + $0x1a8] sm:$0xff] }
 0x2d9   :  { %2396 = vpow2.f32 %v1493_v43  ;;  %2300 = vmatprep.subr.bf16.mxu1 %v2299_v45  ;;  %v1802_v43 = vld [vmem:[#allocation9 + $0x80] sm:$0xff]  ;;  %v2359_v33 = vpack.c.bf16 %v1837_v31, %v1835_v30  ;;  %v1841_v39 = vld [vmem:[#allocation9 + $0x1b8] sm:$0xff] }
 0x2da   :  { %v2391_v50 = vpop.eup %2390  ;;  %v1676_v5 = vpop.xlane.xlu1 %1675 }
 0x2db   :  { %v1678_v12 = vsub.f32 %v1668_v8, %v1676_v5  ;;  %2056 = vmatprep.mubr.msk.f32.mxu1 %vm1106_vm0, %v2391_v50  ;;  %v1673_v19 = vpop.xlane.xlu0 %1672  ;;  %v1305_v20 = vsel %vm1106_vm0, %v2391_v50, 0.0  ;;  %v1788_v8 = vld [vmem:[#allocation9 + $0x10] sm:$0xff]  ;;  %v1807_v50 = vld [vmem:[#allocation9 + $0xa8] sm:$0xff]  ;;  %v1809_v5 = vld [vmem:[#allocation9 + $0xb8] sm:$0xff] }
 0x2dc   :  { %v1677_v27 = vsub.f32 %v1663_v10, %v1673_v19  ;;  %1306 = vadd.xlane.f32.xlu0 %v1305_v20  ;;  %v2313_v9 = vpack.c.bf16 %v1788_v8, %v1786_v7  ;;  %v1791_v10 = vld [vmem:[#allocation9 + $0x28] sm:$0xff]  ;;  %v1806_v19 = vld [vmem:[#allocation9 + $0xa0] sm:$0xff]  ;;  %v1808_v20 = vld [vmem:[#allocation9 + $0xb0] sm:$0xff] }
 0x2dd   :  { %v1681_v52 = vmul.f32 1.442695, %v1678_v12  ;;  %v2315_v15 = vpack.c.bf16 %v1793_v13, %v1791_v10  ;;  %v2331_v12 = vpack.c.bf16 %v1809_v5, %v1807_v50  ;;  %v1823_v7 = vld [vmem:[#allocation9 + $0x128] sm:$0xff]  ;;  %v1825_v8 = vld [vmem:[#allocation9 + $0x138] sm:$0xff]  ;;  %v1822_v13 = vld [vmem:[#allocation9 + $0x120] sm:$0xff] }
 0x2de   :  { %v2393_v4 = vpop.eup %2392  ;;  %v1679_v53 = vmul.f32 1.442695, %v1677_v27  ;;  %v2333_v27 = vpack.c.bf16 %v1808_v20, %v1806_v19  ;;  %v2347_v10 = vpack.c.bf16 %v1825_v8, %v1823_v7  ;;  %v1843_v50 = vld [vmem:[#allocation9 + $0x1c8] sm:$0xff]  ;;  %v1845_v5 = vld [vmem:[#allocation9 + $0x1d8] sm:$0xff]  ;;  %v1842_v20 = vld [vmem:[#allocation9 + $0x1c0] sm:$0xff] }
 0x2df   :  { %2057 = vmatmul.mubr.msk.f32.vlgmr.msra.gmra.mrb[10].mxu1 %vm1106_vm0, %v2393_v4  ;;  %v1308_v44 = vsel %vm1106_vm0, %v2393_v4, 0.0  ;;  %v1813_v4 = vld [vmem:[#allocation9 + $0xd8] sm:$0xff]  ;;  %v2367_v19 = vpack.c.bf16 %v1845_v5, %v1843_v50  ;;  %v1986_v50 = vld [vmem:[%s3138_s5 + $0x1] ss:$8 sm:$0x3] }
 0x2e0   :  { %2398 = vpow2.f32 %v1679_v53  ;;  %2302 = vmatpush3.bf16.msra.mxu1 %v2299_v45  ;;  %1309 = vadd.xlane.f32.xlu0 %v1308_v44  ;;  %v1804_v45 = vld [vmem:[#allocation9 + $0x90] sm:$0xff]  ;;  %v1987_v5 = vld [vmem:[%s3138_s5 + $0x2] ss:$8 sm:$0x3] }
 0x2e1   :  { %2400 = vpow2.f32 %v1681_v52  ;;  %2308 = vmatprep.subr.bf16.mxu1 %v2307_v54  ;;  %v2329_v47 = vpack.c.bf16 %v1804_v45, %v1802_v43  ;;  %v1811_v52 = vld [vmem:[#allocation9 + $0xc8] sm:$0xff]  ;;  %v1812_v44 = vld [vmem:[#allocation9 + $0xd0] sm:$0xff]  ;;  %v2363_v43 = vpack.c.bf16 %v1841_v39, %v1839_v36  ;;  %v1838_v45 = vld [vmem:[#allocation9 + $0x1a0] sm:$0xff]  ;;  %v629_v39 = vadd.s32 16, %v2648_v49 }
 0x2e2   :  { %v2395_v55 = vpop.eup %2394  ;;  %v2335_v53 = vpack.c.bf16 %v1813_v4, %v1811_v52  ;;  %v1847_v52 = vld [vmem:[#allocation9 + $0x1e8] sm:$0xff]  ;;  %v1849_v4 = vld [vmem:[#allocation9 + $0x1f8] sm:$0xff] }
 0x2e3   :  { %v2397_v56 = vpop.eup %2396  ;;  %v1500_v58 = vsel %vm1106_vm0, %v2395_v55, 0.0 }
 0x2e4   :  { %2070 = vmatprep.mubr.msk.f32.mxu1 %vm1106_vm0, %v2397_v56  ;;  %v1497_v57 = vsel %vm1106_vm0, %v2397_v56, 0.0  ;;  %v1815_v56 = vld [vmem:[#allocation9 + $0xe8] sm:$0xff] }
 0x2e5   :  { %2071 = vmatmul.mubr.msk.f32.vlgmr.msra.gmra.mrb[12].mxu1 %vm1106_vm0, %v2395_v55  ;;  %1498 = vadd.xlane.f32.xlu1 %v1497_v57  ;;  %v1817_v57 = vld [vmem:[#allocation9 + $0xf8] sm:$0xff] }
 0x2e6   :  { %2310 = vmatpush3.bf16.msra.mxu1 %v2307_v54  ;;  %v1810_v54 = vld [vmem:[#allocation9 + $0xc0] sm:$0xff] }
 0x2e7   :  { %2312 = vmatprep.subr.bf16.mxu1 %v2311_v6  ;;  %v2337_v55 = vpack.c.bf16 %v1812_v44, %v1810_v54  ;;  %v1820_v6 = vld [vmem:[#allocation9 + $0x110] sm:$0xff]  ;;  %v2371_v54 = vpack.c.bf16 %v1849_v4, %v1847_v52  ;;  %v1846_v44 = vld [vmem:[#allocation9 + $0x1e0] sm:$0xff] }
 0x2e9   :  { %1501 = vadd.xlane.f32.xlu1 %v1500_v58  ;;  %v2339_v58 = vpack.c.bf16 %v1817_v57, %v1815_v56 }
 0x2ea   :  { %v2399_v59 = vpop.eup %2398 }
 0x2eb   :  { %v2401_v60 = vpop.eup %2400  ;;  %2084 = vmatprep.mubr.msk.f32.mxu1 %vm1106_vm0, %v2399_v59  ;;  %v1683_v61 = vsel %vm1106_vm0, %v2399_v59, 0.0  ;;  %v1814_v59 = vld [vmem:[#allocation9 + $0xe0] sm:$0xff] }
 0x2ec   :  { %2085 = vmatmul.mubr.msk.f32.vlgmr.msra.gmra.mrb[14].mxu1 %vm1106_vm0, %v2401_v60  ;;  %1684 = vadd.xlane.f32.xlu0 %v1683_v61  ;;  %v1686_v63 = vsel %vm1106_vm0, %v2401_v60, 0.0  ;;  %v1816_v60 = vld [vmem:[#allocation9 + $0xf0] sm:$0xff] }
 0x2ed   :  { %2314 = vmatpush1.bf16.msra.mxu1 %v2313_v9  ;;  %v2341_v61 = vpack.c.bf16 %v1816_v60, %v1814_v59  ;;  %v2345_v9 = vpack.c.bf16 %v1820_v6, %v1818_v1 }
 0x2ee   :  { %2316 = vmatprep.subr.bf16.mxu1 %v2315_v15  ;;  %v1827_v15 = vld [vmem:[#allocation9 + $0x148] sm:$0xff] }
 0x2f0   :  { %1687 = vadd.xlane.f32.xlu0 %v1686_v63  ;;  %v1819_v63 = vld [vmem:[#allocation9 + $0x108] sm:$0xff] }
 0x2f1   :  { %2318 = vmatpush1.bf16.msra.mxu1 %v2317_v18  ;;  %v2351_v18 = vpack.c.bf16 %v1829_v16, %v1827_v15 }
 0x2f2   :  { %2320 = vmatprep.subr.bf16.mxu1 %v2319_v24  ;;  %v1833_v24 = vld [vmem:[#allocation9 + $0x178] sm:$0xff] }
 0x2f5   :  { %2322 = vmatpush1.bf16.msra.mxu1 %v2321_v28  ;;  %v1830_v28 = vld [vmem:[#allocation9 + $0x160] sm:$0xff] }
 0x2f6   :  { %2324 = vmatprep.subr.bf16.mxu1 %v2323_v32 }
 0x2f9   :  { %2326 = vmatpush1.bf16.msra.mxu1 %v2325_v35  ;;  %v1836_v35 = vld [vmem:[#allocation9 + $0x190] sm:$0xff] }
 0x2fa   :  { %605 = vperm.xlu1 %2385, %v80_v3   ;;  %2328 = vmatprep.subr.bf16.mxu1 %v2327_v41  ;;  %v2343_v3 = vpack.c.bf16 %v1821_v0, %v1819_v63  ;;  %v2361_v41 = vpack.c.bf16 %v1836_v35, %v1834_v34  ;;  %v1985_v35 = vld [vmem:[%s3138_s5 + $0x4] ss:$8 sm:$0x3] }
 0x2fd   :  { %2330 = vmatpush1.bf16.msra.mxu1 %v2329_v47  ;;  %v1840_v47 = vld [vmem:[#allocation9 + $0x1b0] sm:$0xff] }
 0x2fe   :  { %610 = vperm.xlu1 %2385, %v81_v14   ;;  %2332 = vmatprep.subr.bf16.mxu1 %v2331_v12  ;;  %v1824_v14 = vld [vmem:[#allocation9 + $0x130] sm:$0xff]  ;;  %v2365_v12 = vpack.c.bf16 %v1840_v47, %v1838_v45  ;;  %v2757_v45 = vrot.slane %v1985_v35, %v2652_v51  ;;  %v2760_v47 = vrot.slane %v1985_v35, %v2665_v62 }
 0x2ff   :  { %v2349_v17 = vpack.c.bf16 %v1824_v14, %v1822_v13 }
 0x301   :  { %2334 = vmatpush1.bf16.msra.mxu1 %v2333_v27  ;;  %v1844_v27 = vld [vmem:[#allocation9 + $0x1d0] sm:$0xff] }
 0x302   :  { %615 = vperm.xlu1 %2385, %v82_v23   ;;  %2336 = vmatprep.subr.bf16.mxu1 %v2335_v53  ;;  %v1831_v23 = vld [vmem:[#allocation9 + $0x168] sm:$0xff]  ;;  %v2369_v53 = vpack.c.bf16 %v1844_v27, %v1842_v20 }
 0x303   :  { %v2355_v26 = vpack.c.bf16 %v1833_v24, %v1831_v23 }
 0x305   :  { %2338 = vmatpush1.bf16.msra.mxu1 %v2337_v55  ;;  %v1848_v55 = vld [vmem:[#allocation9 + $0x1f0] sm:$0xff] }
 0x306   :  { %600 = vperm.xlu0 %2384, %v79_v29   ;;  %2340 = vmatprep.subr.bf16.mxu1 %v2339_v58  ;;  %v1832_v29 = vld [vmem:[#allocation9 + $0x170] sm:$0xff]  ;;  %v2373_v56 = vpack.c.bf16 %v1848_v55, %v1846_v44  ;;  %v2817_v55 = vrot.slane %v1987_v5, %v2665_v62 }
 0x307   :  { %v2357_v32 = vpack.c.bf16 %v1832_v29, %v1830_v28 }
 0x309   :  { %2342 = vmatpush1.bf16.msra.mxu1 %v2341_v61 }
 0x30a   :  { %2344 = vmatprep.subr.bf16.mxu1 %v2343_v3 }
 0x30d   :  { %2346 = vmatpush1.bf16.msra.mxu1 %v2345_v9 }
 0x30e   :  { %2348 = vmatprep.subr.bf16.mxu1 %v2347_v10 }
 0x311   :  { %2350 = vmatpush1.bf16.msra.mxu1 %v2349_v17 }
 0x312   :  { %2352 = vmatprep.subr.bf16.mxu1 %v2351_v18 }
 0x315   :  { %2354 = vmatpush1.bf16.msra.mxu1 %v2353_v25 }
 0x316   :  { %2356 = vmatprep.subr.bf16.mxu1 %v2355_v26 }
 0x319   :  { %2358 = vmatpush1.bf16.msra.mxu1 %v2357_v32 }
 0x31a   :  { %2360 = vmatprep.subr.bf16.mxu1 %v2359_v33 }
 0x31d   :  { %2362 = vmatpush1.bf16.msra.mxu1 %v2361_v41 }
 0x31e   :  { %2364 = vmatprep.subr.bf16.mxu1 %v2363_v43  ;;  %v753_v43 = vld [vmem:[%s3138_s5] ss:$8 sm:$0x3] }
 0x321   :  { %2366 = vmatpush1.bf16.msra.mxu1 %v2365_v12  ;;  %v1988_v12 = vld [vmem:[%s3138_s5 + $0x3] ss:$8 sm:$0x3] }
 0x322   :  { %2368 = vmatprep.subr.bf16.mxu1 %v2367_v19  ;;  %v2772_v19 = vand.u32 15, %v2648_v49  ;;  %v2793_v49 = vand.u32 15, %v629_v39 }
 0x324   :  { %vm733_vm5 = vcmp.ge.s32.totalorder %v2772_v19, 4  ;;  %vm735_vm6 = vcmp.ge.s32.totalorder %v2793_v49, 4  ;;  %vm806_vm7 = vcmp.ge.s32.totalorder %v2772_v19, 3  ;;  %vm880_vm8 = vcmp.ge.s32.totalorder %v2772_v19, 2 }
 0x325   :  { %2370 = vmatpush1.bf16.msra.mxu1 %v2369_v53  ;;  %v2791_v53 = vrot.slane %v753_v43, %v2652_v51  ;;  %vm954_vm9 = vcmp.ge.s32.totalorder %v2772_v19, 1  ;;  %vm808_vm10 = vcmp.ge.s32.totalorder %v2793_v49, 3  ;;  %vm882_vm11 = vcmp.ge.s32.totalorder %v2793_v49, 2 }
 0x326   :  { %2372 = vmatprep.subr.bf16.mxu1 %v2371_v54  ;;  %v2802_v54 = vrot.slane %v1986_v50, %v2665_v62  ;;  %vm956_vm12 = vcmp.ge.s32.totalorder %v2793_v49, 1 }
 0x329   :  { %2374 = vmatpush1.bf16.msra.mxu1 %v2373_v56  ;;  %v2820_v56 = vrot.slane %v1988_v12, %v2652_v51 }
 0x361   :  { %v1121_v58 = vpop.xlane.xlu1 %1120 }
 0x365   :  { %v1124_v61 = vpop.xlane.xlu1 %1123 }
 0x369   :  { %v1307_v57 = vpop.xlane.xlu0 %1306 }
 0x36a   :  { %2402 = vrcp.f32 %v1307_v57  ;;  %v2823_v57 = vrot.slane %v1988_v12, %v2665_v62 }
 0x36b   :  { %2404 = vrcp.f32 %v1121_v58 }
 0x36d   :  { %v1310_v59 = vpop.xlane.xlu0 %1309 }
 0x36e   :  { %2406 = vrcp.f32 %v1310_v59 }
 0x36f   :  { %2408 = vrcp.f32 %v1124_v61 }
 0x372   :  { %v1499_v1 = vpop.xlane.xlu1 %1498 }
 0x374   :  { %v2403_v6 = vpop.eup %2402 }
 0x375   :  { %v2405_v8 = vpop.eup %2404 }
 0x376   :  { %v1502_v17 = vpop.xlane.xlu1 %1501 }
 0x378   :  { %v2407_v10 = vpop.eup %2406 }
 0x379   :  { %v1685_v0 = vpop.xlane.xlu0 %1684  ;;  %v2409_v16 = vpop.eup %2408 }
 0x37a   :  { %2410 = vrcp.f32 %v1685_v0  ;;  %v2743_v34 = vpop.permute.xlu1 %605 }
 0x37b   :  { %2412 = vrcp.f32 %v1499_v1  ;;  %v2784_v52 = vmul.f32 %v2743_v34, %v2677_v40  ;;  %v2805_v40 = vrot.slane %v1987_v5, %v2652_v51  ;;  %v2814_v44 = vmul.f32 %v2743_v34, %v2679_v42 }
 0x37d   :  { %v1688_v13 = vpop.xlane.xlu0 %1687  ;;  %v2835_v61 = vmul.f32 %v2757_v45, %v2784_v52  ;;  %v711_v1 = vrot.slane %v2784_v52, 4 }
 0x37e   :  { %2414 = vrcp.f32 %v1688_v13  ;;  %v2751_v41 = vpop.permute.xlu1 %610 }
 0x37f   :  { %2416 = vrcp.f32 %v1502_v17  ;;  %v2788_v4 = vmul.f32 %v2751_v41, %v2687_v46  ;;  %v2810_v46 = vld [vmem:[%s3140_s7] sm:$0x3]  ;;  %s2520_s7 = smov [#allocation10]  }
 0x380   :  { %v2831_v42 = vrot.slane %v2810_v46, %v2652_v51  ;;  %s1972_s20 = sshll.u32 %s2520_s7, 4  ;;  %s1973_s20 = int_to_ptr.vmem [resolvable:$true] %s1972_s20 }
 0x381   :  { %s2484_s6 = scalar_lea.vmem %s1973_s20, 1024  ;;  %p2489_p11 = scmp.lt.s32.totalorder %s1973_s20, %s1973_s20 }
 0x382   :  { %v2842_v0 = vpop.permute.xlu1 %615  ;;  %p2485_p10 = scmp.ne.s32.totalorder %s1973_s20, %s2484_s6  ;;  %p2490_p12 = scmp.lt.s32.totalorder %s2484_s6, %s2484_s6 }
 0x383   :  { %v2863_v17 = vmul.f32 %v2842_v0, %v2692_v2 }
 0x384   :  { %v2411_v24 = vpop.eup %2410  ;;  %p2491_p13 = por %p2490_p12, %p2489_p11 }
 0x385   :  { %v2413_v26 = vpop.eup %2412  ;;  %v2748_v36 = vpop.permute.xlu0 %600 }
 0x386   :  { %v2776_v20 = vmul.f32 %v2748_v36, %v2673_v37  ;;  %v2780_v27 = vmul.f32 %v2748_v36, %v2675_v38  ;;  %v2796_v37 = vrot.slane %v753_v43, %v2665_v62  ;;  %v2799_v38 = vrot.slane %v1986_v50, %v2652_v51  ;;  %p2492_p0 = pnand %p2491_p13, %p2485_p10 }
 0x387   :  { %v3145_v51 = vrot.slane %v2784_v52, 6 }
 0x388   :  { %v2415_v29 = vpop.eup %2414  ;;  %v709_v58 = vrot.slane %v2776_v20, 4  ;;  %v710_v59 = vrot.slane %v2780_v27, 4 }
 0x389   :  { %v2417_v32 = vpop.eup %2416 }
 0x38a   :  { %v732_v13 = vsel %vm708_vm1, 0.0, %v710_v59 }
 0x3aa   :  { %v2044_v60 = vpop.f32.mrb[8].mxu1 }
 0x3ab   :  { %v1199_v63 = vpop.f32.mrb[9].mxu1  ;;  %v1211_v21 = vmul.f32 %v2409_v16, %v2044_v60  ;;  %v715_v60 = vrot.slane %v2788_v4, 4  ;;  %v3142_v16 = vrot.slane %v2788_v4, 7 }
 0x3ac   :  { %v1210_v14 = vmul.f32 %v2405_v8, %v1199_v63  ;;  %v2840_v63 = vmul.f32 %v2751_v41, %v2689_v48  ;;  %v713_v8 = vrot.slane %v2814_v44, 4 }
 0x3b2   :  { %v2058_v3 = vpop.f32.mrb[10].mxu1 }
 0x3b3   :  { %v1385_v7 = vpop.f32.mrb[11].mxu1  ;;  %v1397_v15 = vmul.f32 %v2407_v10, %v2058_v3  ;;  %v3147_v3 = vrot.slane %v2784_v52, 5  ;;  %v731_v10 = vsel %vm708_vm1, 0.0, %v709_v58 }
 0x3b4   :  { %v1396_v9 = vmul.f32 %v2403_v6, %v1385_v7  ;;  %v3144_v6 = vrot.slane %v2784_v52, 7  ;;  %v2851_v7 = vmul.f32 %v2760_v47, %v2814_v44  ;;  %v745_v2 = vsel %vm733_vm5, %v731_v10, 0.0 }
 0x3b5   :  { %v765_v50 = vmul.f32 %v2791_v53, %v745_v2  ;;  %v719_v10 = vrot.slane %v2863_v17, 4  ;;  %v692_v2 = vmul.f32 %v2757_v45, %v2776_v20 }
 0x3b6   :  { %1926 = vmatprep.mubr.f32.mxu1 %v1396_v9  ;;  %v3146_v9 = vrot.slane %v2788_v4, 5  ;;  %v2915_v39 = vsel %vm929_vm4, %v3144_v6, %v3142_v16  ;;  %v857_v16 = vrot.slane %v2780_v27, 6 }
 0x3b7   :  { %1927 = vmatmul.mubr.f32.vlgmr.msra.gmra.mrb[16].mxu1 %v1210_v14  ;;  %v712_v14 = vsel %vm708_vm1, %v709_v58, %v711_v1  ;;  %v720_v58 = vsel %vm708_vm1, %v715_v60, %v719_v10 }
 0x3b8   :  { %v2072_v18 = vpop.f32.mrb[12].mxu1  ;;  %1932 = vmatprep.mubr.f32.mxu1 %v1397_v15  ;;  %v3143_v15 = vrot.slane %v2788_v4, 6 }
 0x3b9   :  { %v1577_v22 = vpop.f32.mrb[13].mxu1  ;;  %v1589_v33 = vmul.f32 %v2417_v32, %v2072_v18  ;;  %v716_v18 = vsel %vm708_vm1, %v711_v1, %v715_v60  ;;  %v2894_v32 = vmul.f32 %v2757_v45, %v2863_v17 }
 0x3ba   :  { %v1588_v30 = vmul.f32 %v2413_v26, %v1577_v22  ;;  %v2871_v22 = vmul.f32 %v2842_v0, %v2694_v11  ;;  %v746_v26 = vsel %vm733_vm5, %v732_v13, 0.0  ;;  %v2908_v35 = vsel %vm855_vm3, %v3145_v51, %v3143_v15 }
 0x3bb   :  { %1933 = vmatmul.mubr.f32.gmra.mrb[18].mxu1 %v1211_v21  ;;  %v766_v5 = vmul.f32 %v2796_v37, %v746_v26  ;;  %v792_v15 = vrot.slane %v2863_v17, 5  ;;  %v693_v26 = vmul.f32 %v2760_v47, %v2780_v27  ;;  %v931_v21 = vrot.slane %v2780_v27, 7 }
 0x3bc   :  { %v2919_v43 = vmul.f32 %v2760_v47, %v2871_v22  ;;  %v721_v11 = vrot.slane %v2871_v22, 4  ;;  %v3170_v49 = vrot.slane %v2871_v22, 7 }
 0x3bd   :  { %v774_v51 = vadd.f32 %v766_v5, %v693_v26  ;;  %v767_v5 = vmul.f32 %v2791_v53, %v712_v14 }
 0x3bf   :  { %v2086_v23 = vpop.f32.mrb[14].mxu1  ;;  %v775_v60 = vadd.f32 %v767_v5, %v2835_v61 }
 0x3c0   :  { %v1763_v25 = vpop.f32.mrb[15].mxu1  ;;  %v1775_v31 = vmul.f32 %v2415_v29, %v2086_v23  ;;  %v782_v23 = vrot.slane %v2776_v20, 5  ;;  %v794_v29 = vrot.slane %v2871_v22, 5 }
 0x3c1   :  { %v1774_v28 = vmul.f32 %v2411_v24, %v1763_v25  ;;  %v773_v25 = vadd.f32 %v765_v50, %v692_v2  ;;  %v930_v24 = vrot.slane %v2776_v20, 7 }
 0x3c2   :  { %v804_v12 = vsel %vm781_vm2, 0.0, %v782_v23 }
 0x3c3   :  { %1938 = vmatprep.mubr.f32.mxu1 %v1774_v28  ;;  %v783_v28 = vrot.slane %v2780_v27, 5  ;;  %v818_v6 = vsel %vm806_vm7, %v804_v12, 0.0 }
 0x3c4   :  { %1939 = vmatmul.mubr.f32.gmra.mrb[20].mxu1 %v1588_v30  ;;  %v2886_v30 = vmul.f32 %v2757_v45, %v2788_v4  ;;  %v714_v45 = vsel %vm708_vm1, %v710_v59, %v713_v8  ;;  %v839_v50 = vmul.f32 %v2799_v38, %v818_v6  ;;  %v3148_v59 = vrot.slane %v2840_v63, 4 }
 0x3c5   :  { %1944 = vmatprep.mubr.f32.mxu1 %v1775_v31  ;;  %v2890_v31 = vsel %vm735_vm6, %v716_v18, 0.0  ;;  %v805_v13 = vsel %vm781_vm2, 0.0, %v783_v28  ;;  %v856_v18 = vrot.slane %v2776_v20, 6  ;;  %v768_v26 = vmul.f32 %v2796_v37, %v714_v45 }
 0x3c6   :  { %v722_v12 = vsel %vm708_vm1, %v3148_v59, %v721_v11  ;;  %v847_v10 = vadd.f32 %v839_v50, %v773_v25  ;;  %v952_v11 = vsel %vm929_vm4, 0.0, %v930_v24  ;;  %v953_v59 = vsel %vm929_vm4, 0.0, %v931_v21 }
 0x3c7   :  { %v878_v48 = vsel %vm855_vm3, 0.0, %v856_v18  ;;  %v3150_v25 = vrot.slane %v2814_v44, 5  ;;  %v3151_v50 = vrot.slane %v2840_v63, 4  ;;  %v776_v61 = vadd.f32 %v768_v26, %v2851_v7 }
 0x3c8   :  { %1945 = vmatmul.mubr.f32.gmra.mrb[22].mxu1 %v1589_v33  ;;  %v2901_v33 = vsel %vm781_vm2, %v3147_v3, %v3146_v9  ;;  %v819_v9 = vsel %vm806_vm7, %v805_v13, 0.0  ;;  %v879_v3 = vsel %vm855_vm3, 0.0, %v857_v16  ;;  %v892_v6 = vsel %vm880_vm8, %v878_v48, 0.0 }
 0x3c9   :  { %v840_v2 = vmul.f32 %v2802_v54, %v819_v9  ;;  %v893_v14 = vsel %vm880_vm8, %v879_v3, 0.0  ;;  %v3149_v9 = vrot.slane %v2784_v52, 5  ;;  %v771_v13 = vmul.f32 %v2791_v53, %v720_v58 }
 0x3ca   :  { %v787_v48 = vsel %vm781_vm2, %v783_v28, %v3150_v25  ;;  %v718_v3 = vsel %vm708_vm1, %v713_v8, %v3151_v50  ;;  %v914_v58 = vmul.f32 %v2817_v55, %v893_v14  ;;  %v966_v28 = vsel %vm954_vm9, %v952_v11, 0.0 }
 0x3cb   :  { %v848_v1 = vadd.f32 %v840_v2, %v774_v51  ;;  %v785_v45 = vsel %vm781_vm2, %v782_v23, %v3149_v9  ;;  %v3152_v51 = vrot.slane %v2788_v4, 5  ;;  %v913_v23 = vmul.f32 %v2805_v40, %v892_v6 }
 0x3cc   :  { %v967_v5 = vsel %vm954_vm9, %v953_v59, 0.0  ;;  %v841_v8 = vmul.f32 %v2799_v38, %v785_v45  ;;  %v3153_v9 = vrot.slane %v2784_v52, 6  ;;  %v842_v14 = vmul.f32 %v2802_v54, %v787_v48 }
 0x3cd   :  { %v793_v2 = vsel %vm781_vm2, %v3152_v51, %v792_v15  ;;  %v921_v25 = vadd.f32 %v913_v23, %v847_v10  ;;  %v922_v6 = vadd.f32 %v914_v58, %v848_v1  ;;  %v750_v7 = vsel %vm735_vm6, %v718_v3, 0.0 }
 0x3ce   :  { %v859_v15 = vsel %vm855_vm3, %v856_v18, %v3153_v9  ;;  %v772_v26 = vmul.f32 %v2796_v37, %v722_v12  ;;  %v3154_v11 = vrot.slane %v2840_v63, 5  ;;  %v849_v59 = vadd.f32 %v841_v8, %v775_v60 }
 0x3cf   :  { %v3155_v45 = vrot.slane %v2814_v44, 6  ;;  %v987_v18 = vmul.f32 %v2820_v56, %v966_v28  ;;  %v988_v1 = vmul.f32 %v2823_v57, %v967_v5  ;;  %v850_v10 = vadd.f32 %v842_v14, %v776_v61 }
 0x3d0   :  { %v795_v19 = vsel %vm781_vm2, %v3154_v11, %v794_v29  ;;  %v769_v48 = vmul.f32 %v2791_v53, %v2890_v31  ;;  %v845_v12 = vmul.f32 %v2799_v38, %v793_v2  ;;  %v915_v3 = vmul.f32 %v2805_v40, %v859_v15 }
 0x3d1   :  { %v861_v50 = vsel %vm855_vm3, %v857_v16, %v3155_v45  ;;  %v770_v29 = vmul.f32 %v2796_v37, %v750_v7  ;;  %v3156_v60 = vmov %v3154_v11  ;;  %v3157_v16 = vrot.slane %v2814_v44, 5 }
 0x3d2   :  { %v995_v23 = vadd.f32 %v987_v18, %v921_v25  ;;  %v996_v58 = vadd.f32 %v988_v1, %v922_v6  ;;  %v3158_v61 = vrot.slane %v2784_v52, 7  ;;  %v916_v31 = vmul.f32 %v2817_v55, %v861_v50 }
 0x3d3   :  { %v791_v51 = vsel %vm781_vm2, %v3157_v16, %v3156_v60  ;;  %v923_v28 = vadd.f32 %v915_v3, %v849_v59  ;;  %v3159_v2 = vrot.slane %v2814_v44, 7  ;;  %v822_v37 = vsel %vm808_vm10, %v2901_v33, 0.0 }
 0x3d4   :  { %v933_v53 = vsel %vm929_vm4, %v930_v24, %v3158_v61  ;;  %v697_v8 = vmul.f32 %v2760_v47, %v2840_v63  ;;  %v846_v9 = vmul.f32 %v2802_v54, %v795_v19  ;;  %v924_v15 = vadd.f32 %v916_v31, %v850_v10 }
 0x3d5   :  { %v935_v5 = vsel %vm929_vm4, %v931_v21, %v3159_v2  ;;  %v777_v25 = vadd.f32 %v769_v48, %v2886_v30  ;;  %v823_v24 = vsel %vm808_vm10, %v791_v51, 0.0  ;;  %v779_v6 = vadd.f32 %v771_v13, %v2894_v32 }
 0x3d6   :  { %v989_v14 = vmul.f32 %v2820_v56, %v933_v53  ;;  %v778_v21 = vadd.f32 %v770_v29, %v697_v8  ;;  %v3160_v7 = vrot.slane %v2840_v63, 6  ;;  %v3161_v33 = vmov %v3155_v45 }
 0x3d7   :  { %v1003_v47 = vadd.f32 %v995_v23, %v2776_v20  ;;  %v1004_v19 = vadd.f32 %v996_v58, %v2780_v27  ;;  %v990_v30 = vmul.f32 %v2823_v57, %v935_v5  ;;  %v843_v59 = vmul.f32 %v2799_v38, %v822_v37 }
 0x3d8   :  { %v865_v11 = vsel %vm855_vm3, %v3161_v33, %v3160_v7  ;;  %v3162_v45 = vrot.slane %v2863_v17, 6  ;;  %v3163_v32 = vrot.slane %v2788_v4, 6  ;;  %v997_v50 = vadd.f32 %v989_v14, %v923_v28 }
 0x3d9   :  { %v896_v18 = vsel %vm882_vm11, %v2908_v35, 0.0  ;;  %v844_v1 = vmul.f32 %v2802_v54, %v823_v24  ;;  %v3058_v20 = vrot.slane %v2810_v46, %v2665_v62  ;;  %v998_v27 = vadd.f32 %v990_v30, %v924_v15 }
 0x3da   :  { %v867_v13 = vsel %vm855_vm3, %v3163_v32, %v3162_v45  ;;  %v851_v10 = vadd.f32 %v843_v59, %v777_v25  ;;  %v897_v38 = vsel %vm882_vm11, %v865_v11, 0.0  ;;  %v780_v48 = vadd.f32 %v772_v26, %v2919_v43 }
 0x3db   :  { %v3164_v3 = vrot.slane %v2871_v22, 6  ;;  %v3165_v29 = vmov %v3160_v7  ;;  %v852_v35 = vadd.f32 %v844_v1, %v778_v21  ;;  %v3166_v54 = vrot.slane %v2840_v63, 7 }
 0x3dc   :  { %v3167_v16 = vmov %v3159_v2  ;;  %v853_v46 = vadd.f32 %v845_v12, %v779_v6  ;;  %v1011_v51 = vmul.f32 %v1003_v47, %v2748_v36  ;;  %v1012_v23 = vmul.f32 %v1004_v19, %v2748_v36 }
 0x3dd   :  { %v869_v60 = vsel %vm855_vm3, %v3165_v29, %v3164_v3  ;;  %v939_v62 = vsel %vm929_vm4, %v3167_v16, %v3166_v54  ;;  %v917_v43 = vmul.f32 %v2805_v40, %v896_v18  ;;  %v1005_v53 = vadd.f32 %v997_v50, %v2784_v52 }
 0x3de   :  { %v970_v31 = vsel %vm956_vm12, %v2915_v39, 0.0  ;;  %v918_v28 = vmul.f32 %v2817_v55, %v897_v38  ;;  %v1006_v2 = vadd.f32 %v998_v27, %v2814_v44  ;;  %v971_v36 = vsel %vm956_vm12, %v939_v62, 0.0 }
 0x3df   :  { %v925_v5 = vadd.f32 %v917_v43, %v851_v10  ;;  %v854_v37 = vadd.f32 %v846_v9, %v780_v48  ;;  %v919_v8 = vmul.f32 %v2805_v40, %v867_v13  ;;  %v920_v52 = vmul.f32 %v2817_v55, %v869_v60 }
 0x3e0   :  { %v926_v25 = vadd.f32 %v918_v28, %v852_v35  ;;  %v3168_v24 = vrot.slane %v2863_v17, 7  ;;  %v3169_v39 = vrot.slane %v2788_v4, 7  ;;  %v991_v44 = vmul.f32 %v2820_v56, %v970_v31 }
 0x3e1   :  { %v3171_v9 = vmov %v3166_v54  ;;  %v1013_v7 = vmul.f32 %v1005_v53, %v2743_v34  ;;  %v992_v11 = vmul.f32 %v2823_v57, %v971_v36  ;;  %v927_v47 = vadd.f32 %v919_v8, %v853_v46 }
 0x3e2   :  { %v941_v6 = vsel %vm929_vm4, %v3169_v39, %v3168_v24  ;;  %v943_v40 = vsel %vm929_vm4, %v3171_v9, %v3170_v49  ;;  %v1014_v19 = vmul.f32 %v1006_v2, %v2743_v34  ;;  %v999_v59 = vadd.f32 %v991_v44, %v925_v5 }
 0x3e3   :  { %v928_v45 = vadd.f32 %v920_v52, %v854_v37  ;;  %v1000_v13 = vadd.f32 %v992_v11, %v926_v25  ;;  %v993_v50 = vmul.f32 %v2820_v56, %v941_v6  ;;  %v994_v1 = vmul.f32 %v2823_v57, %v943_v40 }
 0x3e4   :  { %v1007_v10 = vadd.f32 %v999_v59, %v2788_v4 }
 0x3e5   :  { %v1001_v27 = vadd.f32 %v993_v50, %v927_v47  ;;  %v1002_v38 = vadd.f32 %v994_v1, %v928_v45  ;;  %v1008_v48 = vadd.f32 %v1000_v13, %v2840_v63 }
 0x3e6   :  { %v1015_v29 = vmul.f32 %v1007_v10, %v2751_v41 }
 0x3e7   :  { %v1009_v3 = vadd.f32 %v1001_v27, %v2863_v17  ;;  %v1010_v56 = vadd.f32 %v1002_v38, %v2871_v22  ;;  %v1016_v57 = vmul.f32 %v1008_v48, %v2751_v41 }
 0x3e9   :  { %v1017_v46 = vmul.f32 %v1009_v3, %v2842_v0 }
 0x48a   :  { %v1928_v58 = vpop.f32.mrb[16].mxu1 }
 0x48b   :  { %v1929_v26 = vadd.f32 %v1928_v58, %v2831_v42  ;;  %v1930_v61 = vpop.f32.mrb[17].mxu1 }
 0x48c   :  { %v1931_v12 = vadd.f32 %v1930_v61, %v3058_v20 }
 0x48d   :  { %v1951_v15 = vadd.f32 %v1929_v26, %v1011_v51  ;;  %v1018_v51 = vmul.f32 %v1010_v56, %v2842_v0 }
 0x48e   :  { %v1952_v14 = vadd.f32 %v1931_v12, %v1012_v23  ;;  %v1934_v21 = vpop.f32.mrb[18].mxu1 }
 0x48f   :  { %1959 = vst [vmem:[#allocation10] sm:$0xff] %v1951_v15  ;;  %v1935_v55 = vadd.f32 %v1934_v21, %v2831_v42  ;;  %v1936_v33 = vpop.f32.mrb[19].mxu1 }
 0x490   :  { %1960 = vst [vmem:[#allocation10 + $0x8] sm:$0xff] %v1952_v14  ;;  %v1937_v30 = vadd.f32 %v1936_v33, %v3058_v20 }
 0x491   :  { %v1953_v32 = vadd.f32 %v1935_v55, %v1013_v7 }
 0x492   :  { %v1954_v18 = vadd.f32 %v1937_v30, %v1014_v19 }
 0x493   :  { %1961 = vst [vmem:[#allocation10 + $0x10] sm:$0xff] %v1953_v32 }
 0x494   :  { %1962 = vst [vmem:[#allocation10 + $0x18] sm:$0xff] %v1954_v18 }
 0x497   :  { %v1940_v34 = vpop.f32.mrb[20].mxu1 }
 0x498   :  { %v1941_v60 = vadd.f32 %v1940_v34, %v2831_v42  ;;  %v1942_v35 = vpop.f32.mrb[21].mxu1 }
 0x499   :  { %v1943_v54 = vadd.f32 %v1942_v35, %v3058_v20 }
 0x49a   :  { %v1955_v16 = vadd.f32 %v1941_v60, %v1015_v29 }
 0x49b   :  { %v1956_v62 = vadd.f32 %v1943_v54, %v1016_v57  ;;  %v1946_v4 = vpop.f32.mrb[22].mxu1 }
 0x49c   :  { %1963 = vst [vmem:[#allocation10 + $0x20] sm:$0xff] %v1955_v16  ;;  %v1947_v63 = vadd.f32 %v1946_v4, %v2831_v42  ;;  %v1948_v17 = vpop.f32.mrb[23].mxu1 }
 0x49d   :  { %1964 = vst [vmem:[#allocation10 + $0x28] sm:$0xff] %v1956_v62  ;;  %v1949_v22 = vadd.f32 %v1948_v17, %v3058_v20 }
 0x49e   :  { %v1957_v23 = vadd.f32 %v1947_v63, %v1017_v46 }
 0x49f   :  { %v1958_v41 = vadd.f32 %v1949_v22, %v1018_v51 }
 0x4a0   :  { %1965 = vst [vmem:[#allocation10 + $0x30] sm:$0xff] %v1957_v23 }
 0x4a1   :  { %1966 = vst [vmem:[#allocation10 + $0x38] sm:$0xff] %v1958_v41 }
 0x4a2   :  { %2495 = shalt.err (!%p2492_p0)
}
 0x4a3   :  { %s2496_s22 = scalar_lea.hbm %s3141_s8, 1024 }
 0x4a4   :  { %p2497_p1 = scmp.ne.s32.totalorder %s3141_s8, %s2496_s22  ;;  %p2500_p2 = scmp.lt.u32.totalorder %s2496_s22, %s3141_s8 }
 0x4a6   :  { %p2502_p3 = pnand %p2500_p2, %p2497_p1 }
 0x4a8   :  { %2505 = shalt.err (!%p2502_p3)
}
 0x4a9   :  { %1978 = dma.vmem_to_hbm [thread:$0]  %s1973_s20, 1024, %s3141_s8, [#allocation6], %s2516_s3, %s2516_s3, %s2517_s28  }
 0x4aa   :  { %2510 = dma.done.wait [#allocation6], 1024  }
 0x4ab   :  { %2511 = vsyncadd [#allocation6], 4294966272 }
 0x4ac   :  { %1982 = vsyncpa [#allocation5], 1 }
 0x4ad   :  { %1983 = vsyncpa [#allocation8], 1 }
 0x4ae   :  { %1984 = vsyncpa [#allocation6], 1 }

</bundles_post_ra>
